<compile_context>
chip_gen: v5e
topology: v5e:2x2
jax: 0.10.0
libtpu: 0.0.40
codegen_flags: <defaults>
</compile_context>

<pallas_src>
import functools
import math

import jax
import jax.numpy as jnp
from jax import lax
from jax.experimental import pallas as pl
from jax.experimental.pallas import tpu as pltpu


def _round_up(v, m):
    return ((v + m - 1) // m) * m


def _sigmoid_via_tanh(x):
    # sigmoid(x) == 0.5 * (tanh(0.5 * x) + 1): one EUP op instead of exp+divide.
    return 0.5 * (jnp.tanh(0.5 * x) + 1.0)


def _gru_seq_kernel(x_ref, h0_ref, b_ref, alpha_ref, w_hbm_ref,
                    out_ref,
                    xh_ref, h_ref, w_vmem_ref, w_sem,
                    *, Hp, Inp, TB, use_proj):
    """One grid step = TB GRU timesteps for one batch block.

    Grid = (batch_blocks, T//TB).  Hidden state is carried in f32 in h_ref;
    xh_ref holds the bf16 [h | x_t] slab fed to the single fused MXU call.
    """
    tb = pl.program_id(1)

    @pl.when(tb == 0)
    def _():
        # One-time (per batch block / per core) weight DMA into a
        # single-buffered VMEM scratch, overlapped with the hidden init.
        cp = pltpu.make_async_copy(w_hbm_ref, w_vmem_ref, w_sem.at[0])
        cp.start()
        h0 = h0_ref[...]
        h_ref[...] = h0
        xh_ref[:, :Hp] = h0.astype(xh_ref.dtype)
        cp.wait()

    alpha = alpha_ref[0, 0]

    def step(i, carry):
        x_t = x_ref[i]                                      # (Bblk, Inp) f32
        xh_ref[:, Hp:Hp + Inp] = x_t.astype(xh_ref.dtype)   # full-lane bf16 store

        # Single fused bf16 MXU call: (B, Hp+Inp) @ (Hp+Inp, n*Hp) -> f32.
        g = jnp.dot(xh_ref[...], w_vmem_ref[...],
                    preferred_element_type=jnp.float32) + b_ref[...]

        h = h_ref[...]                                      # f32 carry
        resetgate = _sigmoid_via_tanh(g[:, 0 * Hp:1 * Hp])  # i_r + h_r (+ bias)
        inputgate = _sigmoid_via_tanh(g[:, 1 * Hp:2 * Hp])  # i_i + h_i (+ bias)
        newgate = jnp.tanh(g[:, 2 * Hp:3 * Hp] + resetgate * g[:, 3 * Hp:4 * Hp])
        if use_proj:
            proj = g[:, 4 * Hp:5 * Hp]                      # proj(x) + proj_b
        else:
            proj = x_t                                      # Inp == Hp here; exact f32 residual

        h_new = h + (1.0 - inputgate) * (proj + alpha * (newgate - h))

        h_ref[...] = h_new                                  # f32 carry
        xh_ref[:, :Hp] = h_new.astype(xh_ref.dtype)         # bf16 copy for next matmul
        out_ref[i] = h_new.astype(out_ref.dtype)            # lane-dense store
        return carry

    lax.fori_loop(0, TB, step, 0, unroll=True)


def prepare_params(params, input_size, hidden_size):
    """Build the fused / padded / bf16 weight once, outside the per-step path."""
    H, In = hidden_size, input_size
    Hp = _round_up(H, 128)      # lane-aligned hidden width
    Inp = _round_up(In, 128)    # lane-aligned input width
    use_proj = (In != H)
    n_chunks = 5 if use_proj else 4
    Kp = Hp + Inp

    wx = params["x2h_w"].T.astype(jnp.float32)   # (In, 3H)
    wh = params["h2h_w"].T.astype(jnp.float32)   # (H, 3H)
    bx = params["x2h_b"].astype(jnp.float32)     # (3H,)
    bh = params["h2h_b"].astype(jnp.float32)     # (3H,)

    # Rows:    [0:H] hidden weights, [H:Hp] zero pad, [Hp:Hp+In] x weights,
    #          [Hp+In:Kp] zero pad.
    # Columns: chunks of width Hp: r_sum | i_sum | i_n | h_n | (proj).
    W = jnp.zeros((Kp, n_chunks * Hp), jnp.float32)
    b = jnp.zeros((n_chunks * Hp,), jnp.float32)

    h_rows = slice(0, H)
    x_rows = slice(Hp, Hp + In)

    W = W.at[h_rows, 0 * Hp:0 * Hp + H].set(wh[:, 0:H])
    W = W.at[x_rows, 0 * Hp:0 * Hp + H].set(wx[:, 0:H])
    W = W.at[h_rows, 1 * Hp:1 * Hp + H].set(wh[:, H:2 * H])
    W = W.at[x_rows, 1 * Hp:1 * Hp + H].set(wx[:, H:2 * H])
    W = W.at[x_rows, 2 * Hp:2 * Hp + H].set(wx[:, 2 * H:3 * H])
    W = W.at[h_rows, 3 * Hp:3 * Hp + H].set(wh[:, 2 * H:3 * H])

    b = b.at[0 * Hp:0 * Hp + H].set(bx[0:H] + bh[0:H])
    b = b.at[1 * Hp:1 * Hp + H].set(bx[H:2 * H] + bh[H:2 * H])
    b = b.at[2 * Hp:2 * Hp + H].set(bx[2 * H:3 * H])
    b = b.at[3 * Hp:3 * Hp + H].set(bh[2 * H:3 * H])

    if use_proj:
        wp = params["proj_w"].T.astype(jnp.float32)   # (In, H)
        bp = params["proj_b"].astype(jnp.float32)     # (H,)
        W = W.at[x_rows, 4 * Hp:4 * Hp + H].set(wp)
        b = b.at[4 * Hp:4 * Hp + H].set(bp)

    alpha = params["alpha"].reshape(1, 1).astype(jnp.float32)
    return {
        "W": W.astype(jnp.bfloat16),       # bf16 MXU operand, half VMEM/DMA
        "b": b[None, :],                   # biases stay f32
        "alpha": alpha,
        "In": In, "H": H, "Hp": Hp, "Inp": Inp,
        "use_proj": use_proj,
    }


def gru_learning_alpha_sequence(xs, h0, prep, *, time_block=8,
                                batch_blocks=1, out_dtype=jnp.float32):
    """Run T recurrent steps in a single pallas_call (W resident in VMEM)."""
    T, B, In = xs.shape
    H, Hp, Inp = prep["H"], prep["Hp"], prep["Inp"]
    use_proj = prep["use_proj"]
    assert In == prep["In"]
    if not use_proj:
        assert Inp == Hp  # guaranteed since In == H
    assert B % batch_blocks == 0, "batch must be divisible by batch_blocks"
    Bblk = B // batch_blocks
    assert batch_blocks == 1 or Bblk % 8 == 0, "per-core batch block must be a sublane multiple"

    TB = max(1, min(time_block, T))
    Tp = _round_up(T, TB)
    Ncols = prep["W"].shape[1]
    Kp = Hp + Inp

    # Lane-pad x and h0 once in the wrapper (zero padding).
    x_pad = jnp.zeros((Tp, B, Inp), jnp.float32)
    x_pad = x_pad.at[:T, :, :In].set(xs.astype(jnp.float32))
    h0_pad = jnp.zeros((B, Hp), jnp.float32).at[:, :H].set(h0.astype(jnp.float32))

    # Explicit VMEM budget: single-buffered W + small resident/pipelined blocks.
    out_isz = jnp.dtype(out_dtype).itemsize
    vmem_needed = (
        Kp * Ncols * 2                      # resident bf16 W (single buffer)
        + 2 * Ncols * 4                     # bias (double-buffered, tiny)
        + 2 * Bblk * Hp * 4                 # h0 block
        + 2 * TB * Bblk * Inp * 4           # x blocks (double-buffered)
        + 2 * TB * Bblk * Hp * out_isz      # out blocks (double-buffered)
        + Bblk * Kp * 2 + Bblk * Hp * 4     # xh / h scratch
    )
    vmem_limit = min(int(vmem_needed) + (16 << 20), 64 << 20)  # headroom, capped for v7x

    kernel = functools.partial(
        _gru_seq_kernel, Hp=Hp, Inp=Inp, TB=TB, use_proj=use_proj)

    out = pl.pallas_call(
        kernel,
        out_shape=jax.ShapeDtypeStruct((Tp, B, Hp), out_dtype),
        grid=(batch_blocks, Tp // TB),
        in_specs=[
            pl.BlockSpec((TB, Bblk, Inp), lambda bb, tb: (tb, bb, 0)),   # x block
            pl.BlockSpec((Bblk, Hp), lambda bb, tb: (bb, 0)),            # h0 (resident)
            pl.BlockSpec((1, Ncols), lambda bb, tb: (0, 0)),             # f32 bias (resident)
            pl.BlockSpec(memory_space=pltpu.MemorySpace.SMEM),           # alpha scalar
            pl.BlockSpec(memory_space=pl.ANY),                           # W stays in HBM
        ],
        out_specs=pl.BlockSpec((TB, Bblk, Hp), lambda bb, tb: (tb, bb, 0)),
        scratch_shapes=[
            pltpu.VMEM((Bblk, Kp), jnp.bfloat16),      # [h | x_t] bf16 MXU operand
            pltpu.VMEM((Bblk, Hp), jnp.float32),       # f32 hidden carry
            pltpu.VMEM((Kp, Ncols), jnp.bfloat16),     # single-buffered resident W
            pltpu.SemaphoreType.DMA((1,)),             # weight-copy semaphore
        ],
        compiler_params=pltpu.CompilerParams(
            dimension_semantics=("parallel", "arbitrary"),   # batch-blocks x timestep-blocks
            vmem_limit_bytes=vmem_limit,
        ),
    )(x_pad, h0_pad, prep["b"], prep["alpha"], prep["W"])

    out = out[:T]
    if Hp != H:
        out = out[:, :, :H]
    return out


def gru_learning_alpha_forward(x, hidden, prep, **kwargs):
    """Module forward(): hidden + forward_one_step(x, hidden)."""
    return gru_learning_alpha_sequence(x[None], hidden, prep, **kwargs)[0]


def make_params(key, input_size, hidden_size):
    """Matches reset_parameters(): U(-std, std), std = 1/sqrt(hidden)."""
    std = 1.0 / math.sqrt(hidden_size)
    ks = jax.random.split(key, 9)
    u = lambda k, shape: jax.random.uniform(k, shape, jnp.float32, -std, std)
    return {
        "x2h_w": u(ks[0], (3 * hidden_size, input_size)),
        "x2h_b": u(ks[1], (3 * hidden_size,)),
        "h2h_w": u(ks[2], (3 * hidden_size, hidden_size)),
        "h2h_b": u(ks[3], (3 * hidden_size,)),
        "residual_h_w": u(ks[4], (hidden_size, hidden_size)),  # unused in forward()
        "residual_h_b": u(ks[5], (hidden_size,)),              # unused in forward()
        "proj_w": u(ks[6], (hidden_size, input_size)),
        "proj_b": u(ks[7], (hidden_size,)),
        "alpha": u(ks[8], (1,)),
    }


def _reference_forward_generic(x, hidden, params, mx_dtype):
    """Mirror of the PyTorch module; mx_dtype controls matmul operand dtype."""
    H = hidden.shape[1]
    alpha = params["alpha"][0]

    def mm(a, w):   # a @ w.T with operand cast, f32 accumulation (emulates bf16 MXU)
        return jnp.dot(a.astype(mx_dtype), w.T.astype(mx_dtype),
                       preferred_element_type=jnp.float32)

    gate_x = mm(x, params["x2h_w"]) + params["x2h_b"]
    gate_h = mm(hidden, params["h2h_w"]) + params["h2h_b"]
    i_r, i_i, i_n = gate_x[:, :H], gate_x[:, H:2 * H], gate_x[:, 2 * H:]
    h_r, h_i, h_n = gate_h[:, :H], gate_h[:, H:2 * H], gate_h[:, 2 * H:]
    resetgate = jax.nn.sigmoid(i_r + h_r)
    inputgate = jax.nn.sigmoid(i_i + h_i)
    newgate = jnp.tanh(i_n + resetgate * h_n)
    new_hidden = newgate - hidden
    if x.shape[1] != H:
        new_hidden = (mm(x, params["proj_w"]) + params["proj_b"]) + alpha * new_hidden
    else:
        new_hidden = x + alpha * new_hidden
    return hidden + (1.0 - inputgate) * new_hidden


def reference_forward(x, hidden, params):
    return _reference_forward_generic(x, hidden, params, jnp.float32)


def reference_forward_mx(x, hidden, params):
    return _reference_forward_generic(x, hidden, params, jnp.bfloat16)


def _reference_sequence(xs, h0, params, fwd):
    def step(h, x):
        h_new = fwd(x, h, params)
        return h_new, h_new
    _, outs = lax.scan(step, h0, xs)
    return outs


if __name__ == "__main__":
    key = jax.random.PRNGKey(0)
    k1, k2, k3, k4, k5, k6, k7, k8 = jax.random.split(key, 8)

    # --- Test 1: input_size != hidden_size (proj branch), fused 8-step sequence ---
    batch, input_size, hidden_size, seq = 8, 16, 32, 8
    params = make_params(k1, input_size, hidden_size)
    prep = prepare_params(params, input_size, hidden_size)
    xs = jax.random.normal(k2, (seq, batch, input_size), jnp.float32)
    h0 = jax.random.normal(k3, (batch, hidden_size), jnp.float32)

    outs = jax.block_until_ready(
        gru_learning_alpha_sequence(xs, h0, prep, time_block=4))
    ref_mx = _reference_sequence(xs, h0, params, reference_forward_mx)
    ref_f32 = _reference_sequence(xs, h0, params, reference_forward)
    assert outs.shape == (seq, batch, hidden_size)
    assert jnp.allclose(outs, ref_mx, atol=1e-2, rtol=1e-2), "sequence mismatch vs bf16 reference"
    assert jnp.allclose(outs, ref_f32, atol=0.25), "sequence drift vs exact f32 reference"

    # Single-step module forward() semantics.
    out1 = jax.block_until_ready(gru_learning_alpha_forward(xs[0], h0, prep))
    assert jnp.allclose(out1, reference_forward_mx(xs[0], h0, params),
                        atol=1e-2, rtol=1e-2), "single-step mismatch vs bf16 reference"
    assert jnp.allclose(out1, reference_forward(xs[0], h0, params),
                        atol=0.25), "single-step drift vs exact f32 reference"

    # --- Test 2: input_size == hidden_size (x-residual branch, 4-chunk weight) ---
    size2 = 32
    params2 = make_params(k4, size2, size2)
    prep2 = prepare_params(params2, size2, size2)
    x2 = jax.random.normal(k5, (batch, size2), jnp.float32)
    h2 = jax.random.normal(k6, (batch, size2), jnp.float32)
    out2 = jax.block_until_ready(gru_learning_alpha_forward(x2, h2, prep2))
    assert jnp.allclose(out2, reference_forward_mx(x2, h2, params2),
                        atol=1e-2, rtol=1e-2), "residual-branch mismatch vs bf16 reference"
    assert jnp.allclose(out2, reference_forward(x2, h2, params2),
                        atol=0.25), "residual-branch drift vs exact f32 reference"

    # --- Test 3: batch-block parallel axis (2 blocks, as used on v7x megacore) ---
    batch3 = 16
    xs3 = jax.random.normal(k7, (seq, batch3, input_size), jnp.float32)
    h03 = jax.random.normal(k8, (batch3, hidden_size), jnp.float32)
    outs3 = jax.block_until_ready(
        gru_learning_alpha_sequence(xs3, h03, prep, time_block=4, batch_blocks=2))
    ref3 = _reference_sequence(xs3, h03, params, reference_forward_mx)
    assert jnp.allclose(outs3, ref3, atol=1e-2, rtol=1e-2), "batch-block mismatch vs bf16 reference"

    print("KERNEL_OK")
</pallas_src>

<mosaic_0001>
module attributes {stable_mosaic.version = 11 : i64} {
  func.func @_gru_seq_kernel(%arg0: i32, %arg1: i32, %arg2: memref<4x8x128xf32, #tpu.memory_space<vmem>>, %arg3: memref<8x128xf32, #tpu.memory_space<vmem>>, %arg4: memref<1x640xf32, #tpu.memory_space<vmem>>, %arg5: memref<1x1xf32, #tpu.memory_space<smem>>, %arg6: memref<256x640xbf16, #tpu.memory_space<any>>, %arg7: memref<4x8x128xf32, #tpu.memory_space<vmem>>, %arg8: memref<8x256xbf16, #tpu.memory_space<vmem>>, %arg9: memref<8x128xf32, #tpu.memory_space<vmem>>, %arg10: memref<256x640xbf16, #tpu.memory_space<vmem>>, %arg11: memref<1x!tpu.dma_semaphore, #tpu.memory_space<semaphore_mem>>) attributes {dimension_semantics = [#tpu.dimension_semantics<parallel>, #tpu.dimension_semantics<arbitrary>], iteration_bounds = array<i64: 1, 2>, scalar_prefetch = 0 : i64, scratch_operands = 4 : i64, tpu.core_type = #tpu.core_type<tc>, window_params = [{transform_indices = @transform_0, window_bounds = array<i64: 4, 8, 128>}, {transform_indices = @transform_1, window_bounds = array<i64: 8, 128>}, {pipeline_mode = #tpu.pipeline_mode<synchronous>, transform_indices = @transform_2, window_bounds = array<i64: 1, 640>}, {transform_indices = @transform_3, window_bounds = array<i64: 1, 1>}, {}, {transform_indices = @transform_5, window_bounds = array<i64: 4, 8, 128>}]} {
    %c0_i32 = arith.constant 0 : i32
    %0 = arith.cmpi eq, %arg1, %c0_i32 : i32
    %1 = arith.extui %0 : i1 to i32
    %c0_i32_0 = arith.constant 0 : i32
    %2 = arith.cmpi ne, %1, %c0_i32_0 : i32
    scf.if %2 {
      %c0_i32_105 = arith.constant 0 : i32
      %200 = tpu.memref_slice %arg11[%c0_i32_105] : memref<1x!tpu.dma_semaphore, #tpu.memory_space<semaphore_mem>> -> memref<1x!tpu.dma_semaphore, #tpu.memory_space<semaphore_mem>>
      %201 = tpu.memref_squeeze %200 : memref<1x!tpu.dma_semaphore, #tpu.memory_space<semaphore_mem>> -> memref<!tpu.dma_semaphore, #tpu.memory_space<semaphore_mem>>
      tpu.enqueue_dma source(%arg6 : memref<256x640xbf16, #tpu.memory_space<any>>) target(%arg10 : memref<256x640xbf16, #tpu.memory_space<vmem>>) target_semaphore(%201 : memref<!tpu.dma_semaphore, #tpu.memory_space<semaphore_mem>>)
      %c0_106 = arith.constant 0 : index
      %c0_107 = arith.constant 0 : index
      %202 = vector.load %arg3[%c0_106, %c0_107] : memref<8x128xf32, #tpu.memory_space<vmem>>, vector<8x128xf32>
      %c0_108 = arith.constant 0 : index
      %c0_109 = arith.constant 0 : index
      %203 = vector.load %arg9[%c0_108, %c0_109] : memref<8x128xf32, #tpu.memory_space<vmem>>, vector<8x128xf32>
      tpu.vector_store %arg9[%c0_108, %c0_109], %202 {strides = array<i32>} : memref<8x128xf32, #tpu.memory_space<vmem>>, vector<8x128xf32>,
      %204 = arith.truncf %202 : vector<8x128xf32> to vector<8x128xbf16>
      %c0_110 = arith.constant 0 : index
      %c0_111 = arith.constant 0 : index
      %205 = vector.load %arg8[%c0_110, %c0_111] : memref<8x256xbf16, #tpu.memory_space<vmem>>, vector<8x128xbf16>
      tpu.vector_store %arg8[%c0_110, %c0_111], %204 {strides = array<i32>} : memref<8x256xbf16, #tpu.memory_space<vmem>>, vector<8x128xbf16>,
      %c0_i32_112 = arith.constant 0 : i32
      %206 = tpu.memref_slice %arg11[%c0_i32_112] : memref<1x!tpu.dma_semaphore, #tpu.memory_space<semaphore_mem>> -> memref<1x!tpu.dma_semaphore, #tpu.memory_space<semaphore_mem>>
      %207 = tpu.memref_squeeze %206 : memref<1x!tpu.dma_semaphore, #tpu.memory_space<semaphore_mem>> -> memref<!tpu.dma_semaphore, #tpu.memory_space<semaphore_mem>>
      tpu.wait_dma2 semaphore(%207 : memref<!tpu.dma_semaphore, #tpu.memory_space<semaphore_mem>>) src(%arg6 : memref<256x640xbf16, #tpu.memory_space<any>>) dst(%arg10 : memref<256x640xbf16, #tpu.memory_space<vmem>>)
    } else {
    }
    %c0 = arith.constant 0 : index
    %c0_1 = arith.constant 0 : index
    %3 = memref.load %arg5[%c0, %c0_1] : memref<1x1xf32, #tpu.memory_space<smem>>
    %c0_i32_2 = arith.constant 0 : i32
    %4 = arith.index_cast %c0_i32_2 : i32 to index
    %c0_3 = arith.constant 0 : index
    %c0_4 = arith.constant 0 : index
    %5 = vector.load %arg2[%4, %c0_3, %c0_4] : memref<4x8x128xf32, #tpu.memory_space<vmem>>, vector<1x8x128xf32>
    %6 = vector.shape_cast %5 : vector<1x8x128xf32> to vector<8x128xf32>
    %7 = arith.truncf %6 : vector<8x128xf32> to vector<8x128xbf16>
    %c0_5 = arith.constant 0 : index
    %c128 = arith.constant 128 : index
    %8 = vector.load %arg8[%c0_5, %c128] : memref<8x256xbf16, #tpu.memory_space<vmem>>, vector<8x128xbf16>
    tpu.vector_store %arg8[%c0_5, %c128], %7 {strides = array<i32>} : memref<8x256xbf16, #tpu.memory_space<vmem>>, vector<8x128xbf16>,
    %c0_6 = arith.constant 0 : index
    %c0_7 = arith.constant 0 : index
    %9 = vector.load %arg8[%c0_6, %c0_7] : memref<8x256xbf16, #tpu.memory_space<vmem>>, vector<8x256xbf16>
    %c0_8 = arith.constant 0 : index
    %c0_9 = arith.constant 0 : index
    %10 = vector.load %arg10[%c0_8, %c0_9] : memref<256x640xbf16, #tpu.memory_space<vmem>>, vector<256x640xbf16>
    %cst = arith.constant dense<0.000000e+00> : vector<8x640xf32>
    %11 = tpu.matmul %9, %10, %cst {dimension_numbers = #tpu.dot_dimension_numbers<[1], [0], [0], [1], [0, 0, 1, 1], [], []>} : vector<8x256xbf16>, vector<256x640xbf16>, vector<8x640xf32> -> vector<8x640xf32>
    %c0_10 = arith.constant 0 : index
    %c0_11 = arith.constant 0 : index
    %12 = vector.load %arg4[%c0_10, %c0_11] : memref<1x640xf32, #tpu.memory_space<vmem>>, vector<1x640xf32>
    %13 = vector.broadcast %12 : vector<1x640xf32> to vector<8x640xf32>
    %14 = arith.addf %11, %13 : vector<8x640xf32>
    %c0_12 = arith.constant 0 : index
    %c0_13 = arith.constant 0 : index
    %15 = vector.load %arg9[%c0_12, %c0_13] : memref<8x128xf32, #tpu.memory_space<vmem>>, vector<8x128xf32>
    %16 = vector.extract_strided_slice %14 {offsets = [0, 0], sizes = [8, 128], strides = [1, 1]} : vector<8x640xf32> to vector<8x128xf32>
    %cst_14 = arith.constant 5.000000e-01 : f32
    %17 = vector.broadcast %cst_14 : f32 to vector<8x128xf32>
    %18 = arith.mulf %17, %16 : vector<8x128xf32>
    %19 = math.tanh %18 : vector<8x128xf32>
    %cst_15 = arith.constant 1.000000e+00 : f32
    %20 = vector.broadcast %cst_15 : f32 to vector<8x128xf32>
    %21 = arith.addf %19, %20 : vector<8x128xf32>
    %cst_16 = arith.constant 5.000000e-01 : f32
    %22 = vector.broadcast %cst_16 : f32 to vector<8x128xf32>
    %23 = arith.mulf %22, %21 : vector<8x128xf32>
    %24 = vector.extract_strided_slice %14 {offsets = [0, 128], sizes = [8, 128], strides = [1, 1]} : vector<8x640xf32> to vector<8x128xf32>
    %cst_17 = arith.constant 5.000000e-01 : f32
    %25 = vector.broadcast %cst_17 : f32 to vector<8x128xf32>
    %26 = arith.mulf %25, %24 : vector<8x128xf32>
    %27 = math.tanh %26 : vector<8x128xf32>
    %cst_18 = arith.constant 1.000000e+00 : f32
    %28 = vector.broadcast %cst_18 : f32 to vector<8x128xf32>
    %29 = arith.addf %27, %28 : vector<8x128xf32>
    %cst_19 = arith.constant 5.000000e-01 : f32
    %30 = vector.broadcast %cst_19 : f32 to vector<8x128xf32>
    %31 = arith.mulf %30, %29 : vector<8x128xf32>
    %32 = vector.extract_strided_slice %14 {offsets = [0, 256], sizes = [8, 128], strides = [1, 1]} : vector<8x640xf32> to vector<8x128xf32>
    %33 = vector.extract_strided_slice %14 {offsets = [0, 384], sizes = [8, 128], strides = [1, 1]} : vector<8x640xf32> to vector<8x128xf32>
    %34 = arith.mulf %23, %33 : vector<8x128xf32>
    %35 = arith.addf %32, %34 : vector<8x128xf32>
    %36 = math.tanh %35 : vector<8x128xf32>
    %37 = vector.extract_strided_slice %14 {offsets = [0, 512], sizes = [8, 128], strides = [1, 1]} : vector<8x640xf32> to vector<8x128xf32>
    %cst_20 = arith.constant 1.000000e+00 : f32
    %38 = vector.broadcast %cst_20 : f32 to vector<8x128xf32>
    %39 = arith.subf %38, %31 : vector<8x128xf32>
    %40 = arith.subf %36, %15 : vector<8x128xf32>
    %41 = vector.broadcast %3 : f32 to vector<8x128xf32>
    %42 = arith.mulf %41, %40 : vector<8x128xf32>
    %43 = arith.addf %37, %42 : vector<8x128xf32>
    %44 = arith.mulf %39, %43 : vector<8x128xf32>
    %45 = arith.addf %15, %44 : vector<8x128xf32>
    %c0_21 = arith.constant 0 : index
    %c0_22 = arith.constant 0 : index
    %46 = vector.load %arg9[%c0_21, %c0_22] : memref<8x128xf32, #tpu.memory_space<vmem>>, vector<8x128xf32>
    tpu.vector_store %arg9[%c0_21, %c0_22], %45 {strides = array<i32>} : memref<8x128xf32, #tpu.memory_space<vmem>>, vector<8x128xf32>,
    %47 = arith.truncf %45 : vector<8x128xf32> to vector<8x128xbf16>
    %c0_23 = arith.constant 0 : index
    %c0_24 = arith.constant 0 : index
    %48 = vector.load %arg8[%c0_23, %c0_24] : memref<8x256xbf16, #tpu.memory_space<vmem>>, vector<8x128xbf16>
    tpu.vector_store %arg8[%c0_23, %c0_24], %47 {strides = array<i32>} : memref<8x256xbf16, #tpu.memory_space<vmem>>, vector<8x128xbf16>,
    %49 = arith.index_cast %c0_i32_2 : i32 to index
    %c0_25 = arith.constant 0 : index
    %c0_26 = arith.constant 0 : index
    %50 = vector.load %arg7[%49, %c0_25, %c0_26] : memref<4x8x128xf32, #tpu.memory_space<vmem>>, vector<1x8x128xf32>
    %51 = vector.shape_cast %50 : vector<1x8x128xf32> to vector<8x128xf32>
    %52 = vector.shape_cast %45 : vector<8x128xf32> to vector<1x8x128xf32>
    tpu.vector_store %arg7[%49, %c0_25, %c0_26], %52 {strides = array<i32>} : memref<4x8x128xf32, #tpu.memory_space<vmem>>, vector<1x8x128xf32>,
    %c1_i32 = arith.constant 1 : i32
    %53 = arith.index_cast %c1_i32 : i32 to index
    %c0_27 = arith.constant 0 : index
    %c0_28 = arith.constant 0 : index
    %54 = vector.load %arg2[%53, %c0_27, %c0_28] : memref<4x8x128xf32, #tpu.memory_space<vmem>>, vector<1x8x128xf32>
    %55 = vector.shape_cast %54 : vector<1x8x128xf32> to vector<8x128xf32>
    %56 = arith.truncf %55 : vector<8x128xf32> to vector<8x128xbf16>
    %c0_29 = arith.constant 0 : index
    %c128_30 = arith.constant 128 : index
    %57 = vector.load %arg8[%c0_29, %c128_30] : memref<8x256xbf16, #tpu.memory_space<vmem>>, vector<8x128xbf16>
    tpu.vector_store %arg8[%c0_29, %c128_30], %56 {strides = array<i32>} : memref<8x256xbf16, #tpu.memory_space<vmem>>, vector<8x128xbf16>,
    %c0_31 = arith.constant 0 : index
    %c0_32 = arith.constant 0 : index
    %58 = vector.load %arg8[%c0_31, %c0_32] : memref<8x256xbf16, #tpu.memory_space<vmem>>, vector<8x256xbf16>
    %c0_33 = arith.constant 0 : index
    %c0_34 = arith.constant 0 : index
    %59 = vector.load %arg10[%c0_33, %c0_34] : memref<256x640xbf16, #tpu.memory_space<vmem>>, vector<256x640xbf16>
    %cst_35 = arith.constant dense<0.000000e+00> : vector<8x640xf32>
    %60 = tpu.matmul %58, %59, %cst_35 {dimension_numbers = #tpu.dot_dimension_numbers<[1], [0], [0], [1], [0, 0, 1, 1], [], []>} : vector<8x256xbf16>, vector<256x640xbf16>, vector<8x640xf32> -> vector<8x640xf32>
    %c0_36 = arith.constant 0 : index
    %c0_37 = arith.constant 0 : index
    %61 = vector.load %arg4[%c0_36, %c0_37] : memref<1x640xf32, #tpu.memory_space<vmem>>, vector<1x640xf32>
    %62 = vector.broadcast %61 : vector<1x640xf32> to vector<8x640xf32>
    %63 = arith.addf %60, %62 : vector<8x640xf32>
    %c0_38 = arith.constant 0 : index
    %c0_39 = arith.constant 0 : index
    %64 = vector.load %arg9[%c0_38, %c0_39] : memref<8x128xf32, #tpu.memory_space<vmem>>, vector<8x128xf32>
    %65 = vector.extract_strided_slice %63 {offsets = [0, 0], sizes = [8, 128], strides = [1, 1]} : vector<8x640xf32> to vector<8x128xf32>
    %cst_40 = arith.constant 5.000000e-01 : f32
    %66 = vector.broadcast %cst_40 : f32 to vector<8x128xf32>
    %67 = arith.mulf %66, %65 : vector<8x128xf32>
    %68 = math.tanh %67 : vector<8x128xf32>
    %cst_41 = arith.constant 1.000000e+00 : f32
    %69 = vector.broadcast %cst_41 : f32 to vector<8x128xf32>
    %70 = arith.addf %68, %69 : vector<8x128xf32>
    %cst_42 = arith.constant 5.000000e-01 : f32
    %71 = vector.broadcast %cst_42 : f32 to vector<8x128xf32>
    %72 = arith.mulf %71, %70 : vector<8x128xf32>
    %73 = vector.extract_strided_slice %63 {offsets = [0, 128], sizes = [8, 128], strides = [1, 1]} : vector<8x640xf32> to vector<8x128xf32>
    %cst_43 = arith.constant 5.000000e-01 : f32
    %74 = vector.broadcast %cst_43 : f32 to vector<8x128xf32>
    %75 = arith.mulf %74, %73 : vector<8x128xf32>
    %76 = math.tanh %75 : vector<8x128xf32>
    %cst_44 = arith.constant 1.000000e+00 : f32
    %77 = vector.broadcast %cst_44 : f32 to vector<8x128xf32>
    %78 = arith.addf %76, %77 : vector<8x128xf32>
    %cst_45 = arith.constant 5.000000e-01 : f32
    %79 = vector.broadcast %cst_45 : f32 to vector<8x128xf32>
    %80 = arith.mulf %79, %78 : vector<8x128xf32>
    %81 = vector.extract_strided_slice %63 {offsets = [0, 256], sizes = [8, 128], strides = [1, 1]} : vector<8x640xf32> to vector<8x128xf32>
    %82 = vector.extract_strided_slice %63 {offsets = [0, 384], sizes = [8, 128], strides = [1, 1]} : vector<8x640xf32> to vector<8x128xf32>
    %83 = arith.mulf %72, %82 : vector<8x128xf32>
    %84 = arith.addf %81, %83 : vector<8x128xf32>
    %85 = math.tanh %84 : vector<8x128xf32>
    %86 = vector.extract_strided_slice %63 {offsets = [0, 512], sizes = [8, 128], strides = [1, 1]} : vector<8x640xf32> to vector<8x128xf32>
    %cst_46 = arith.constant 1.000000e+00 : f32
    %87 = vector.broadcast %cst_46 : f32 to vector<8x128xf32>
    %88 = arith.subf %87, %80 : vector<8x128xf32>
    %89 = arith.subf %85, %64 : vector<8x128xf32>
    %90 = vector.broadcast %3 : f32 to vector<8x128xf32>
    %91 = arith.mulf %90, %89 : vector<8x128xf32>
    %92 = arith.addf %86, %91 : vector<8x128xf32>
    %93 = arith.mulf %88, %92 : vector<8x128xf32>
    %94 = arith.addf %64, %93 : vector<8x128xf32>
    %c0_47 = arith.constant 0 : index
    %c0_48 = arith.constant 0 : index
    %95 = vector.load %arg9[%c0_47, %c0_48] : memref<8x128xf32, #tpu.memory_space<vmem>>, vector<8x128xf32>
    tpu.vector_store %arg9[%c0_47, %c0_48], %94 {strides = array<i32>} : memref<8x128xf32, #tpu.memory_space<vmem>>, vector<8x128xf32>,
    %96 = arith.truncf %94 : vector<8x128xf32> to vector<8x128xbf16>
    %c0_49 = arith.constant 0 : index
    %c0_50 = arith.constant 0 : index
    %97 = vector.load %arg8[%c0_49, %c0_50] : memref<8x256xbf16, #tpu.memory_space<vmem>>, vector<8x128xbf16>
    tpu.vector_store %arg8[%c0_49, %c0_50], %96 {strides = array<i32>} : memref<8x256xbf16, #tpu.memory_space<vmem>>, vector<8x128xbf16>,
    %98 = arith.index_cast %c1_i32 : i32 to index
    %c0_51 = arith.constant 0 : index
    %c0_52 = arith.constant 0 : index
    %99 = vector.load %arg7[%98, %c0_51, %c0_52] : memref<4x8x128xf32, #tpu.memory_space<vmem>>, vector<1x8x128xf32>
    %100 = vector.shape_cast %99 : vector<1x8x128xf32> to vector<8x128xf32>
    %101 = vector.shape_cast %94 : vector<8x128xf32> to vector<1x8x128xf32>
    tpu.vector_store %arg7[%98, %c0_51, %c0_52], %101 {strides = array<i32>} : memref<4x8x128xf32, #tpu.memory_space<vmem>>, vector<1x8x128xf32>,
    %c2_i32 = arith.constant 2 : i32
    %102 = arith.index_cast %c2_i32 : i32 to index
    %c0_53 = arith.constant 0 : index
    %c0_54 = arith.constant 0 : index
    %103 = vector.load %arg2[%102, %c0_53, %c0_54] : memref<4x8x128xf32, #tpu.memory_space<vmem>>, vector<1x8x128xf32>
    %104 = vector.shape_cast %103 : vector<1x8x128xf32> to vector<8x128xf32>
    %105 = arith.truncf %104 : vector<8x128xf32> to vector<8x128xbf16>
    %c0_55 = arith.constant 0 : index
    %c128_56 = arith.constant 128 : index
    %106 = vector.load %arg8[%c0_55, %c128_56] : memref<8x256xbf16, #tpu.memory_space<vmem>>, vector<8x128xbf16>
    tpu.vector_store %arg8[%c0_55, %c128_56], %105 {strides = array<i32>} : memref<8x256xbf16, #tpu.memory_space<vmem>>, vector<8x128xbf16>,
    %c0_57 = arith.constant 0 : index
    %c0_58 = arith.constant 0 : index
    %107 = vector.load %arg8[%c0_57, %c0_58] : memref<8x256xbf16, #tpu.memory_space<vmem>>, vector<8x256xbf16>
    %c0_59 = arith.constant 0 : index
    %c0_60 = arith.constant 0 : index
    %108 = vector.load %arg10[%c0_59, %c0_60] : memref<256x640xbf16, #tpu.memory_space<vmem>>, vector<256x640xbf16>
    %cst_61 = arith.constant dense<0.000000e+00> : vector<8x640xf32>
    %109 = tpu.matmul %107, %108, %cst_61 {dimension_numbers = #tpu.dot_dimension_numbers<[1], [0], [0], [1], [0, 0, 1, 1], [], []>} : vector<8x256xbf16>, vector<256x640xbf16>, vector<8x640xf32> -> vector<8x640xf32>
    %c0_62 = arith.constant 0 : index
    %c0_63 = arith.constant 0 : index
    %110 = vector.load %arg4[%c0_62, %c0_63] : memref<1x640xf32, #tpu.memory_space<vmem>>, vector<1x640xf32>
    %111 = vector.broadcast %110 : vector<1x640xf32> to vector<8x640xf32>
    %112 = arith.addf %109, %111 : vector<8x640xf32>
    %c0_64 = arith.constant 0 : index
    %c0_65 = arith.constant 0 : index
    %113 = vector.load %arg9[%c0_64, %c0_65] : memref<8x128xf32, #tpu.memory_space<vmem>>, vector<8x128xf32>
    %114 = vector.extract_strided_slice %112 {offsets = [0, 0], sizes = [8, 128], strides = [1, 1]} : vector<8x640xf32> to vector<8x128xf32>
    %cst_66 = arith.constant 5.000000e-01 : f32
    %115 = vector.broadcast %cst_66 : f32 to vector<8x128xf32>
    %116 = arith.mulf %115, %114 : vector<8x128xf32>
    %117 = math.tanh %116 : vector<8x128xf32>
    %cst_67 = arith.constant 1.000000e+00 : f32
    %118 = vector.broadcast %cst_67 : f32 to vector<8x128xf32>
    %119 = arith.addf %117, %118 : vector<8x128xf32>
    %cst_68 = arith.constant 5.000000e-01 : f32
    %120 = vector.broadcast %cst_68 : f32 to vector<8x128xf32>
    %121 = arith.mulf %120, %119 : vector<8x128xf32>
    %122 = vector.extract_strided_slice %112 {offsets = [0, 128], sizes = [8, 128], strides = [1, 1]} : vector<8x640xf32> to vector<8x128xf32>
    %cst_69 = arith.constant 5.000000e-01 : f32
    %123 = vector.broadcast %cst_69 : f32 to vector<8x128xf32>
    %124 = arith.mulf %123, %122 : vector<8x128xf32>
    %125 = math.tanh %124 : vector<8x128xf32>
    %cst_70 = arith.constant 1.000000e+00 : f32
    %126 = vector.broadcast %cst_70 : f32 to vector<8x128xf32>
    %127 = arith.addf %125, %126 : vector<8x128xf32>
    %cst_71 = arith.constant 5.000000e-01 : f32
    %128 = vector.broadcast %cst_71 : f32 to vector<8x128xf32>
    %129 = arith.mulf %128, %127 : vector<8x128xf32>
    %130 = vector.extract_strided_slice %112 {offsets = [0, 256], sizes = [8, 128], strides = [1, 1]} : vector<8x640xf32> to vector<8x128xf32>
    %131 = vector.extract_strided_slice %112 {offsets = [0, 384], sizes = [8, 128], strides = [1, 1]} : vector<8x640xf32> to vector<8x128xf32>
    %132 = arith.mulf %121, %131 : vector<8x128xf32>
    %133 = arith.addf %130, %132 : vector<8x128xf32>
    %134 = math.tanh %133 : vector<8x128xf32>
    %135 = vector.extract_strided_slice %112 {offsets = [0, 512], sizes = [8, 128], strides = [1, 1]} : vector<8x640xf32> to vector<8x128xf32>
    %cst_72 = arith.constant 1.000000e+00 : f32
    %136 = vector.broadcast %cst_72 : f32 to vector<8x128xf32>
    %137 = arith.subf %136, %129 : vector<8x128xf32>
    %138 = arith.subf %134, %113 : vector<8x128xf32>
    %139 = vector.broadcast %3 : f32 to vector<8x128xf32>
    %140 = arith.mulf %139, %138 : vector<8x128xf32>
    %141 = arith.addf %135, %140 : vector<8x128xf32>
    %142 = arith.mulf %137, %141 : vector<8x128xf32>
    %143 = arith.addf %113, %142 : vector<8x128xf32>
    %c0_73 = arith.constant 0 : index
    %c0_74 = arith.constant 0 : index
    %144 = vector.load %arg9[%c0_73, %c0_74] : memref<8x128xf32, #tpu.memory_space<vmem>>, vector<8x128xf32>
    tpu.vector_store %arg9[%c0_73, %c0_74], %143 {strides = array<i32>} : memref<8x128xf32, #tpu.memory_space<vmem>>, vector<8x128xf32>,
    %145 = arith.truncf %143 : vector<8x128xf32> to vector<8x128xbf16>
    %c0_75 = arith.constant 0 : index
    %c0_76 = arith.constant 0 : index
    %146 = vector.load %arg8[%c0_75, %c0_76] : memref<8x256xbf16, #tpu.memory_space<vmem>>, vector<8x128xbf16>
    tpu.vector_store %arg8[%c0_75, %c0_76], %145 {strides = array<i32>} : memref<8x256xbf16, #tpu.memory_space<vmem>>, vector<8x128xbf16>,
    %147 = arith.index_cast %c2_i32 : i32 to index
    %c0_77 = arith.constant 0 : index
    %c0_78 = arith.constant 0 : index
    %148 = vector.load %arg7[%147, %c0_77, %c0_78] : memref<4x8x128xf32, #tpu.memory_space<vmem>>, vector<1x8x128xf32>
    %149 = vector.shape_cast %148 : vector<1x8x128xf32> to vector<8x128xf32>
    %150 = vector.shape_cast %143 : vector<8x128xf32> to vector<1x8x128xf32>
    tpu.vector_store %arg7[%147, %c0_77, %c0_78], %150 {strides = array<i32>} : memref<4x8x128xf32, #tpu.memory_space<vmem>>, vector<1x8x128xf32>,
    %c3_i32 = arith.constant 3 : i32
    %151 = arith.index_cast %c3_i32 : i32 to index
    %c0_79 = arith.constant 0 : index
    %c0_80 = arith.constant 0 : index
    %152 = vector.load %arg2[%151, %c0_79, %c0_80] : memref<4x8x128xf32, #tpu.memory_space<vmem>>, vector<1x8x128xf32>
    %153 = vector.shape_cast %152 : vector<1x8x128xf32> to vector<8x128xf32>
    %154 = arith.truncf %153 : vector<8x128xf32> to vector<8x128xbf16>
    %c0_81 = arith.constant 0 : index
    %c128_82 = arith.constant 128 : index
    %155 = vector.load %arg8[%c0_81, %c128_82] : memref<8x256xbf16, #tpu.memory_space<vmem>>, vector<8x128xbf16>
    tpu.vector_store %arg8[%c0_81, %c128_82], %154 {strides = array<i32>} : memref<8x256xbf16, #tpu.memory_space<vmem>>, vector<8x128xbf16>,
    %c0_83 = arith.constant 0 : index
    %c0_84 = arith.constant 0 : index
    %156 = vector.load %arg8[%c0_83, %c0_84] : memref<8x256xbf16, #tpu.memory_space<vmem>>, vector<8x256xbf16>
    %c0_85 = arith.constant 0 : index
    %c0_86 = arith.constant 0 : index
    %157 = vector.load %arg10[%c0_85, %c0_86] : memref<256x640xbf16, #tpu.memory_space<vmem>>, vector<256x640xbf16>
    %cst_87 = arith.constant dense<0.000000e+00> : vector<8x640xf32>
    %158 = tpu.matmul %156, %157, %cst_87 {dimension_numbers = #tpu.dot_dimension_numbers<[1], [0], [0], [1], [0, 0, 1, 1], [], []>} : vector<8x256xbf16>, vector<256x640xbf16>, vector<8x640xf32> -> vector<8x640xf32>
    %c0_88 = arith.constant 0 : index
    %c0_89 = arith.constant 0 : index
    %159 = vector.load %arg4[%c0_88, %c0_89] : memref<1x640xf32, #tpu.memory_space<vmem>>, vector<1x640xf32>
    %160 = vector.broadcast %159 : vector<1x640xf32> to vector<8x640xf32>
    %161 = arith.addf %158, %160 : vector<8x640xf32>
    %c0_90 = arith.constant 0 : index
    %c0_91 = arith.constant 0 : index
    %162 = vector.load %arg9[%c0_90, %c0_91] : memref<8x128xf32, #tpu.memory_space<vmem>>, vector<8x128xf32>
    %163 = vector.extract_strided_slice %161 {offsets = [0, 0], sizes = [8, 128], strides = [1, 1]} : vector<8x640xf32> to vector<8x128xf32>
    %cst_92 = arith.constant 5.000000e-01 : f32
    %164 = vector.broadcast %cst_92 : f32 to vector<8x128xf32>
    %165 = arith.mulf %164, %163 : vector<8x128xf32>
    %166 = math.tanh %165 : vector<8x128xf32>
    %cst_93 = arith.constant 1.000000e+00 : f32
    %167 = vector.broadcast %cst_93 : f32 to vector<8x128xf32>
    %168 = arith.addf %166, %167 : vector<8x128xf32>
    %cst_94 = arith.constant 5.000000e-01 : f32
    %169 = vector.broadcast %cst_94 : f32 to vector<8x128xf32>
    %170 = arith.mulf %169, %168 : vector<8x128xf32>
    %171 = vector.extract_strided_slice %161 {offsets = [0, 128], sizes = [8, 128], strides = [1, 1]} : vector<8x640xf32> to vector<8x128xf32>
    %cst_95 = arith.constant 5.000000e-01 : f32
    %172 = vector.broadcast %cst_95 : f32 to vector<8x128xf32>
    %173 = arith.mulf %172, %171 : vector<8x128xf32>
    %174 = math.tanh %173 : vector<8x128xf32>
    %cst_96 = arith.constant 1.000000e+00 : f32
    %175 = vector.broadcast %cst_96 : f32 to vector<8x128xf32>
    %176 = arith.addf %174, %175 : vector<8x128xf32>
    %cst_97 = arith.constant 5.000000e-01 : f32
    %177 = vector.broadcast %cst_97 : f32 to vector<8x128xf32>
    %178 = arith.mulf %177, %176 : vector<8x128xf32>
    %179 = vector.extract_strided_slice %161 {offsets = [0, 256], sizes = [8, 128], strides = [1, 1]} : vector<8x640xf32> to vector<8x128xf32>
    %180 = vector.extract_strided_slice %161 {offsets = [0, 384], sizes = [8, 128], strides = [1, 1]} : vector<8x640xf32> to vector<8x128xf32>
    %181 = arith.mulf %170, %180 : vector<8x128xf32>
    %182 = arith.addf %179, %181 : vector<8x128xf32>
    %183 = math.tanh %182 : vector<8x128xf32>
    %184 = vector.extract_strided_slice %161 {offsets = [0, 512], sizes = [8, 128], strides = [1, 1]} : vector<8x640xf32> to vector<8x128xf32>
    %cst_98 = arith.constant 1.000000e+00 : f32
    %185 = vector.broadcast %cst_98 : f32 to vector<8x128xf32>
    %186 = arith.subf %185, %178 : vector<8x128xf32>
    %187 = arith.subf %183, %162 : vector<8x128xf32>
    %188 = vector.broadcast %3 : f32 to vector<8x128xf32>
    %189 = arith.mulf %188, %187 : vector<8x128xf32>
    %190 = arith.addf %184, %189 : vector<8x128xf32>
    %191 = arith.mulf %186, %190 : vector<8x128xf32>
    %192 = arith.addf %162, %191 : vector<8x128xf32>
    %c0_99 = arith.constant 0 : index
    %c0_100 = arith.constant 0 : index
    %193 = vector.load %arg9[%c0_99, %c0_100] : memref<8x128xf32, #tpu.memory_space<vmem>>, vector<8x128xf32>
    tpu.vector_store %arg9[%c0_99, %c0_100], %192 {strides = array<i32>} : memref<8x128xf32, #tpu.memory_space<vmem>>, vector<8x128xf32>,
    %194 = arith.truncf %192 : vector<8x128xf32> to vector<8x128xbf16>
    %c0_101 = arith.constant 0 : index
    %c0_102 = arith.constant 0 : index
    %195 = vector.load %arg8[%c0_101, %c0_102] : memref<8x256xbf16, #tpu.memory_space<vmem>>, vector<8x128xbf16>
    tpu.vector_store %arg8[%c0_101, %c0_102], %194 {strides = array<i32>} : memref<8x256xbf16, #tpu.memory_space<vmem>>, vector<8x128xbf16>,
    %196 = arith.index_cast %c3_i32 : i32 to index
    %c0_103 = arith.constant 0 : index
    %c0_104 = arith.constant 0 : index
    %197 = vector.load %arg7[%196, %c0_103, %c0_104] : memref<4x8x128xf32, #tpu.memory_space<vmem>>, vector<1x8x128xf32>
    %198 = vector.shape_cast %197 : vector<1x8x128xf32> to vector<8x128xf32>
    %199 = vector.shape_cast %192 : vector<8x128xf32> to vector<1x8x128xf32>
    tpu.vector_store %arg7[%196, %c0_103, %c0_104], %199 {strides = array<i32>} : memref<4x8x128xf32, #tpu.memory_space<vmem>>, vector<1x8x128xf32>,
    %c4_i32 = arith.constant 4 : i32
    return
  }
  func.func @transform_0(%arg0: i32, %arg1: i32) -> (i32, i32, i32) {
    %c0_i32 = arith.constant 0 : i32
    %c0_i32_0 = arith.constant 0 : i32
    return %arg1, %arg0, %c0_i32 : i32, i32, i32
  }
  func.func @transform_1(%arg0: i32, %arg1: i32) -> (i32, i32) {
    %c0_i32 = arith.constant 0 : i32
    %c0_i32_0 = arith.constant 0 : i32
    return %arg0, %c0_i32 : i32, i32
  }
  func.func @transform_2(%arg0: i32, %arg1: i32) -> (i32, i32) {
    %c0_i32 = arith.constant 0 : i32
    %c0_i32_0 = arith.constant 0 : i32
    %c0_i32_1 = arith.constant 0 : i32
    return %c0_i32, %c0_i32_0 : i32, i32
  }
  func.func @transform_3(%arg0: i32, %arg1: i32) -> (i32, i32) {
    %c0_i32 = arith.constant 0 : i32
    %c0_i32_0 = arith.constant 0 : i32
    %c0_i32_1 = arith.constant 0 : i32
    return %c0_i32, %c0_i32_0 : i32, i32
  }
  func.func @transform_5(%arg0: i32, %arg1: i32) -> (i32, i32, i32) {
    %c0_i32 = arith.constant 0 : i32
    %c0_i32_0 = arith.constant 0 : i32
    return %arg1, %arg0, %c0_i32 : i32, i32, i32
  }
}

</mosaic_0001>

<bundles_post_ra>
// kernel: tpu_custom_call.1
= control target key start
LH: loop header
LB: loop body
LE: loop exit
PB: predicated region body
PF: predicated region fallthrough
CT: control target
= control target key end

     0   :  { %s5469_s0 = inlined_call_operand.hbm [shape: f32[8,8,128], index: 0, kind: input, shape index: {}]   ;;  %s5470_s1 = inlined_call_operand.hbm [shape: f32[8,128], index: 1, kind: input, shape index: {}]   ;;  %s5471_s2 = inlined_call_operand.hbm [shape: f32[1,640], index: 2, kind: input, shape index: {}]   ;;  %s5472_s3 = inlined_call_operand.<no memory space> [shape: f32[1,1], index: 3, kind: input, shape index: {}]   ;;  %s5473_s4 = inlined_call_operand.hbm [shape: bf16[256,640], index: 4, kind: input, shape index: {}]   ;;  %s5474_s5 = inlined_call_operand.hbm [shape: f32[8,8,128], index: 5, kind: output, shape index: {}]  }
   0x1   :  { %5475 = sst [smem:[#allocation22_spill]] %s5470_s1 }
   0x2   :  { %5476 = sst [smem:[#allocation23_spill]] %s5471_s2 }
   0x3   :  { %10 = sst [smem:[#allocation6]] %s5472_s3 }
   0x4   :  { %11 = vsyncpa [#allocation8], 0 }
   0x5   :  { %13 = vsyncpa [#allocation8 + $0x1], 0 }
   0x6   :  { %14 = vsyncpa [#allocation11], 0 }
   0x7   :  { %15 = vsyncpa [#allocation9], 0 }
   0x8   :  { %17 = vsyncpa [#allocation9 + $0x1], 0  ;;  %s5185_s20 = smov 0   ;;  %s5187_s21 = smov 0  }
   0x9   :  { %s5189_s22 = smov 0   ;;  %s5191_s23 = smov 0  }
   0xa   :  { %s5193_s24 = smov 0   ;;  %s5195_s25 = smov 0  }
   0xb LB: > { %s3185_s3 = sadd.s32 4294967295, %s5143_s25   ;;  %s3186_s26 = sadd.s32 4294967294, %s5143_s25   ;;  %s5143_s25 = sphi %s5195_s25, %s23_s25   ;;  %s5139_s24 = sphi %s5193_s24, %s5490_s24   ;;  %s5135_s23 = sphi %s5191_s23, %s5489_s23   ;;  %s5131_s22 = sphi %s5189_s22, %s5488_s22   ;;  %s5127_s21 = sphi %s5187_s21, %s5487_s21   ;;  %s5123_s20 = sphi %s5185_s20, %s5486_s20  }
   0xc   : > { %s44_s27 = sadd.s32 1, %s5131_s22  ;;  %p51_p0 = scmp.ne.s32.totalorder %s5131_s22, %s5127_s21 }
   0xd   : > { %p52_p1 = scmp.eq.s32.totalorder %s5143_s25, 0  ;;  %p57_p2 = scmp.ne.s32.totalorder %s5127_s21, %s5123_s20 }
   0xe   : > { %p5223_p3 = scmp.eq.s32.totalorder %s3185_s3, 0  ;;  %p151_p4 = scmp.eq.s32.totalorder %s3185_s3, 1 }
   0xf   : > { %p5227_p5 = por %p52_p1, %p51_p0  ;;  %p157_p6 = scmp.eq.s32.totalorder %s3186_s26, 1 }
  0x10   : > { %p5233_p7 = por %p5223_p3, %p57_p2  ;;  %p5237_p8 = por %p151_p4, %p51_p0 }
  0x11   : > { %p5241_p9 = por %p157_p6, %p57_p2  ;;  %p3187_p10 = scmp.ge.s32.totalorder %s5143_s25, 1 }
  0x12   : > { %p164_p11 = scmp.lt.s32.totalorder %s5143_s25, 3  ;;  %s5482_s1 = sld [smem:[#allocation22_spill]] }
  0x13   : > { %s5145_s12 = smov [#allocation10]   ;;  %p3190_p13 = scmp.ge.s32.totalorder %s5143_s25, 2 }
  0x14   : > { %p5250_p12 = pnand %p3187_p10, %p164_p11  ;;  %s180_s13 = sshll.u32 %s5145_s12, 4  ;;  %s181_s13 = int_to_ptr.vmem [resolvable:$true] %s180_s13 }
  0x15   : > { %p4858_p1 = scmp.lt.s32.totalorder %s5143_s25, 2  ;;  %s5484_s2 = sld [smem:[#allocation23_spill]] }
  0x16   : > { %p4841_p0 = pneg %p5250_p12  ;;  %s5146_s18 = smov [#allocation12]  }
  0x17   : > { %p5265_p4 = pnand %p4858_p1, %p5227_p5  ;;  %s192_s19 = sshll.u32 %s5146_s18, 4  ;;  %s193_s19 = int_to_ptr.vmem [resolvable:$true] %s192_s19 }
  0x18   : > { %s178_s10 = sshll.u32 %s5482_s1, 4  ;;  %p4842_p2 = pnand %p4841_p0, %p5223_p3  ;;  %s179_s10 = int_to_ptr.hbm [resolvable:$true] %s178_s10 }
  0x19   : > { %s206_s3 = sand.u32 1, %s5131_s22   ;;  %s32_s26 = sadd.s32 1, %s5139_s24 }
  0x1a   : > { %4844 = dma.hbm_to_vmem [thread:$0]  (!%p4842_p2), %s179_s10, 128, %s181_s13, [#allocation11]  }
  0x1b   : > { %s190_s16 = sshll.u32 %s5484_s2, 4  ;;  %s3191_s8 = sshll.u32 %s206_s3, 5  ;;  %s191_s16 = int_to_ptr.hbm [resolvable:$true] %s190_s16 }
  0x1c   : > { %4847 = dma.hbm_to_vmem [thread:$0]  (!%p4842_p2), %s191_s16, 80, %s193_s19, [#allocation11]  }
  0x1d   : > { %p33_p6 = scmp.ge.s32.totalorder %s32_s26, 2  ;;  %s4492_s9 = sshll.u32 %s5139_s24, 5 }
  0x1e   : > { %s210_s12 = scalar_lea.vmem [#allocation7], %s3191_s8  ;;  %s216_s18 = scalar_lea.hbm %s5469_s0, %s4492_s9 }
  0x1f   : > { %s219_s29 = sshll.u32 %s210_s12, 4  ;;  %s5492_s26 = smov (%p33_p6, %s32_s26), 0  ;;  %s220_s29 = int_to_ptr.vmem [resolvable:$true] %s219_s29 }
  0x20   : > { %s39_s10 = ssub.s32 %s5139_s24, %s5492_s26  ;;  %s217_s13 = sshll.u32 %s216_s18, 4  ;;  %s218_s13 = int_to_ptr.hbm [resolvable:$true] %s217_s13 }
  0x21   : > { %p42_p5 = scmp.eq.s32.totalorder %s39_s10, 0  ;;  %s207_s19 = scalar_lea.sflag [#allocation8], %s206_s3 }
  0x22   : > { %s5147_s1 = smov 128   ;;  %s5148_s2 = smov 8  }
  0x23   : > { %s5282_s16 = scalar_select %p42_p5, %s5131_s22, %s44_s27  }
  0x24   : > { %4851 = dma.hbm_to_vmem [thread:$0]  (!%p5265_p4), %s218_s13, 512, %s220_s29, %s207_s19, %s5147_s1, %s5147_s1, %s5148_s2  }
  0x25   : > { %231 = sbr.rel (%p5250_p12) target bundleno = 840 (0x348), region = 36  ;;  %s5289_s8 = sand.u32 (!%p5250_p12), 1, %s5127_s21  }
  0x26   : > { %s3195_s9 = sshll.u32 (!%p5250_p12), %s5289_s8, 5  ;;  %s234_s12 = scalar_lea.sflag (!%p5250_p12), [#allocation8], %s5289_s8 }
  0x27   : > { %s5293_s14 = scalar_lea.vmem (!%p5250_p12), [#allocation7], %s3195_s9 }
  0x2a   : > { %5108 = dma.done.wait (%p5233_p7), %s234_s12, 512  }
  0x2b   : > { %5110 = vsyncadd (%p5233_p7), %s234_s12, 4294966784 }
  0x2c   : > { %5112 = dma.done.wait (%p5223_p3), [#allocation11], 208  }
  0x2d   : > { %5114 = vsyncadd (%p5223_p3), [#allocation11], 4294967088  ;;  %s5303_s1 = scalar_lea.vmem [#allocation13], %s3195_s9  ;;  %p3199_p10 = scmp.ne.s32.totalorder %s5135_s23, 0 }
  0x2e   : > { %s286_s11 = sshll.u32 (!%p3199_p10), %s5473_s4, 4  ;;  %s5149_s17 = smov (!%p3199_p10), [#allocation4]   ;;  %s287_s11 = int_to_ptr.hbm [resolvable:$true] %s286_s11 }
  0x2f   : > { %278 = sbr.rel (%p3199_p10) target bundleno = 58 (0x3a), region = 52  ;;  %s288_s30 = sshll.u32 (!%p3199_p10), %s5149_s17, 4  ;;  %s289_s30 = int_to_ptr.vmem [resolvable:$true] %s288_s30 }
  0x30   : > { %291 = dma.hbm_to_vmem [thread:$0]  (!%p3199_p10), %s287_s11, 10240, %s289_s30, [#allocation5] }
  0x34   : > { %v292_v0 = vld [vmem:[#allocation10] sm:$0xff] }
  0x35   : > { %293 = vst [vmem:[#allocation3] sm:$0xff] %v292_v0  ;;  %v294_v1 = vpack.c.bf16 %v292_v0, %v292_v0 }
  0x37   : > { %295 = vst [vmem:[#allocation2] sm:$0xf] %v294_v1 }
  0x38   : > { %5115 = dma.done.wait [#allocation5], 10240 }
  0x39   : > { %5116 = vsyncadd [#allocation5], 4294957056 }
  0x3a PF: > { %v3342_v2 = vld [vmem:[#allocation4 + $0x118] sm:$0xf]  ;;  %v4530_v3 = vld [vmem:[#allocation4 + $0x128] sm:$0xf0]  ;;  %v4528_v7 = vld [vmem:[#allocation4 + $0x11c] sm:$0xf] }
  0x3b   : > { %v3502_v4 = vld [vmem:[#allocation4 + $0x258] sm:$0xf]  ;;  %v3343_v5 = vor.u32 %v4530_v3, %v3342_v2  ;;  %v4570_v6 = vld [vmem:[#allocation4 + $0x268] sm:$0xf0]  ;;  %v3344_v8 = vld [vmem:[#allocation4 + $0x12c] sm:$0xf0] }
  0x3c   : > { %v3503_v9 = vor.u32 %v4570_v6, %v3502_v4  ;;  %v3347_v10 = vor.u32 %v4528_v7, %v3344_v8  ;;  %v4568_v11 = vld [vmem:[#allocation4 + $0x25c] sm:$0xf]  ;;  %v3504_v12 = vld [vmem:[#allocation4 + $0x26c] sm:$0xf0]  ;;  %v4525_v15 = vld [vmem:[#allocation4 + $0x100] sm:$0xf0] }
  0x3d   : > { %v3322_v13 = vld [vmem:[#allocation4 + $0xf0] sm:$0xf]  ;;  %836 = vmatpush.bf16.msra.mxu0 %v3343_v5  ;;  %v3507_v14 = vor.u32 %v4568_v11, %v3504_v12  ;;  %v4565_v17 = vld [vmem:[#allocation4 + $0x240] sm:$0xf0]  ;;  %v4523_v20 = vld [vmem:[#allocation4 + $0xf4] sm:$0xf] }
  0x3e   : > { %v3482_v16 = vld [vmem:[#allocation4 + $0x230] sm:$0xf]  ;;  %849 = vmatpush.bf16.msra.mxu1 %v3503_v9  ;;  %862 = vmatpush.bf16.msra.mxu2 %v3347_v10  ;;  %v3323_v18 = vor.u32 %v4525_v15, %v3322_v13  ;;  %v3324_v21 = vld [vmem:[#allocation4 + $0x104] sm:$0xf0]  ;;  %v4563_v22 = vld [vmem:[#allocation4 + $0x234] sm:$0xf] }
  0x3f   : > { %v3483_v19 = vor.u32 %v4565_v17, %v3482_v16  ;;  %875 = vmatpush.bf16.msra.mxu3 %v3507_v14  ;;  %v3327_v23 = vor.u32 %v4523_v20, %v3324_v21  ;;  %v3484_v24 = vld [vmem:[#allocation4 + $0x244] sm:$0xf0]  ;;  %v4520_v26 = vld [vmem:[#allocation4 + $0xd8] sm:$0xf0]  ;;  %v4518_v30 = vld [vmem:[#allocation4 + $0xcc] sm:$0xf] }
  0x40   : > { %v3302_v25 = vld [vmem:[#allocation4 + $0xc8] sm:$0xf]  ;;  %v3487_v27 = vor.u32 %v4563_v22, %v3484_v24  ;;  %v4560_v29 = vld [vmem:[#allocation4 + $0x218] sm:$0xf0]  ;;  %v3304_v32 = vld [vmem:[#allocation4 + $0xdc] sm:$0xf0] }
  0x41   : > { %v3462_v28 = vld [vmem:[#allocation4 + $0x208] sm:$0xf]  ;;  %837 = vmatpush.bf16.msra.mxu0 %v3323_v18  ;;  %v3303_v31 = vor.u32 %v4520_v26, %v3302_v25  ;;  %v4558_v33 = vld [vmem:[#allocation4 + $0x20c] sm:$0xf]  ;;  %v3464_v34 = vld [vmem:[#allocation4 + $0x21c] sm:$0xf0]  ;;  %v3307_v36 = vor.u32 %v4518_v30, %v3304_v32 }
  0x42   : > { %850 = vmatpush.bf16.msra.mxu1 %v3483_v19  ;;  %863 = vmatpush.bf16.msra.mxu2 %v3327_v23  ;;  %v3463_v35 = vor.u32 %v4560_v29, %v3462_v28  ;;  %v3282_v37 = vld [vmem:[#allocation4 + $0xa0] sm:$0xf]  ;;  %v4515_v38 = vld [vmem:[#allocation4 + $0xb0] sm:$0xf0]  ;;  %v3467_v40 = vor.u32 %v4558_v33, %v3464_v34  ;;  %v4513_v42 = vld [vmem:[#allocation4 + $0xa4] sm:$0xf] }
  0x43   : > { %v3442_v39 = vld [vmem:[#allocation4 + $0x1e0] sm:$0xf]  ;;  %876 = vmatpush.bf16.msra.mxu3 %v3487_v27  ;;  %v4555_v41 = vld [vmem:[#allocation4 + $0x1f0] sm:$0xf0]  ;;  %v3284_v43 = vld [vmem:[#allocation4 + $0xb4] sm:$0xf0]  ;;  %v3283_v46 = vor.u32 %v4515_v38, %v3282_v37 }
  0x44   : > { %v4553_v44 = vld [vmem:[#allocation4 + $0x1e4] sm:$0xf]  ;;  %v3444_v45 = vld [vmem:[#allocation4 + $0x1f4] sm:$0xf0]  ;;  %v3443_v47 = vor.u32 %v4555_v41, %v3442_v39  ;;  %v3287_v48 = vor.u32 %v4513_v42, %v3284_v43  ;;  %v4510_v50 = vld [vmem:[#allocation4 + $0x88] sm:$0xf0] }
  0x45   : > { %838 = vmatpush.bf16.msra.mxu0 %v3303_v31  ;;  %v3262_v49 = vld [vmem:[#allocation4 + $0x78] sm:$0xf]  ;;  %v3447_v52 = vor.u32 %v4553_v44, %v3444_v45  ;;  %v4550_v53 = vld [vmem:[#allocation4 + $0x1c8] sm:$0xf0]  ;;  %v4508_v54 = vld [vmem:[#allocation4 + $0x7c] sm:$0xf] }
  0x46   : > { %851 = vmatpush.bf16.msra.mxu1 %v3463_v35  ;;  %864 = vmatpush.bf16.msra.mxu2 %v3307_v36  ;;  %v3422_v51 = vld [vmem:[#allocation4 + $0x1b8] sm:$0xf]  ;;  %v3264_v55 = vld [vmem:[#allocation4 + $0x8c] sm:$0xf0]  ;;  %v4548_v56 = vld [vmem:[#allocation4 + $0x1bc] sm:$0xf]  ;;  %v3263_v58 = vor.u32 %v4510_v50, %v3262_v49 }
  0x47   : > { %877 = vmatpush.bf16.msra.mxu3 %v3467_v40  ;;  %v3424_v57 = vld [vmem:[#allocation4 + $0x1cc] sm:$0xf0]  ;;  %v3423_v59 = vor.u32 %v4550_v53, %v3422_v51  ;;  %v3267_v60 = vor.u32 %v4508_v54, %v3264_v55  ;;  %v4505_v62 = vld [vmem:[#allocation4 + $0x60] sm:$0xf0]  ;;  %v4503_v2 = vld [vmem:[#allocation4 + $0x54] sm:$0xf] }
  0x48   : > { %v3242_v61 = vld [vmem:[#allocation4 + $0x50] sm:$0xf]  ;;  %v3427_v0 = vor.u32 %v4548_v56, %v3424_v57  ;;  %v4545_v1 = vld [vmem:[#allocation4 + $0x1a0] sm:$0xf0]  ;;  %v3244_v3 = vld [vmem:[#allocation4 + $0x64] sm:$0xf0] }
  0x49   : > { %839 = vmatpush.bf16.msra.mxu0 %v3283_v46  ;;  %v3402_v63 = vld [vmem:[#allocation4 + $0x190] sm:$0xf]  ;;  %v4543_v4 = vld [vmem:[#allocation4 + $0x194] sm:$0xf]  ;;  %v3404_v5 = vld [vmem:[#allocation4 + $0x1a4] sm:$0xf0]  ;;  %v3243_v6 = vor.u32 %v4505_v62, %v3242_v61  ;;  %v3247_v8 = vor.u32 %v4503_v2, %v3244_v3 }
  0x4a   : > { %852 = vmatpush.bf16.msra.mxu1 %v3443_v47  ;;  %865 = vmatpush.bf16.msra.mxu2 %v3287_v48  ;;  %v3403_v7 = vor.u32 %v4545_v1, %v3402_v63  ;;  %v3222_v9 = vld [vmem:[#allocation4 + $0x28] sm:$0xf]  ;;  %v4500_v10 = vld [vmem:[#allocation4 + $0x38] sm:$0xf0]  ;;  %v3407_v12 = vor.u32 %v4543_v4, %v3404_v5  ;;  %v4498_v14 = vld [vmem:[#allocation4 + $0x2c] sm:$0xf] }
  0x4b   : > { %878 = vmatpush.bf16.msra.mxu3 %v3447_v52  ;;  %v3382_v11 = vld [vmem:[#allocation4 + $0x168] sm:$0xf]  ;;  %v4540_v13 = vld [vmem:[#allocation4 + $0x178] sm:$0xf0]  ;;  %v3224_v15 = vld [vmem:[#allocation4 + $0x3c] sm:$0xf0]  ;;  %v3223_v18 = vor.u32 %v4500_v10, %v3222_v9 }
  0x4c   : > { %v4538_v16 = vld [vmem:[#allocation4 + $0x16c] sm:$0xf]  ;;  %v3384_v17 = vld [vmem:[#allocation4 + $0x17c] sm:$0xf0]  ;;  %v4495_v20 = vld [vmem:[#allocation4 + $0x10] sm:$0xf0]  ;;  %v3383_v21 = vor.u32 %v4540_v13, %v3382_v11  ;;  %v3227_v22 = vor.u32 %v4498_v14, %v3224_v15 }
  0x4d   : > { %840 = vmatpush.bf16.msra.mxu0 %v3263_v58  ;;  %v3202_v19 = vld [vmem:[#allocation4] sm:$0xf]  ;;  %v4535_v24 = vld [vmem:[#allocation4 + $0x150] sm:$0xf0]  ;;  %v4493_v25 = vld [vmem:[#allocation4 + $0x4] sm:$0xf]  ;;  %v3387_v26 = vor.u32 %v4538_v16, %v3384_v17 }
  0x4e   : > { %853 = vmatpush.bf16.msra.mxu1 %v3423_v59  ;;  %866 = vmatpush.bf16.msra.mxu2 %v3267_v60  ;;  %v3362_v23 = vld [vmem:[#allocation4 + $0x140] sm:$0xf]  ;;  %v3204_v27 = vld [vmem:[#allocation4 + $0x14] sm:$0xf0]  ;;  %v4531_v29 = vld [vmem:[#allocation4 + $0x130] sm:$0xf0]  ;;  %v3203_v33 = vor.u32 %v4495_v20, %v3202_v19 }
  0x4f   : > { %879 = vmatpush.bf16.msra.mxu3 %v3427_v0  ;;  %v3350_v28 = vld [vmem:[#allocation4 + $0x120] sm:$0xf]  ;;  %v4571_v31 = vld [vmem:[#allocation4 + $0x270] sm:$0xf0]  ;;  %v4529_v32 = vld [vmem:[#allocation4 + $0x124] sm:$0xf]  ;;  %v3363_v37 = vor.u32 %v4535_v24, %v3362_v23  ;;  %v3207_v38 = vor.u32 %v4493_v25, %v3204_v27 }
  0x50   : > { %v3510_v30 = vld [vmem:[#allocation4 + $0x260] sm:$0xf]  ;;  %v3352_v34 = vld [vmem:[#allocation4 + $0x134] sm:$0xf0]  ;;  %v4533_v35 = vld [vmem:[#allocation4 + $0x144] sm:$0xf]  ;;  %v3351_v41 = vor.u32 %v4531_v29, %v3350_v28 }
  0x51   : > { %841 = vmatpush.bf16.msra.mxu0 %v3243_v6  ;;  %v3364_v36 = vld [vmem:[#allocation4 + $0x154] sm:$0xf0]  ;;  %v4569_v39 = vld [vmem:[#allocation4 + $0x264] sm:$0xf]  ;;  %v3511_v42 = vor.u32 %v4571_v31, %v3510_v30  ;;  %v3355_v44 = vor.u32 %v4529_v32, %v3352_v34  ;;  %v4526_v46 = vld [vmem:[#allocation4 + $0x108] sm:$0xf0] }
  0x52   : > { %854 = vmatpush.bf16.msra.mxu1 %v3403_v7  ;;  %867 = vmatpush.bf16.msra.mxu2 %v3247_v8  ;;  %v3512_v40 = vld [vmem:[#allocation4 + $0x274] sm:$0xf0]  ;;  %v3367_v45 = vor.u32 %v4533_v35, %v3364_v36  ;;  %v4566_v48 = vld [vmem:[#allocation4 + $0x248] sm:$0xf0]  ;;  %v4524_v50 = vld [vmem:[#allocation4 + $0xfc] sm:$0xf] }
  0x53   : > { %880 = vmatpush.bf16.msra.mxu3 %v3407_v12  ;;  %v3330_v43 = vld [vmem:[#allocation4 + $0xf8] sm:$0xf]  ;;  %v3515_v49 = vor.u32 %v4569_v39, %v3512_v40  ;;  %v3332_v51 = vld [vmem:[#allocation4 + $0x10c] sm:$0xf0]  ;;  %v4564_v52 = vld [vmem:[#allocation4 + $0x23c] sm:$0xf] }
  0x54   : > { %v3490_v47 = vld [vmem:[#allocation4 + $0x238] sm:$0xf]  ;;  %v3492_v53 = vld [vmem:[#allocation4 + $0x24c] sm:$0xf0]  ;;  %v301_v54 = vld [vmem:[%s5293_s14] sm:$0xff]  ;;  %v3331_v55 = vor.u32 %v4526_v46, %v3330_v43  ;;  %v3335_v59 = vor.u32 %v4524_v50, %v3332_v51  ;;  %s300_s28 = sld [smem:[#allocation6]] }
  0x55   : > { %842 = vmatpush.bf16.msra.mxu0 %v3223_v18  ;;  %v3491_v56 = vor.u32 %v4566_v48, %v3490_v47  ;;  %v3310_v57 = vld [vmem:[#allocation4 + $0xd0] sm:$0xf]  ;;  %v302_v58 = vpack.c.bf16 %v301_v54, %v301_v54  ;;  %v4521_v60 = vld [vmem:[#allocation4 + $0xe0] sm:$0xf0]  ;;  %v3495_v63 = vor.u32 %v4564_v52, %v3492_v53  ;;  %v4519_v0 = vld [vmem:[#allocation4 + $0xd4] sm:$0xf] }
  0x56   : > { %855 = vmatpush.bf16.msra.mxu1 %v3383_v21  ;;  %868 = vmatpush.bf16.msra.mxu2 %v3227_v22  ;;  %v3470_v61 = vld [vmem:[#allocation4 + $0x210] sm:$0xf]  ;;  %v4561_v62 = vld [vmem:[#allocation4 + $0x220] sm:$0xf0]  ;;  %v3312_v1 = vld [vmem:[#allocation4 + $0xe4] sm:$0xf0]  ;;  %v3311_v4 = vor.u32 %v4521_v60, %v3310_v57 }
  0x57   : > { %881 = vmatpush.bf16.msra.mxu3 %v3387_v26  ;;  %303 = vst [vmem:[#allocation2 + $0x4] sm:$0xf] %v302_v58  ;;  %v4559_v2 = vld [vmem:[#allocation4 + $0x214] sm:$0xf]  ;;  %v3472_v3 = vld [vmem:[#allocation4 + $0x224] sm:$0xf0]  ;;  %v3471_v5 = vor.u32 %v4561_v62, %v3470_v61  ;;  %v3315_v7 = vor.u32 %v4519_v0, %v3312_v1 }
  0x58   : > { %v3290_v6 = vld [vmem:[#allocation4 + $0xa8] sm:$0xf]  ;;  %v4516_v8 = vld [vmem:[#allocation4 + $0xb8] sm:$0xf0]  ;;  %v3475_v11 = vor.u32 %v4559_v2, %v3472_v3  ;;  %v4514_v12 = vld [vmem:[#allocation4 + $0xac] sm:$0xf] }
  0x59   : > { %843 = vmatpush.bf16.msra.mxu0 %v3203_v33  ;;  %v3450_v9 = vld [vmem:[#allocation4 + $0x1e8] sm:$0xf]  ;;  %v4556_v10 = vld [vmem:[#allocation4 + $0x1f8] sm:$0xf0]  ;;  %v3292_v13 = vld [vmem:[#allocation4 + $0xbc] sm:$0xf0]  ;;  %v3291_v16 = vor.u32 %v4516_v8, %v3290_v6 }
  0x5a   : > { %856 = vmatpush.bf16.msra.mxu1 %v3363_v37  ;;  %869 = vmatpush.bf16.msra.mxu2 %v3207_v38  ;;  %v4554_v14 = vld [vmem:[#allocation4 + $0x1ec] sm:$0xf]  ;;  %v3452_v15 = vld [vmem:[#allocation4 + $0x1fc] sm:$0xf0]  ;;  %v3451_v17 = vor.u32 %v4556_v10, %v3450_v9  ;;  %v4511_v19 = vld [vmem:[#allocation4 + $0x90] sm:$0xf0]  ;;  %v3295_v20 = vor.u32 %v4514_v12, %v3292_v13 }
  0x5b   : > { %882 = vmatpush.bf16.msra.mxu3 %v3367_v45  ;;  %v3270_v18 = vld [vmem:[#allocation4 + $0x80] sm:$0xf]  ;;  %v4551_v23 = vld [vmem:[#allocation4 + $0x1d0] sm:$0xf0]  ;;  %v3455_v24 = vor.u32 %v4554_v14, %v3452_v15  ;;  %v4509_v26 = vld [vmem:[#allocation4 + $0x84] sm:$0xf] }
  0x5c   : > { %v3430_v22 = vld [vmem:[#allocation4 + $0x1c0] sm:$0xf]  ;;  %v3272_v27 = vld [vmem:[#allocation4 + $0x94] sm:$0xf0]  ;;  %v3271_v29 = vor.u32 %v4511_v19, %v3270_v18  ;;  %v4549_v30 = vld [vmem:[#allocation4 + $0x1c4] sm:$0xf] }
  0x5d   : > { %888 = vmatpush.bf16.msrb.mxu0 %v3351_v41  ;;  %v3432_v31 = vld [vmem:[#allocation4 + $0x1d4] sm:$0xf0]  ;;  %v3431_v33 = vor.u32 %v4551_v23, %v3430_v22  ;;  %v3275_v36 = vor.u32 %v4509_v26, %v3272_v27  ;;  %v4506_v37 = vld [vmem:[#allocation4 + $0x68] sm:$0xf0]  ;;  %v4504_v41 = vld [vmem:[#allocation4 + $0x5c] sm:$0xf] }
  0x5e   : > { %901 = vmatpush.bf16.msrb.mxu1 %v3511_v42  ;;  %914 = vmatpush.bf16.msrb.mxu2 %v3355_v44  ;;  %v304_v21 = vld [vmem:[#allocation2] sm:$0xff]  ;;  %v3250_v35 = vld [vmem:[#allocation4 + $0x58] sm:$0xf]  ;;  %v4546_v39 = vld [vmem:[#allocation4 + $0x1a8] sm:$0xf0]  ;;  %v3435_v40 = vor.u32 %v4549_v30, %v3432_v31  ;;  %s4813_s3 = sshll.u32 %s5135_s23, 5 }
  0x5f   : > { %927 = vmatpush.bf16.msrb.mxu3 %v3515_v49  ;;  %v414_v25 = vunpack.c.l.b16 %v304_v21  ;;  %v415_v28 = vunpack.c.h.b16 %v304_v21  ;;  %v3410_v38 = vld [vmem:[#allocation4 + $0x198] sm:$0xf]  ;;  %v3252_v42 = vld [vmem:[#allocation4 + $0x6c] sm:$0xf0]  ;;  %v4544_v43 = vld [vmem:[#allocation4 + $0x19c] sm:$0xf]  ;;  %v3251_v45 = vor.u32 %v4506_v37, %v3250_v35  ;;  %s3069_s18 = scalar_lea.hbm %s5474_s5, %s4813_s3 }
  0x60   : > { %v3412_v44 = vld [vmem:[#allocation4 + $0x1ac] sm:$0xf0]  ;;  %v3411_v46 = vor.u32 %v4546_v39, %v3410_v38  ;;  %v3255_v48 = vor.u32 %v4504_v41, %v3252_v42  ;;  %v4501_v49 = vld [vmem:[#allocation4 + $0x40] sm:$0xf0]  ;;  %v4499_v53 = vld [vmem:[#allocation4 + $0x34] sm:$0xf] }
  0x61   : > { %889 = vmatpush.bf16.msrb.mxu0 %v3331_v55  ;;  %v5310_v32 = vpack.c.b16 %v414_v25, %v414_v25  ;;  %v5312_v34 = vpack.c.b16 %v415_v28, %v415_v28  ;;  %v3230_v47 = vld [vmem:[#allocation4 + $0x30] sm:$0xf]  ;;  %v4541_v51 = vld [vmem:[#allocation4 + $0x180] sm:$0xf0]  ;;  %v3415_v52 = vor.u32 %v4544_v43, %v3412_v44  ;;  %v3232_v54 = vld [vmem:[#allocation4 + $0x44] sm:$0xf0] }
  0x62   : > { %902 = vmatpush.bf16.msrb.mxu1 %v3491_v56  ;;  %915 = vmatpush.bf16.msrb.mxu2 %v3335_v59  ;;  %v3390_v50 = vld [vmem:[#allocation4 + $0x170] sm:$0xf]  ;;  %v4539_v55 = vld [vmem:[#allocation4 + $0x174] sm:$0xf]  ;;  %v3392_v56 = vld [vmem:[#allocation4 + $0x184] sm:$0xf0]  ;;  %v3231_v57 = vor.u32 %v4501_v49, %v3230_v47  ;;  %v3235_v62 = vor.u32 %v4499_v53, %v3232_v54 }
  0x63   : > { %928 = vmatpush.bf16.msrb.mxu3 %v3495_v63  ;;  %870 = vmatmul.bf16.vlgmr.msra.gmra.mxu2 %v5310_v32  ;;  %v3391_v58 = vor.u32 %v4541_v51, %v3390_v50  ;;  %v3210_v59 = vld [vmem:[#allocation4 + $0x8] sm:$0xf]  ;;  %v4496_v60 = vld [vmem:[#allocation4 + $0x18] sm:$0xf0]  ;;  %v4494_v0 = vld [vmem:[#allocation4 + $0xc] sm:$0xf]  ;;  %v3395_v2 = vor.u32 %v4539_v55, %v3392_v56 }
  0x64   : > { %883 = vmatmul.bf16.vlgmr.msra.gmra.mxu3 %v5312_v34  ;;  %844 = vmatmul.bf16.vlgmr.msra.gmra.mxu0 %v5310_v32  ;;  %v3370_v61 = vld [vmem:[#allocation4 + $0x148] sm:$0xf]  ;;  %v4536_v63 = vld [vmem:[#allocation4 + $0x158] sm:$0xf0]  ;;  %v3212_v1 = vld [vmem:[#allocation4 + $0x1c] sm:$0xf0]  ;;  %v3211_v9 = vor.u32 %v4496_v60, %v3210_v59 }
  0x65   : > { %890 = vmatpush.bf16.msrb.mxu0 %v3311_v4  ;;  %857 = vmatmul.bf16.vlgmr.msra.gmra.mxu1 %v5312_v34  ;;  %v3358_v3 = vld [vmem:[#allocation4 + $0x128] sm:$0xf]  ;;  %v4532_v4 = vld [vmem:[#allocation4 + $0x138] sm:$0xf0]  ;;  %v3372_v8 = vld [vmem:[#allocation4 + $0x15c] sm:$0xf0]  ;;  %v3371_v10 = vor.u32 %v4536_v63, %v3370_v61 }
  0x66   : > { %903 = vmatpush.bf16.msrb.mxu1 %v3471_v5  ;;  %916 = vmatpush.bf16.msrb.mxu2 %v3315_v7  ;;  %v3518_v5 = vld [vmem:[#allocation4 + $0x268] sm:$0xf]  ;;  %v4572_v6 = vld [vmem:[#allocation4 + $0x278] sm:$0xf0]  ;;  %v4534_v7 = vld [vmem:[#allocation4 + $0x14c] sm:$0xf]  ;;  %v3359_v12 = vor.u32 %v4532_v4, %v3358_v3 }
  0x67   : > { %929 = vmatpush.bf16.msrb.mxu3 %v3475_v11  ;;  %v3215_v11 = vor.u32 %v4494_v0, %v3212_v1  ;;  %v3519_v13 = vor.u32 %v4572_v6, %v3518_v5  ;;  %v3375_v14 = vor.u32 %v4534_v7, %v3372_v8  ;;  %v3338_v15 = vld [vmem:[#allocation4 + $0x100] sm:$0xf]  ;;  %v4567_v18 = vld [vmem:[#allocation4 + $0x250] sm:$0xf0]  ;;  %v3318_v21 = vld [vmem:[#allocation4 + $0xd8] sm:$0xf] }
  0x68   : > { %v4522_v22 = vld [vmem:[#allocation4 + $0xe8] sm:$0xf0]  ;;  %v3478_v23 = vld [vmem:[#allocation4 + $0x218] sm:$0xf]  ;;  %v3298_v27 = vld [vmem:[#allocation4 + $0xb0] sm:$0xf] }
  0x69   : > { %891 = vmatpush.bf16.msrb.mxu0 %v3291_v16  ;;  %v4527_v16 = vld [vmem:[#allocation4 + $0x110] sm:$0xf0]  ;;  %v3319_v25 = vor.u32 %v4522_v22, %v3318_v21  ;;  %v4517_v28 = vld [vmem:[#allocation4 + $0xc0] sm:$0xf0]  ;;  %v3278_v35 = vld [vmem:[#allocation4 + $0x88] sm:$0xf] }
  0x6a   : > { %904 = vmatpush.bf16.msrb.mxu1 %v3451_v17  ;;  %917 = vmatpush.bf16.msrb.mxu2 %v3295_v20  ;;  %v3498_v17 = vld [vmem:[#allocation4 + $0x240] sm:$0xf]  ;;  %v3339_v19 = vor.u32 %v4527_v16, %v3338_v15  ;;  %v4557_v30 = vld [vmem:[#allocation4 + $0x200] sm:$0xf0]  ;;  %v3299_v31 = vor.u32 %v4517_v28, %v3298_v27  ;;  %v3438_v37 = vld [vmem:[#allocation4 + $0x1c8] sm:$0xf] }
  0x6b   : > { %930 = vmatpush.bf16.msrb.mxu3 %v3455_v24  ;;  %v3499_v20 = vor.u32 %v4567_v18, %v3498_v17  ;;  %v4562_v24 = vld [vmem:[#allocation4 + $0x228] sm:$0xf0]  ;;  %v4552_v38 = vld [vmem:[#allocation4 + $0x1d8] sm:$0xf0]  ;;  %v3258_v41 = vld [vmem:[#allocation4 + $0x60] sm:$0xf] }
  0x6c   : > { %v3479_v26 = vor.u32 %v4562_v24, %v3478_v23  ;;  %v4507_v42 = vld [vmem:[#allocation4 + $0x70] sm:$0xf0]  ;;  %v3418_v43 = vld [vmem:[#allocation4 + $0x1a0] sm:$0xf]  ;;  %v3238_v47 = vld [vmem:[#allocation4 + $0x38] sm:$0xf] }
  0x6d   : > { %892 = vmatpush.bf16.msrb.mxu0 %v3271_v29  ;;  %v3458_v29 = vld [vmem:[#allocation4 + $0x1f0] sm:$0xf]  ;;  %v4547_v44 = vld [vmem:[#allocation4 + $0x1b0] sm:$0xf0]  ;;  %v3398_v49 = vld [vmem:[#allocation4 + $0x178] sm:$0xf] }
  0x6e   : > { %905 = vmatpush.bf16.msrb.mxu1 %v3431_v33  ;;  %918 = vmatpush.bf16.msrb.mxu2 %v3275_v36  ;;  %v3459_v33 = vor.u32 %v4557_v30, %v3458_v29  ;;  %v4512_v36 = vld [vmem:[#allocation4 + $0x98] sm:$0xf0]  ;;  %v4542_v50 = vld [vmem:[#allocation4 + $0x188] sm:$0xf0]  ;;  %v3218_v53 = vld [vmem:[#allocation4 + $0x10] sm:$0xf] }
  0x6f   : > { %931 = vmatpush.bf16.msrb.mxu3 %v3435_v40  ;;  %v3279_v39 = vor.u32 %v4512_v36, %v3278_v35  ;;  %v3439_v40 = vor.u32 %v4552_v38, %v3438_v37  ;;  %v4497_v54 = vld [vmem:[#allocation4 + $0x20] sm:$0xf0]  ;;  %v3378_v55 = vld [vmem:[#allocation4 + $0x150] sm:$0xf]  ;;  %v3663_v59 = vld [vmem:[#allocation4 + $0x118] sm:$0xf] }
  0x70   : > { %v4537_v56 = vld [vmem:[#allocation4 + $0x160] sm:$0xf0]  ;;  %v4610_v60 = vld [vmem:[#allocation4 + $0x128] sm:$0xf0]  ;;  %v3823_v61 = vld [vmem:[#allocation4 + $0x258] sm:$0xf] }
  0x71   : > { %893 = vmatpush.bf16.msrb.mxu0 %v3251_v45  ;;  %v3259_v45 = vor.u32 %v4507_v42, %v3258_v41  ;;  %v4650_v63 = vld [vmem:[#allocation4 + $0x268] sm:$0xf0]  ;;  %v3643_v1 = vld [vmem:[#allocation4 + $0xf0] sm:$0xf]  ;;  %v4645_v5 = vld [vmem:[#allocation4 + $0x240] sm:$0xf0] }
  0x72   : > { %906 = vmatpush.bf16.msrb.mxu1 %v3411_v46  ;;  %919 = vmatpush.bf16.msrb.mxu2 %v3255_v48  ;;  %v3419_v46 = vor.u32 %v4547_v44, %v3418_v43  ;;  %v4502_v48 = vld [vmem:[#allocation4 + $0x48] sm:$0xf0]  ;;  %v3824_v0 = vor.u32 %v4650_v63, %v3823_v61  ;;  %v3803_v3 = vld [vmem:[#allocation4 + $0x230] sm:$0xf]  ;;  %v3623_v7 = vld [vmem:[#allocation4 + $0xc8] sm:$0xf] }
  0x73   : > { %932 = vmatpush.bf16.msrb.mxu3 %v3415_v52  ;;  %v3239_v51 = vor.u32 %v4502_v48, %v3238_v47  ;;  %v3399_v52 = vor.u32 %v4542_v50, %v3398_v49  ;;  %v3804_v6 = vor.u32 %v4645_v5, %v3803_v3  ;;  %v3783_v8 = vld [vmem:[#allocation4 + $0x208] sm:$0xf]  ;;  %v4635_v15 = vld [vmem:[#allocation4 + $0x1f0] sm:$0xf0]  ;;  %v4608_v16 = vld [vmem:[#allocation4 + $0x11c] sm:$0xf] }
  0x74   : > { %v3665_v17 = vld [vmem:[#allocation4 + $0x12c] sm:$0xf0]  ;;  %v3583_v23 = vld [vmem:[#allocation4 + $0x78] sm:$0xf]  ;;  %v4590_v24 = vld [vmem:[#allocation4 + $0x88] sm:$0xf0] }
  0x75   : > { %894 = vmatpush.bf16.msrb.mxu0 %v3231_v57  ;;  %v3219_v57 = vor.u32 %v4497_v54, %v3218_v53  ;;  %v3825_v21 = vld [vmem:[#allocation4 + $0x26c] sm:$0xf0]  ;;  %v4630_v27 = vld [vmem:[#allocation4 + $0x1c8] sm:$0xf0]  ;;  %v4603_v28 = vld [vmem:[#allocation4 + $0xf4] sm:$0xf] }
  0x76   : > { %907 = vmatpush.bf16.msrb.mxu1 %v3391_v58  ;;  %920 = vmatpush.bf16.msrb.mxu2 %v3235_v62  ;;  %v3379_v58 = vor.u32 %v4537_v56, %v3378_v55  ;;  %v3664_v62 = vor.u32 %v4610_v60, %v3663_v59  ;;  %v3645_v29 = vld [vmem:[#allocation4 + $0x104] sm:$0xf0]  ;;  %v3563_v37 = vld [vmem:[#allocation4 + $0x50] sm:$0xf]  ;;  %v4585_v38 = vld [vmem:[#allocation4 + $0x60] sm:$0xf0] }
  0x77   : > { %933 = vmatpush.bf16.msrb.mxu3 %v3395_v2  ;;  %v4605_v2 = vld [vmem:[#allocation4 + $0x100] sm:$0xf0]  ;;  %v3805_v35 = vld [vmem:[#allocation4 + $0x244] sm:$0xf0]  ;;  %v4598_v42 = vld [vmem:[#allocation4 + $0xcc] sm:$0xf] }
  0x78   : > { %v3644_v4 = vor.u32 %v4605_v2, %v3643_v1  ;;  %v4625_v41 = vld [vmem:[#allocation4 + $0x1a0] sm:$0xf0]  ;;  %v3625_v44 = vld [vmem:[#allocation4 + $0xdc] sm:$0xf0]  ;;  %v5324_v47 = vld [vmem:[#allocation12] sm:$0x1f] }
  0x79   : > { %895 = vmatpush.bf16.msrb.mxu0 %v3211_v9  ;;  %v4640_v9 = vld [vmem:[#allocation4 + $0x218] sm:$0xf0]  ;;  %v3628_v48 = vor.u32 %v4598_v42, %v3625_v44  ;;  %v3543_v50 = vld [vmem:[#allocation4 + $0x28] sm:$0xf]  ;;  %v4593_v55 = vld [vmem:[#allocation4 + $0xa4] sm:$0xf] }
  0x7a   : > { %908 = vmatpush.bf16.msrb.mxu1 %v3371_v10  ;;  %921 = vmatpush.bf16.msrb.mxu2 %v3215_v11  ;;  %v3784_v10 = vor.u32 %v4640_v9, %v3783_v8  ;;  %v3603_v11 = vld [vmem:[#allocation4 + $0xa0] sm:$0xf]  ;;  %v4620_v54 = vld [vmem:[#allocation4 + $0x178] sm:$0xf0]  ;;  %v3605_v56 = vld [vmem:[#allocation4 + $0xb4] sm:$0xf0] }
  0x7b   : > { %934 = vmatpush.bf16.msrb.mxu3 %v3375_v14  ;;  %v3608_v59 = vor.u32 %v4593_v55, %v3605_v56  ;;  %v4633_v60 = vld [vmem:[#allocation4 + $0x1e4] sm:$0xf]  ;;  %v3765_v61 = vld [vmem:[#allocation4 + $0x1f4] sm:$0xf0]  ;;  %v3523_v63 = vld [vmem:[#allocation4] sm:$0xf] }
  0x7c   : > { %896 = vmatmul.bf16.vlgmr.msrb.gmra.mxu0 %v5310_v32  ;;  %v3683_v1 = vld [vmem:[#allocation4 + $0x140] sm:$0xf]  ;;  %v4588_v5 = vld [vmem:[#allocation4 + $0x7c] sm:$0xf]  ;;  %v3745_v9 = vld [vmem:[#allocation4 + $0x1cc] sm:$0xf0] }
  0x7d   : > { %940 = vmatpush.bf16.msra.mxu0 %v3359_v12  ;;  %922 = vmatmul.bf16.vlgmr.msrb.gmra.mxu2 %v5310_v32  ;;  %v4595_v12 = vld [vmem:[#allocation4 + $0xb0] sm:$0xf0]  ;;  %v3631_v42 = vld [vmem:[#allocation4 + $0xd0] sm:$0xf]  ;;  %v3685_v56 = vld [vmem:[#allocation4 + $0x154] sm:$0xf0] }
  0x7e   : > { %953 = vmatpush.bf16.msra.mxu1 %v3519_v13  ;;  %935 = vmatmul.bf16.vlgmr.msrb.gmra.mxu3 %v5312_v34  ;;  %v3763_v13 = vld [vmem:[#allocation4 + $0x1e0] sm:$0xf]  ;;  %v3604_v14 = vor.u32 %v4595_v12, %v3603_v11  ;;  %s3070_s10 = sshll.u32 %s5303_s1, 4  ;;  %s3072_s13 = sshll.u32 %s3069_s18, 4  ;;  %s3071_s10 = int_to_ptr.vmem [resolvable:$true] %s3070_s10  ;;  %s3073_s13 = int_to_ptr.hbm [resolvable:$true] %s3072_s13 }
  0x7f   : > { %909 = vmatmul.bf16.vlgmr.msrb.gmra.mxu1 %v5312_v34  ;;  %1525 = vmatpush.bf16.msra.mxu2 %v3664_v62  ;;  %v3764_v18 = vor.u32 %v4635_v15, %v3763_v13  ;;  %v3768_v62 = vor.u32 %v4633_v60, %v3765_v61  ;;  %v4611_v13 = vld [vmem:[#allocation4 + $0x130] sm:$0xf0]  ;;  %s3057_s23 = scalar_lea.sflag [#allocation9], %s5289_s8  ;;  %s5069_s19 = sshra.s32 %s3073_s13, 4  ;;  %s5070_s19 = int_to_ptr.hbm [resolvable:$true] %s5069_s19 }
  0x80   : > { %1538 = vmatpush.bf16.msra.mxu3 %v3824_v0  ;;  %v4575_v0 = vld [vmem:[#allocation4 + $0x10] sm:$0xf0]  ;;  %s5071_s9 = scalar_lea.hbm %s5070_s19, 32  ;;  %s5075_s2 = scalar_lea.hbm %s5474_s5, 64 }
  0x81   : > { %941 = vmatpush.bf16.msra.mxu0 %v3339_v19  ;;  %v3668_v19 = vor.u32 %v4608_v16, %v3665_v17  ;;  %v3524_v3 = vor.u32 %v4575_v0, %v3523_v63  ;;  %v4651_v15 = vld [vmem:[#allocation4 + $0x270] sm:$0xf0]  ;;  %v3771_v63 = vld [vmem:[#allocation4 + $0x1e8] sm:$0xf]  ;;  %v4636_v0 = vld [vmem:[#allocation4 + $0x1f8] sm:$0xf0]  ;;  %p5072_p3 = scmp.ne.s32.totalorder %s5070_s19, %s5071_s9  ;;  %p5076_p12 = scmp.lt.s32.totalorder %s5070_s19, %s5474_s5 }
  0x82   : > { %954 = vmatpush.bf16.msra.mxu1 %v3499_v20  ;;  %v4648_v20 = vld [vmem:[#allocation4 + $0x25c] sm:$0xf]  ;;  %p5077_p0 = scmp.lt.s32.totalorder %s5075_s2, %s5071_s9 }
  0x83   : > { %1526 = vmatpush.bf16.msra.mxu2 %v3644_v4  ;;  %v3828_v22 = vor.u32 %v4648_v20, %v3825_v21  ;;  %v4615_v4 = vld [vmem:[#allocation4 + $0x150] sm:$0xf0]  ;;  %v3565_v20 = vld [vmem:[#allocation4 + $0x64] sm:$0xf0]  ;;  %p5073_p7 = pnand %p5072_p3, %p5237_p8 }
  0x84   : > { %1539 = vmatpush.bf16.msra.mxu3 %v3804_v6  ;;  %v3585_v6 = vld [vmem:[#allocation4 + $0x8c] sm:$0xf0]  ;;  %v4623_v21 = vld [vmem:[#allocation4 + $0x194] sm:$0xf]  ;;  %p5078_p1 = por %p5077_p0, %p5076_p12 }
  0x85   : > { %942 = vmatpush.bf16.msra.mxu0 %v3319_v25  ;;  %v3743_v25 = vld [vmem:[#allocation4 + $0x1b8] sm:$0xf]  ;;  %v3588_v8 = vor.u32 %v4588_v5, %v3585_v6  ;;  %v405_v6 = vperm.slane %v5324_v47, 2  ;;  %p5074_p11 = pneg %p5073_p7 }
  0x86   : > { %955 = vmatpush.bf16.msra.mxu1 %v3479_v26  ;;  %v3584_v26 = vor.u32 %v4590_v24, %v3583_v23  ;;  %v3744_v30 = vor.u32 %v4630_v27, %v3743_v25  ;;  %v3725_v25 = vld [vmem:[#allocation4 + $0x1a4] sm:$0xf0] }
  0x87   : > { %p5079_p2 = pnand %p5078_p1, %p5074_p11 }
  0x88   : > { %1540 = vmatpush.bf16.msra.mxu3 %v3784_v10  ;;  %v3671_v10 = vld [vmem:[#allocation4 + $0x120] sm:$0xf] }
  0x89   : > { %943 = vmatpush.bf16.msra.mxu0 %v3299_v31  ;;  %v3648_v31 = vor.u32 %v4603_v28, %v3645_v29  ;;  %v3672_v17 = vor.u32 %v4611_v13, %v3671_v10  ;;  %v3728_v28 = vor.u32 %v4623_v21, %v3725_v25  ;;  %v4606_v29 = vld [vmem:[#allocation4 + $0x108] sm:$0xf0]  ;;  %v4591_v10 = vld [vmem:[#allocation4 + $0x90] sm:$0xf0] }
  0x8a   : > { %956 = vmatpush.bf16.msra.mxu1 %v3459_v33  ;;  %v4643_v33 = vld [vmem:[#allocation4 + $0x234] sm:$0xf] }
  0x8b   : > { %v3808_v36 = vor.u32 %v4643_v33, %v3805_v35 }
  0x8c   : > { %1541 = vmatpush.bf16.msra.mxu3 %v3764_v18 }
  0x8d   : > { %944 = vmatpush.bf16.msra.mxu0 %v3279_v39  ;;  %v3564_v39 = vor.u32 %v4585_v38, %v3563_v37  ;;  %v4578_v37 = vld [vmem:[#allocation4 + $0x2c] sm:$0xf]  ;;  %v3545_v38 = vld [vmem:[#allocation4 + $0x3c] sm:$0xf0] }
  0x8e   : > { %957 = vmatpush.bf16.msra.mxu1 %v3439_v40  ;;  %v3723_v40 = vld [vmem:[#allocation4 + $0x190] sm:$0xf] }
  0x8f   : > { %v3724_v43 = vor.u32 %v4625_v41, %v3723_v40  ;;  %v3548_v40 = vor.u32 %v4578_v37, %v3545_v38  ;;  %v3705_v41 = vld [vmem:[#allocation4 + $0x17c] sm:$0xf0]  ;;  %v3793_v37 = vld [vmem:[#allocation4 + $0x224] sm:$0xf0] }
  0x90   : > { %1542 = vmatpush.bf16.msra.mxu3 %v3744_v30  ;;  %v3811_v30 = vld [vmem:[#allocation4 + $0x238] sm:$0xf] }
  0x91   : > { %945 = vmatpush.bf16.msra.mxu0 %v3259_v45  ;;  %v4638_v45 = vld [vmem:[#allocation4 + $0x20c] sm:$0xf] }
  0x92   : > { %958 = vmatpush.bf16.msra.mxu1 %v3419_v46  ;;  %v3785_v46 = vld [vmem:[#allocation4 + $0x21c] sm:$0xf0] }
  0x93   : > { %v3788_v49 = vor.u32 %v4638_v45, %v3785_v46 }
  0x94   : > { %1543 = vmatpush.bf16.msra.mxu3 %v3724_v43  ;;  %v4601_v43 = vld [vmem:[#allocation4 + $0xe0] sm:$0xf0] }
  0x95   : > { %946 = vmatpush.bf16.msra.mxu0 %v3239_v51  ;;  %v4580_v51 = vld [vmem:[#allocation4 + $0x38] sm:$0xf0]  ;;  %v3632_v46 = vor.u32 %v4601_v43, %v3631_v42 }
  0x96   : > { %959 = vmatpush.bf16.msra.mxu1 %v3399_v52  ;;  %v3703_v52 = vld [vmem:[#allocation4 + $0x168] sm:$0xf]  ;;  %v3544_v53 = vor.u32 %v4580_v51, %v3543_v50  ;;  %v4573_v51 = vld [vmem:[#allocation4 + $0x4] sm:$0xf] }
  0x99   : > { %947 = vmatpush.bf16.msra.mxu0 %v3219_v57  ;;  %v403_v57 = vperm.slane %v5324_v47, 0 }
  0x9a   : > { %960 = vmatpush.bf16.msra.mxu1 %v3379_v58  ;;  %v3704_v58 = vor.u32 %v4620_v54, %v3703_v52  ;;  %v3525_v52 = vld [vmem:[#allocation4 + $0x14] sm:$0xf0] }
  0x9b   : > { %v3528_v55 = vor.u32 %v4573_v51, %v3525_v52  ;;  %v3711_v51 = vld [vmem:[#allocation4 + $0x170] sm:$0xf]  ;;  %v4621_v52 = vld [vmem:[#allocation4 + $0x180] sm:$0xf0] }
  0x9c   : > { %948 = vmatmul.bf16.vlgmr.msra.gmra.mxu0 %v5310_v32  ;;  %v4600_v32 = vld [vmem:[#allocation4 + $0xd8] sm:$0xf0]  ;;  %1544 = vmatpush.bf16.msra.mxu3 %v3704_v58 }
  0x9d   : > { %961 = vmatmul.bf16.vlgmr.msra.gmra.mxu1 %v5312_v34  ;;  %v3624_v34 = vor.u32 %v4600_v32, %v3623_v7  ;;  %1551 = vmatpush.bf16.msrb.mxu0 %v3668_v19  ;;  %v3684_v32 = vor.u32 %v4615_v4, %v3683_v1  ;;  %v4583_v19 = vld [vmem:[#allocation4 + $0x54] sm:$0xf]  ;;  %v4596_v58 = vld [vmem:[#allocation4 + $0xb8] sm:$0xf0]  ;;  %v3772_v1 = vor.u32 %v4636_v0, %v3771_v63  ;;  %v4649_v4 = vld [vmem:[#allocation4 + $0x264] sm:$0xf] }
  0x9e   : > { %1564 = vmatpush.bf16.msrb.mxu1 %v3828_v22  ;;  %v3568_v24 = vor.u32 %v4583_v19, %v3565_v20  ;;  %v406_v20 = vperm.slane %v5324_v47, 3  ;;  %v3531_v0 = vld [vmem:[#allocation4 + $0x8] sm:$0xf] }
  0x9f   : > { %1527 = vmatpush.bf16.msra.mxu2 %v3624_v34  ;;  %v4628_v34 = vld [vmem:[#allocation4 + $0x1bc] sm:$0xf] }
  0xa0   : > { %v3748_v12 = vor.u32 %v4628_v34, %v3745_v9  ;;  %1545 = vmatpush.bf16.msra.mxu3 %v3684_v32  ;;  %v3591_v34 = vld [vmem:[#allocation4 + $0x80] sm:$0xf] }
  0xa1   : > { %1552 = vmatpush.bf16.msrb.mxu0 %v3648_v31  ;;  %v4646_v31 = vld [vmem:[#allocation4 + $0x248] sm:$0xf0]  ;;  %v3592_v13 = vor.u32 %v4591_v10, %v3591_v34  ;;  %v3753_v34 = vld [vmem:[#allocation4 + $0x1d4] sm:$0xf0] }
  0xa2   : > { %1565 = vmatpush.bf16.msrb.mxu1 %v3808_v36  ;;  %v3812_v35 = vor.u32 %v4646_v31, %v3811_v30  ;;  %v4626_v31 = vld [vmem:[#allocation4 + $0x1a8] sm:$0xf0] }
  0xa3   : > { %1528 = vmatpush.bf16.msra.mxu2 %v3604_v14  ;;  %v3831_v14 = vld [vmem:[#allocation4 + $0x260] sm:$0xf] }
  0xa4   : > { %v3832_v18 = vor.u32 %v4651_v15, %v3831_v14  ;;  %v4604_v15 = vld [vmem:[#allocation4 + $0xfc] sm:$0xf] }
  0xa5   : > { %1553 = vmatpush.bf16.msrb.mxu0 %v3628_v48  ;;  %v3791_v48 = vld [vmem:[#allocation4 + $0x210] sm:$0xf] }
  0xa6   : > { %1566 = vmatpush.bf16.msrb.mxu1 %v3788_v49  ;;  %1590 = vmatpush.bf16.msrb.mxu3 %v3832_v18  ;;  %v4641_v49 = vld [vmem:[#allocation4 + $0x220] sm:$0xf0] }
  0xa7   : > { %1529 = vmatpush.bf16.msra.mxu2 %v3584_v26  ;;  %v3651_v26 = vld [vmem:[#allocation4 + $0xf8] sm:$0xf]  ;;  %v3792_v50 = vor.u32 %v4641_v49, %v3791_v48  ;;  %v3551_v48 = vld [vmem:[#allocation4 + $0x30] sm:$0xf]  ;;  %v4581_v49 = vld [vmem:[#allocation4 + $0x40] sm:$0xf0] }
  0xa8   : > { %v3652_v33 = vor.u32 %v4606_v29, %v3651_v26  ;;  %v3571_v26 = vld [vmem:[#allocation4 + $0x58] sm:$0xf] }
  0xa9   : > { %1554 = vmatpush.bf16.msrb.mxu0 %v3608_v59  ;;  %v404_v59 = vperm.slane %v5324_v47, 1  ;;  %v3731_v29 = vld [vmem:[#allocation4 + $0x198] sm:$0xf] }
  0xaa   : > { %1567 = vmatpush.bf16.msrb.mxu1 %v3768_v62  ;;  %1591 = vmatpush.bf16.msrb.mxu3 %v3812_v35  ;;  %v3732_v35 = vor.u32 %v4626_v31, %v3731_v29  ;;  %v3533_v29 = vld [vmem:[#allocation4 + $0x1c] sm:$0xf0] }
  0xab   : > { %1530 = vmatpush.bf16.msra.mxu2 %v3564_v39  ;;  %v4618_v39 = vld [vmem:[#allocation4 + $0x16c] sm:$0xf] }
  0xac   : > { %v3708_v45 = vor.u32 %v4618_v39, %v3705_v41 }
  0xad   : > { %1555 = vmatpush.bf16.msrb.mxu0 %v3588_v8  ;;  %v3833_v8 = vld [vmem:[#allocation4 + $0x274] sm:$0xf0] }
  0xae   : > { %1568 = vmatpush.bf16.msrb.mxu1 %v3748_v12  ;;  %1592 = vmatpush.bf16.msrb.mxu3 %v3792_v50  ;;  %v3836_v9 = vor.u32 %v4649_v4, %v3833_v8  ;;  %v4631_v12 = vld [vmem:[#allocation4 + $0x1d0] sm:$0xf0]  ;;  %v3552_v50 = vor.u32 %v4581_v49, %v3551_v48  ;;  %v4616_v4 = vld [vmem:[#allocation4 + $0x158] sm:$0xf0]  ;;  %v4629_v8 = vld [vmem:[#allocation4 + $0x1c4] sm:$0xf] }
  0xaf   : > { %1531 = vmatpush.bf16.msra.mxu2 %v3544_v53  ;;  %v4613_v53 = vld [vmem:[#allocation4 + $0x144] sm:$0xf] }
  0xb0   : > { %v3688_v61 = vor.u32 %v4613_v53, %v3685_v56  ;;  %v4594_v53 = vld [vmem:[#allocation4 + $0xac] sm:$0xf] }
  0xb1   : > { %1556 = vmatpush.bf16.msrb.mxu0 %v3568_v24  ;;  %v4634_v56 = vld [vmem:[#allocation4 + $0x1ec] sm:$0xf] }
  0xb2   : > { %1569 = vmatpush.bf16.msrb.mxu1 %v3728_v28  ;;  %1593 = vmatpush.bf16.msrb.mxu3 %v3772_v1  ;;  %v4586_v28 = vld [vmem:[#allocation4 + $0x68] sm:$0xf0]  ;;  %v4576_v1 = vld [vmem:[#allocation4 + $0x18] sm:$0xf0] }
  0xb3   : > { %1532 = vmatpush.bf16.msra.mxu2 %v3524_v3  ;;  %v3673_v3 = vld [vmem:[#allocation4 + $0x134] sm:$0xf0]  ;;  %v3572_v30 = vor.u32 %v4586_v28, %v3571_v26  ;;  %v4574_v28 = vld [vmem:[#allocation4 + $0xc] sm:$0xf] }
  0xb5   : > { %1557 = vmatpush.bf16.msrb.mxu0 %v3548_v40 }
  0xb6   : > { %1570 = vmatpush.bf16.msrb.mxu1 %v3708_v45 }
  0xb7   : > { %1577 = vmatpush.bf16.msrb.mxu2 %v3672_v17  ;;  %v4644_v17 = vld [vmem:[#allocation4 + $0x23c] sm:$0xf] }
  0xb9   : > { %1558 = vmatpush.bf16.msrb.mxu0 %v3528_v55  ;;  %v3613_v55 = vld [vmem:[#allocation4 + $0xbc] sm:$0xf0] }
  0xba   : > { %1571 = vmatpush.bf16.msrb.mxu1 %v3688_v61 }
  0xbb   : > { %1578 = vmatpush.bf16.msrb.mxu2 %v3652_v33  ;;  %v4599_v33 = vld [vmem:[#allocation4 + $0xd4] sm:$0xf] }
  0xbe   : > { %1616 = vmatpush.bf16.msra.mxu1 %v3836_v9 }
  0xbf   : > { %1579 = vmatpush.bf16.msrb.mxu2 %v3632_v46 }
  0xe1   : > { %v845_v2 = vpop.f32.mrf.mxu0 }
  0xe2   : > { %v846_v7 = vadd.f32 %v845_v2, %v403_v57  ;;  %v858_v11 = vpop.f32.mrf.mxu1  ;;  %v3611_v57 = vld [vmem:[#allocation4 + $0xa8] sm:$0xf]  ;;  %v4609_v2 = vld [vmem:[#allocation4 + $0x124] sm:$0xf] }
  0xe3   : > { %v3612_v62 = vor.u32 %v4596_v58, %v3611_v57  ;;  %v3676_v32 = vor.u32 %v4609_v2, %v3673_v3  ;;  %v3773_v57 = vld [vmem:[#allocation4 + $0x1fc] sm:$0xf0]  ;;  %v3691_v2 = vld [vmem:[#allocation4 + $0x148] sm:$0xf]  ;;  %v3532_v3 = vor.u32 %v4576_v1, %v3531_v0  ;;  %v4607_v1 = vld [vmem:[#allocation4 + $0x110] sm:$0xf0] }
  0xe4   : > { %v859_v16 = vadd.f32 %v858_v11, %v846_v7  ;;  %v3751_v11 = vld [vmem:[#allocation4 + $0x1c0] sm:$0xf]  ;;  %v3776_v61 = vor.u32 %v4634_v56, %v3773_v57  ;;  %v3839_v56 = vld [vmem:[#allocation4 + $0x268] sm:$0xf]  ;;  %v4652_v57 = vld [vmem:[#allocation4 + $0x278] sm:$0xf0] }
  0xe5   : > { %1580 = vmatpush.bf16.msrb.mxu2 %v3612_v62  ;;  %1603 = vmatpush.bf16.msra.mxu0 %v3676_v32  ;;  %v3752_v14 = vor.u32 %v4631_v12, %v3751_v11  ;;  %v3756_v11 = vor.u32 %v4629_v8, %v3753_v34  ;;  %v3659_v0 = vld [vmem:[#allocation4 + $0x100] sm:$0xf]  ;;  %v4642_v8 = vld [vmem:[#allocation4 + $0x228] sm:$0xf0] }
  0xe6   : > { %v5327_v22 = vpop.f32.mrf.mxu2  ;;  %v967_v23 = vmul.f32 0.5, %v859_v16  ;;  %v3653_v16 = vld [vmem:[#allocation4 + $0x10c] sm:$0xf0] }
  0xe7   : > { %v5329_v27 = vpop.f32.mrf.mxu3  ;;  %v872_v18 = vadd.f32 %v5327_v22, %v404_v59  ;;  %v3656_v21 = vor.u32 %v4604_v15, %v3653_v16  ;;  %1594 = vmatpush.bf16.msrb.mxu3 %v3752_v14  ;;  %v4639_v22 = vld [vmem:[#allocation4 + $0x214] sm:$0xf]  ;;  %v3573_v14 = vld [vmem:[#allocation4 + $0x6c] sm:$0xf0]  ;;  %v4624_v15 = vld [vmem:[#allocation4 + $0x19c] sm:$0xf] }
  0xe8   : > { %4917 = vtanh.f32 %v967_v23  ;;  %v3813_v23 = vld [vmem:[#allocation4 + $0x24c] sm:$0xf0]  ;;  %v3796_v42 = vor.u32 %v4639_v22, %v3793_v37  ;;  %v407_v22 = vperm.slane %v5324_v47, 4  ;;  %v3536_v37 = vor.u32 %v4574_v28, %v3533_v29 }
  0xe9   : > { %v847_v36 = vpop.f32.mrf.mxu0  ;;  %v3816_v25 = vor.u32 %v4644_v17, %v3813_v23  ;;  %1581 = vmatpush.bf16.msrb.mxu2 %v3592_v13  ;;  %1604 = vmatpush.bf16.msra.mxu0 %v3656_v21  ;;  %v885_v38 = vadd.f32 %v5329_v27, %v872_v18  ;;  %v3712_v27 = vor.u32 %v4621_v52, %v3711_v51  ;;  %v4584_v13 = vld [vmem:[#allocation4 + $0x5c] sm:$0xf]  ;;  %v3733_v16 = vld [vmem:[#allocation4 + $0x1ac] sm:$0xf0]  ;;  %v4619_v21 = vld [vmem:[#allocation4 + $0x174] sm:$0xf] }
  0xea   : > { %v860_v44 = vpop.f32.mrf.mxu1  ;;  %v3633_v36 = vld [vmem:[#allocation4 + $0xe4] sm:$0xf0]  ;;  %v3576_v17 = vor.u32 %v4584_v13, %v3573_v14  ;;  %v3736_v18 = vor.u32 %v4624_v15, %v3733_v16  ;;  %v4637_v13 = vld [vmem:[#allocation4 + $0x200] sm:$0xf0] }
  0xeb   : > { %1617 = vmatpush.bf16.msra.mxu1 %v3816_v25  ;;  %v3636_v41 = vor.u32 %v4599_v33, %v3633_v36  ;;  %1595 = vmatpush.bf16.msrb.mxu3 %v3732_v35  ;;  %v971_v58 = vmul.f32 0.5, %v885_v38  ;;  %v3713_v23 = vld [vmem:[#allocation4 + $0x184] sm:$0xf0]  ;;  %v966_v33 = vld [vmem:[#allocation3] sm:$0xff]  ;;  %v3693_v35 = vld [vmem:[#allocation4 + $0x15c] sm:$0xf0] }
  0xec   : > { %v3716_v26 = vor.u32 %v4619_v21, %v3713_v23  ;;  %v3599_v16 = vld [vmem:[#allocation4 + $0x88] sm:$0xf]  ;;  %v3579_v23 = vld [vmem:[#allocation4 + $0x60] sm:$0xf] }
  0xed   : > { %1582 = vmatpush.bf16.msrb.mxu2 %v3572_v30  ;;  %1605 = vmatpush.bf16.msra.mxu0 %v3636_v41  ;;  %4919 = vtanh.f32 %v971_v58  ;;  %v4614_v30 = vld [vmem:[#allocation4 + $0x14c] sm:$0xf]  ;;  %v5337_v41 = vstv %s300_s28 }
  0xee   : > { %v873_v54 = vpop.f32.mrf.mxu2  ;;  %v4918_v5 = vpop.eup %4917  ;;  %v3696_v38 = vor.u32 %v4614_v30, %v3693_v35  ;;  %v3559_v30 = vld [vmem:[#allocation4 + $0x38] sm:$0xf]  ;;  %v4622_v35 = vld [vmem:[#allocation4 + $0x188] sm:$0xf0] }
  0xef   : > { %v886_v60 = vpop.f32.mrf.mxu3  ;;  %v969_v19 = vadd.f32 1.0, %v4918_v5  ;;  %1618 = vmatpush.bf16.msra.mxu1 %v3796_v42  ;;  %1596 = vmatpush.bf16.msrb.mxu3 %v3712_v27  ;;  %v4589_v5 = vld [vmem:[#allocation4 + $0x84] sm:$0xf]  ;;  %v3679_v27 = vld [vmem:[#allocation4 + $0x128] sm:$0xf] }
  0xf0   : > { %v3616_v60 = vor.u32 %v4594_v53, %v3613_v55  ;;  %v4612_v55 = vld [vmem:[#allocation4 + $0x138] sm:$0xf0] }
  0xf1   : > { %v970_v43 = vmul.f32 0.5, %v969_v19  ;;  %1583 = vmatpush.bf16.msrb.mxu2 %v3552_v50  ;;  %v4579_v19 = vld [vmem:[#allocation4 + $0x34] sm:$0xf]  ;;  %v3520_v50 = vld [vmem:[%s5293_s14 + $0x8] sm:$0xff] }
  0xf2   : > { %1606 = vmatpush.bf16.msra.mxu0 %v3616_v60 }
  0xf3   : > { %1619 = vmatpush.bf16.msra.mxu1 %v3776_v61  ;;  %v4920_v25 = vpop.eup %4919 }
  0xf4   : > { %v973_v36 = vadd.f32 1.0, %v4920_v25  ;;  %v3739_v25 = vld [vmem:[#allocation4 + $0x1a0] sm:$0xf] }
  0xf5   : > { %1584 = vmatpush.bf16.msrb.mxu2 %v3532_v3  ;;  %v4647_v3 = vld [vmem:[#allocation4 + $0x250] sm:$0xf0] }
  0xf6   : > { %v974_v42 = vmul.f32 0.5, %v973_v36 }
  0xf7   : > { %1620 = vmatpush.bf16.msra.mxu1 %v3756_v11  ;;  %v4597_v11 = vld [vmem:[#allocation4 + $0xc0] sm:$0xf0] }
  0xf8   : > { %v978_v48 = vsub.f32 1.0, %v974_v42 }
  0xf9   : > { %v897_v7 = vpop.f32.mrf.mxu0 }
  0xfa   : > { %v898_v39 = vadd.f32 %v897_v7, %v405_v6  ;;  %v3593_v6 = vld [vmem:[#allocation4 + $0x94] sm:$0xf0]  ;;  %v3692_v7 = vor.u32 %v4616_v4, %v3691_v2  ;;  %v3819_v2 = vld [vmem:[#allocation4 + $0x240] sm:$0xf]  ;;  %v3660_v4 = vor.u32 %v4607_v1, %v3659_v0 }
  0xfb   : > { %v3596_v32 = vor.u32 %v4589_v5, %v3593_v6  ;;  %1621 = vmatpush.bf16.msra.mxu1 %v3736_v18  ;;  %v3820_v5 = vor.u32 %v4647_v3, %v3819_v2  ;;  %v3639_v6 = vld [vmem:[#allocation4 + $0xd8] sm:$0xf]  ;;  %v3759_v18 = vld [vmem:[#allocation4 + $0x1c8] sm:$0xf]  ;;  %v4085_v0 = vld [vmem:[#allocation4 + $0x1e0] sm:$0xf] }
  0xfc   : > { %v910_v24 = vpop.f32.mrf.mxu1  ;;  %1597 = vmatpush.bf16.msrb.mxu3 %v3692_v7  ;;  %v4602_v7 = vld [vmem:[#allocation4 + $0xe8] sm:$0xf0]  ;;  %v4715_v2 = vld [vmem:[#allocation4 + $0x1f0] sm:$0xf0]  ;;  %v4688_v3 = vld [vmem:[#allocation4 + $0x11c] sm:$0xf] }
  0xfd   : > { %v911_v59 = vadd.f32 %v910_v24, %v898_v39  ;;  %1607 = vmatpush.bf16.msra.mxu0 %v3596_v32  ;;  %v3799_v32 = vld [vmem:[#allocation4 + $0x218] sm:$0xf]  ;;  %v3640_v34 = vor.u32 %v4602_v7, %v3639_v6  ;;  %v4728_v7 = vld [vmem:[#allocation4 + $0x25c] sm:$0xf] }
  0xff   : > { %1622 = vmatpush.bf16.msra.mxu1 %v3716_v26  ;;  %v4627_v26 = vld [vmem:[#allocation4 + $0x1b0] sm:$0xf0] }
 0x100   : > { %v923_v40 = vpop.f32.mrf.mxu2  ;;  %v3740_v29 = vor.u32 %v4627_v26, %v3739_v25  ;;  %v4705_v25 = vld [vmem:[#allocation4 + $0x1a0] sm:$0xf0]  ;;  %v4678_v26 = vld [vmem:[#allocation4 + $0xcc] sm:$0xf] }
 0x101   : > { %v924_v44 = vadd.f32 %v923_v40, %v406_v20  ;;  %v936_v45 = vpop.f32.mrf.mxu3  ;;  %v899_v46 = vpop.f32.mrf.mxu0  ;;  %v3553_v20 = vld [vmem:[#allocation4 + $0x44] sm:$0xf0]  ;;  %1608 = vmatpush.bf16.msra.mxu0 %v3576_v17  ;;  %v4592_v17 = vld [vmem:[#allocation4 + $0x98] sm:$0xf0] }
 0x102   : > { %v3556_v24 = vor.u32 %v4579_v19, %v3553_v20  ;;  %v4632_v19 = vld [vmem:[#allocation4 + $0x1d8] sm:$0xf0]  ;;  %v3600_v20 = vor.u32 %v4592_v17, %v3599_v16  ;;  %v4723_v17 = vld [vmem:[#allocation4 + $0x234] sm:$0xf] }
 0x103   : > { %v937_v54 = vadd.f32 %v936_v45, %v924_v44  ;;  %1623 = vmatpush.bf16.msra.mxu1 %v3696_v38  ;;  %v3760_v21 = vor.u32 %v4632_v19, %v3759_v18  ;;  %v4577_v38 = vld [vmem:[#allocation4 + $0x20] sm:$0xf0]  ;;  %v4127_v18 = vld [vmem:[#allocation4 + $0x244] sm:$0xf0] }
 0x104   : > { %v912_v63 = vpop.f32.mrf.mxu1  ;;  %v4130_v19 = vor.u32 %v4723_v17, %v4127_v18  ;;  %v4698_v17 = vld [vmem:[#allocation4 + $0x16c] sm:$0xf] }
 0x105   : > { %v975_v62 = vmul.f32 %v970_v43, %v937_v54  ;;  %1609 = vmatpush.bf16.msra.mxu0 %v3556_v24  ;;  %v3840_v63 = vor.u32 %v4652_v57, %v3839_v56  ;;  %v4587_v24 = vld [vmem:[#allocation4 + $0x70] sm:$0xf0]  ;;  %v3945_v56 = vld [vmem:[#allocation4 + $0xc8] sm:$0xf]  ;;  %v4680_v57 = vld [vmem:[#allocation4 + $0xd8] sm:$0xf0] }
 0x106   : > { %v3580_v28 = vor.u32 %v4587_v24, %v3579_v23  ;;  %v4045_v24 = vld [vmem:[#allocation4 + $0x190] sm:$0xf] }
 0x107   : > { %v976_v9 = vadd.f32 %v975_v62, %v911_v59  ;;  %v3680_v62 = vor.u32 %v4612_v55, %v3679_v27  ;;  %v4725_v27 = vld [vmem:[#allocation4 + $0x240] sm:$0xf0] }
 0x108   : > { %v925_v10 = vpop.f32.mrf.mxu2 }
 0x109   : > { %v938_v12 = vpop.f32.mrf.mxu3  ;;  %4921 = vtanh.f32 %v976_v9  ;;  %1610 = vmatpush.bf16.msra.mxu0 %v3536_v37  ;;  %v3800_v9 = vor.u32 %v4642_v8, %v3799_v32  ;;  %v3619_v10 = vld [vmem:[#allocation4 + $0xb0] sm:$0xf] }
 0x10a   : > { %v3779_v12 = vld [vmem:[#allocation4 + $0x1f0] sm:$0xf]  ;;  %v3620_v14 = vor.u32 %v4597_v11, %v3619_v10  ;;  %v4065_v10 = vld [vmem:[#allocation4 + $0x1b8] sm:$0xf] }
 0x10b   : > { %v3780_v15 = vor.u32 %v4637_v13, %v3779_v12  ;;  %v3539_v37 = vld [vmem:[#allocation4 + $0x10] sm:$0xf]  ;;  %v4710_v12 = vld [vmem:[#allocation4 + $0x1c8] sm:$0xf0]  ;;  %v4683_v13 = vld [vmem:[#allocation4 + $0xf4] sm:$0xf] }
 0x10c   : > { %v3540_v42 = vor.u32 %v4577_v38, %v3539_v37  ;;  %v4147_v32 = vld [vmem:[#allocation4 + $0x26c] sm:$0xf0]  ;;  %v4025_v37 = vld [vmem:[#allocation4 + $0x168] sm:$0xf] }
 0x10d   : > { %v4150_v8 = vor.u32 %v4728_v7, %v4147_v32  ;;  %v3973_v7 = vld [vmem:[#allocation4 + $0xf8] sm:$0xf] }
 0x10f   : > { %v4922_v31 = vpop.eup %4921 }
 0x110   : > { %v979_v39 = vsub.f32 %v4922_v31, %v966_v33  ;;  %v4582_v31 = vld [vmem:[#allocation4 + $0x48] sm:$0xf0] }
 0x111   : > { %v3560_v36 = vor.u32 %v4582_v31, %v3559_v30  ;;  %v4718_v30 = vld [vmem:[#allocation4 + $0x20c] sm:$0xf]  ;;  %v4107_v31 = vld [vmem:[#allocation4 + $0x21c] sm:$0xf0] }
 0x112   : > { %v981_v46 = vmul.f32 %v5337_v41, %v979_v39  ;;  %v3699_v39 = vld [vmem:[#allocation4 + $0x150] sm:$0xf] }
 0x119   : > { %v949_v40 = vpop.f32.mrf.mxu0 }
 0x11a   : > { %v950_v43 = vadd.f32 %v949_v40, %v407_v22  ;;  %v962_v44 = vpop.f32.mrf.mxu1  ;;  %v4617_v40 = vld [vmem:[#allocation4 + $0x160] sm:$0xf0] }
 0x11c   : > { %v963_v45 = vadd.f32 %v962_v44, %v950_v43  ;;  %v3700_v43 = vor.u32 %v4617_v40, %v3699_v39  ;;  %v3985_v44 = vld [vmem:[#allocation4 + $0x118] sm:$0xf]  ;;  %v4700_v39 = vld [vmem:[#allocation4 + $0x178] sm:$0xf0]  ;;  %v4673_v40 = vld [vmem:[#allocation4 + $0xa4] sm:$0xf] }
 0x11e   : > { %v982_v47 = vadd.f32 %v981_v46, %v963_v45  ;;  %v4690_v45 = vld [vmem:[#allocation4 + $0x128] sm:$0xf0]  ;;  %v4145_v46 = vld [vmem:[#allocation4 + $0x258] sm:$0xf] }
 0x120   : > { %v983_v49 = vmul.f32 %v982_v47, %v978_v48  ;;  %v3986_v48 = vor.u32 %v4690_v45, %v3985_v44  ;;  %v4730_v47 = vld [vmem:[#allocation4 + $0x268] sm:$0xf0]  ;;  %v4713_v45 = vld [vmem:[#allocation4 + $0x1e4] sm:$0xf] }
 0x121   : > { %v951_v51 = vpop.f32.mrf.mxu0 }
 0x122   : > { %v5341_v52 = vadd.f32 %v983_v49, %v966_v33  ;;  %v964_v53 = vpop.f32.mrf.mxu1  ;;  %v3719_v33 = vld [vmem:[#allocation4 + $0x178] sm:$0xf]  ;;  %v4146_v49 = vor.u32 %v4730_v47, %v4145_v46  ;;  %v4685_v51 = vld [vmem:[#allocation4 + $0x100] sm:$0xf0]  ;;  %v3845_v47 = vld [vmem:[#allocation4] sm:$0xf] }
 0x123   : > { %v3720_v22 = vor.u32 %v4622_v35, %v3719_v33  ;;  %v4125_v53 = vld [vmem:[#allocation4 + $0x230] sm:$0xf]  ;;  %v4110_v35 = vor.u32 %v4718_v30, %v4107_v31  ;;  %v4087_v46 = vld [vmem:[#allocation4 + $0x1f4] sm:$0xf0]  ;;  %v4653_v30 = vld [vmem:[#allocation4 + $0x4] sm:$0xf] }
 0x124   : > { %988 = vst [vmem:[%s5303_s1] sm:$0xff] %v5341_v52  ;;  %v4817_v54 = vpack.c.bf16 %v3520_v50, %v5341_v52  ;;  %v3965_v50 = vld [vmem:[#allocation4 + $0xf0] sm:$0xf]  ;;  %v4126_v55 = vor.u32 %v4725_v27, %v4125_v53  ;;  %v4695_v53 = vld [vmem:[#allocation4 + $0x150] sm:$0xf0]  ;;  %v3847_v31 = vld [vmem:[#allocation4 + $0x14] sm:$0xf0] }
 0x125   : > { %v3907_v27 = vld [vmem:[#allocation4 + $0x8c] sm:$0xf0] }
 0x126   : > { %v1103_v58 = vunpack.c.l.b16 %v4817_v54  ;;  %v1104_v59 = vunpack.c.h.b16 %v4817_v54  ;;  %v3966_v54 = vor.u32 %v4685_v51, %v3965_v50  ;;  %v4005_v50 = vld [vmem:[#allocation4 + $0x140] sm:$0xf] }
 0x128   : > { %v5346_v60 = vpack.c.b16 %v1103_v58, %v1103_v58  ;;  %v5348_v61 = vpack.c.b16 %v1104_v59, %v1104_v59  ;;  %v4105_v58 = vld [vmem:[#allocation4 + $0x208] sm:$0xf]  ;;  %v3946_v59 = vor.u32 %v4680_v57, %v3945_v56  ;;  %v4708_v57 = vld [vmem:[#allocation4 + $0x1bc] sm:$0xf] }
 0x12a   : > { %1533 = vmatmul.bf16.vlgmr.msra.gmra.mxu2 %v5346_v60  ;;  %1546 = vmatmul.bf16.vlgmr.msra.gmra.mxu3 %v5348_v61 }
 0x12b   : > { %1559 = vmatmul.bf16.vlgmr.msrb.gmra.mxu0 %v5346_v60  ;;  %1572 = vmatmul.bf16.vlgmr.msrb.gmra.mxu1 %v5348_v61 }
 0x12c   : > { %1629 = vmatpush.bf16.msra.mxu2 %v3680_v62  ;;  %1642 = vmatpush.bf16.msra.mxu3 %v3840_v63  ;;  %v3925_v62 = vld [vmem:[#allocation4 + $0xa0] sm:$0xf]  ;;  %v4675_v63 = vld [vmem:[#allocation4 + $0xb0] sm:$0xf0] }
 0x12d   : > { %2214 = vmatpush.bf16.msrb.mxu0 %v3986_v48  ;;  %2227 = vmatpush.bf16.msrb.mxu1 %v4146_v49  ;;  %v3926_v1 = vor.u32 %v4675_v63, %v3925_v62  ;;  %v4090_v48 = vor.u32 %v4713_v45, %v4087_v46  ;;  %v4655_v49 = vld [vmem:[#allocation4 + $0x10] sm:$0xf0]  ;;  %v4153_v62 = vld [vmem:[#allocation4 + $0x260] sm:$0xf]  ;;  %v4716_v45 = vld [vmem:[#allocation4 + $0x1f8] sm:$0xf0] }
 0x12e   : > { %v3846_v51 = vor.u32 %v4655_v49, %v3845_v47  ;;  %v4731_v63 = vld [vmem:[#allocation4 + $0x270] sm:$0xf0]  ;;  %v4689_v47 = vld [vmem:[#allocation4 + $0x124] sm:$0xf]  ;;  %v3995_v49 = vld [vmem:[#allocation4 + $0x134] sm:$0xf0] }
 0x130   : > { %1630 = vmatpush.bf16.msra.mxu2 %v3660_v4  ;;  %1643 = vmatpush.bf16.msra.mxu3 %v3820_v5  ;;  %v3987_v4 = vld [vmem:[#allocation4 + $0x12c] sm:$0xf0]  ;;  %v4086_v5 = vor.u32 %v4715_v2, %v4085_v0  ;;  %v4663_v2 = vld [vmem:[#allocation4 + $0x54] sm:$0xf] }
 0x131   : > { %2215 = vmatpush.bf16.msrb.mxu0 %v3966_v54  ;;  %2228 = vmatpush.bf16.msrb.mxu1 %v4126_v55  ;;  %v3990_v6 = vor.u32 %v4688_v3, %v3987_v4  ;;  %v4668_v54 = vld [vmem:[#allocation4 + $0x7c] sm:$0xf]  ;;  %v4006_v55 = vor.u32 %v4695_v53, %v4005_v50  ;;  %v3887_v3 = vld [vmem:[#allocation4 + $0x64] sm:$0xf0]  ;;  %v4703_v4 = vld [vmem:[#allocation4 + $0x194] sm:$0xf] }
 0x132   : > { %v3910_v56 = vor.u32 %v4668_v54, %v3907_v27  ;;  %v4729_v50 = vld [vmem:[#allocation4 + $0x264] sm:$0xf]  ;;  %v3998_v27 = vor.u32 %v4689_v47, %v3995_v49  ;;  %v3853_v49 = vld [vmem:[#allocation4 + $0x8] sm:$0xf] }
 0x134   : > { %1631 = vmatpush.bf16.msra.mxu2 %v3640_v34  ;;  %1644 = vmatpush.bf16.msra.mxu3 %v3800_v9  ;;  %v3905_v34 = vld [vmem:[#allocation4 + $0x78] sm:$0xf]  ;;  %v4670_v9 = vld [vmem:[#allocation4 + $0x88] sm:$0xf0] }
 0x135   : > { %2216 = vmatpush.bf16.msrb.mxu0 %v3946_v59  ;;  %v3906_v11 = vor.u32 %v4670_v9, %v3905_v34  ;;  %v3993_v59 = vld [vmem:[#allocation4 + $0x120] sm:$0xf]  ;;  %v4133_v34 = vld [vmem:[#allocation4 + $0x238] sm:$0xf]  ;;  %v4726_v9 = vld [vmem:[#allocation4 + $0x248] sm:$0xf0] }
 0x138   : > { %1632 = vmatpush.bf16.msra.mxu2 %v3620_v14  ;;  %1645 = vmatpush.bf16.msra.mxu3 %v3780_v15  ;;  %v3967_v14 = vld [vmem:[#allocation4 + $0x104] sm:$0xf0]  ;;  %v4066_v15 = vor.u32 %v4710_v12, %v4065_v10  ;;  %v4134_v12 = vor.u32 %v4726_v9, %v4133_v34 }
 0x139   : > { %2217 = vmatpush.bf16.msrb.mxu0 %v3926_v1  ;;  %v3970_v16 = vor.u32 %v4683_v13, %v3967_v14  ;;  %v4154_v1 = vor.u32 %v4731_v63, %v4153_v62  ;;  %v5360_v10 = vld [vmem:[#allocation12] sm:$0x1f]  ;;  %v4684_v62 = vld [vmem:[#allocation4 + $0xfc] sm:$0xf] }
 0x13a   : > { %1585 = vmatmul.bf16.vlgmr.msrb.gmra.mxu2 %v5346_v60  ;;  %1598 = vmatmul.bf16.vlgmr.msrb.gmra.mxu3 %v5348_v61 }
 0x13b   : > { %1611 = vmatmul.bf16.vlgmr.msra.gmra.mxu0 %v5346_v60  ;;  %1624 = vmatmul.bf16.vlgmr.msra.gmra.mxu1 %v5348_v61 }
 0x13c   : > { %1633 = vmatpush.bf16.msra.mxu2 %v3600_v20  ;;  %1646 = vmatpush.bf16.msra.mxu3 %v3760_v21  ;;  %v3885_v20 = vld [vmem:[#allocation4 + $0x50] sm:$0xf]  ;;  %v4665_v21 = vld [vmem:[#allocation4 + $0x60] sm:$0xf0] }
 0x13d   : > { %2218 = vmatpush.bf16.msrb.mxu0 %v3906_v11  ;;  %v3886_v23 = vor.u32 %v4665_v21, %v3885_v20  ;;  %v3953_v20 = vld [vmem:[#allocation4 + $0xd0] sm:$0xf]  ;;  %v4681_v21 = vld [vmem:[#allocation4 + $0xe0] sm:$0xf0] }
 0x140   : > { %1634 = vmatpush.bf16.msra.mxu2 %v3580_v28  ;;  %1647 = vmatpush.bf16.msra.mxu3 %v3740_v29  ;;  %v4046_v28 = vor.u32 %v4705_v25, %v4045_v24  ;;  %v3947_v29 = vld [vmem:[#allocation4 + $0xdc] sm:$0xf0]  ;;  %v3954_v25 = vor.u32 %v4681_v21, %v3953_v20  ;;  %v4719_v20 = vld [vmem:[#allocation4 + $0x214] sm:$0xf]  ;;  %v4115_v21 = vld [vmem:[#allocation4 + $0x224] sm:$0xf0] }
 0x141   : > { %2219 = vmatpush.bf16.msrb.mxu0 %v3886_v23  ;;  %v3950_v33 = vor.u32 %v4678_v26, %v3947_v29  ;;  %v1092_v23 = vperm.slane %v5360_v10, 0  ;;  %v4113_v26 = vld [vmem:[#allocation4 + $0x210] sm:$0xf] }
 0x144   : > { %1635 = vmatpush.bf16.msra.mxu2 %v3560_v36  ;;  %1648 = vmatpush.bf16.msra.mxu3 %v3720_v22  ;;  %v3865_v36 = vld [vmem:[#allocation4 + $0x28] sm:$0xf]  ;;  %v4660_v22 = vld [vmem:[#allocation4 + $0x38] sm:$0xf0] }
 0x145   : > { %v3866_v38 = vor.u32 %v4660_v22, %v3865_v36 }
 0x147   : > { %2220 = vmatpush.bf16.msrb.mxu0 %v3866_v38  ;;  %v4007_v38 = vld [vmem:[#allocation4 + $0x154] sm:$0xf0] }
 0x148   : > { %1636 = vmatpush.bf16.msra.mxu2 %v3540_v42  ;;  %1649 = vmatpush.bf16.msra.mxu3 %v3700_v43  ;;  %v3927_v42 = vld [vmem:[#allocation4 + $0xb4] sm:$0xf0]  ;;  %v4026_v43 = vor.u32 %v4700_v39, %v4025_v37  ;;  %v3850_v37 = vor.u32 %v4653_v30, %v3847_v31  ;;  %v3933_v39 = vld [vmem:[#allocation4 + $0xa8] sm:$0xf]  ;;  %v4033_v31 = vld [vmem:[#allocation4 + $0x170] sm:$0xf] }
 0x149   : > { %v3930_v44 = vor.u32 %v4673_v40, %v3927_v42 }
 0x14b   : > { %1637 = vmatmul.bf16.vlgmr.msra.gmra.mxu2 %v5346_v60  ;;  %1650 = vmatmul.bf16.vlgmr.msra.gmra.mxu3 %v5348_v61  ;;  %v4720_v60 = vld [vmem:[#allocation4 + $0x218] sm:$0xf0] }
 0x14c   : > { %v4106_v61 = vor.u32 %v4720_v60, %v4105_v58  ;;  %2240 = vmatpush.bf16.msrb.mxu2 %v3990_v6  ;;  %2253 = vmatpush.bf16.msrb.mxu3 %v4150_v8  ;;  %v4067_v58 = vld [vmem:[#allocation4 + $0x1cc] sm:$0xf0]  ;;  %v4047_v6 = vld [vmem:[#allocation4 + $0x1a4] sm:$0xf0]  ;;  %v4686_v8 = vld [vmem:[#allocation4 + $0x108] sm:$0xf0] }
 0x14d   : > { %2221 = vmatpush.bf16.msrb.mxu0 %v3846_v51  ;;  %v4070_v60 = vor.u32 %v4708_v57, %v4067_v58  ;;  %v4050_v32 = vor.u32 %v4703_v4, %v4047_v6  ;;  %v3974_v11 = vor.u32 %v4686_v8, %v3973_v7  ;;  %v4671_v57 = vld [vmem:[#allocation4 + $0x90] sm:$0xf0]  ;;  %v3893_v7 = vld [vmem:[#allocation4 + $0x58] sm:$0xf] }
 0x14e   : > { %2229 = vmatpush.bf16.msrb.mxu1 %v4106_v61  ;;  %v4691_v61 = vld [vmem:[#allocation4 + $0x130] sm:$0xf0]  ;;  %v4053_v8 = vld [vmem:[#allocation4 + $0x198] sm:$0xf] }
 0x14f   : > { %v3994_v0 = vor.u32 %v4691_v61, %v3993_v59  ;;  %v4711_v61 = vld [vmem:[#allocation4 + $0x1d0] sm:$0xf0] }
 0x150   : > { %2241 = vmatpush.bf16.msrb.mxu2 %v3970_v16  ;;  %2254 = vmatpush.bf16.msrb.mxu3 %v4130_v19  ;;  %v3867_v16 = vld [vmem:[#allocation4 + $0x3c] sm:$0xf0] }
 0x151   : > { %2266 = vmatpush.bf16.msra.mxu0 %v3994_v0  ;;  %v4027_v19 = vld [vmem:[#allocation4 + $0x17c] sm:$0xf0] }
 0x152   : > { %2230 = vmatpush.bf16.msrb.mxu1 %v4086_v5  ;;  %v3890_v5 = vor.u32 %v4663_v2, %v3887_v3  ;;  %v4030_v24 = vor.u32 %v4698_v17, %v4027_v19  ;;  %v4724_v2 = vld [vmem:[#allocation4 + $0x23c] sm:$0xf]  ;;  %v1095_v3 = vperm.slane %v5360_v10, 3  ;;  %v3955_v17 = vld [vmem:[#allocation4 + $0xe4] sm:$0xf0] }
 0x154   : > { %2242 = vmatpush.bf16.msrb.mxu2 %v3950_v33  ;;  %2255 = vmatpush.bf16.msrb.mxu3 %v4110_v35  ;;  %v4693_v33 = vld [vmem:[#allocation4 + $0x144] sm:$0xf]  ;;  %v1093_v35 = vperm.slane %v5360_v10, 1 }
 0x155   : > { %2267 = vmatpush.bf16.msra.mxu0 %v3974_v11  ;;  %v4010_v42 = vor.u32 %v4693_v33, %v4007_v38  ;;  %v4701_v33 = vld [vmem:[#allocation4 + $0x180] sm:$0xf0]  ;;  %v3935_v38 = vld [vmem:[#allocation4 + $0xbc] sm:$0xf0] }
 0x156   : > { %2231 = vmatpush.bf16.msrb.mxu1 %v4066_v15  ;;  %v4658_v15 = vld [vmem:[#allocation4 + $0x2c] sm:$0xf] }
 0x157   : > { %v3870_v18 = vor.u32 %v4658_v15, %v3867_v16  ;;  %v4706_v15 = vld [vmem:[#allocation4 + $0x1a8] sm:$0xf0]  ;;  %v4679_v16 = vld [vmem:[#allocation4 + $0xd4] sm:$0xf] }
 0x158   : > { %2243 = vmatpush.bf16.msrb.mxu2 %v3930_v44  ;;  %2256 = vmatpush.bf16.msrb.mxu3 %v4090_v48  ;;  %v4093_v44 = vld [vmem:[#allocation4 + $0x1e8] sm:$0xf]  ;;  %v3958_v19 = vor.u32 %v4679_v16, %v3955_v17 }
 0x159   : > { %2268 = vmatpush.bf16.msra.mxu0 %v3954_v25  ;;  %v4094_v48 = vor.u32 %v4716_v45, %v4093_v44  ;;  %v4035_v16 = vld [vmem:[#allocation4 + $0x184] sm:$0xf0] }
 0x15a   : > { %2232 = vmatpush.bf16.msrb.mxu1 %v4046_v28  ;;  %v4721_v28 = vld [vmem:[#allocation4 + $0x220] sm:$0xf0] }
 0x15b   : > { %v4114_v29 = vor.u32 %v4721_v28, %v4113_v26  ;;  %v3873_v26 = vld [vmem:[#allocation4 + $0x30] sm:$0xf]  ;;  %v4661_v28 = vld [vmem:[#allocation4 + $0x40] sm:$0xf0] }
 0x15c   : > { %2244 = vmatpush.bf16.msrb.mxu2 %v3910_v56  ;;  %2257 = vmatpush.bf16.msrb.mxu3 %v4070_v60  ;;  %v3913_v56 = vld [vmem:[#allocation4 + $0x80] sm:$0xf]  ;;  %v3874_v30 = vor.u32 %v4661_v28, %v3873_v26  ;;  %v1096_v28 = vperm.slane %v5360_v10, 4 }
 0x15d   : > { %v3914_v59 = vor.u32 %v4671_v57, %v3913_v56  ;;  %v4073_v60 = vld [vmem:[#allocation4 + $0x1c0] sm:$0xf] }
 0x15e   : > { %2233 = vmatpush.bf16.msrb.mxu1 %v4026_v43  ;;  %v4676_v43 = vld [vmem:[#allocation4 + $0xb8] sm:$0xf0]  ;;  %v4074_v0 = vor.u32 %v4711_v61, %v4073_v60  ;;  %v4075_v60 = vld [vmem:[#allocation4 + $0x1d4] sm:$0xf0] }
 0x15f   : > { %v3934_v46 = vor.u32 %v4676_v43, %v3933_v39  ;;  %v4714_v39 = vld [vmem:[#allocation4 + $0x1ec] sm:$0xf]  ;;  %v4095_v43 = vld [vmem:[#allocation4 + $0x1fc] sm:$0xf0] }
 0x160   : > { %2245 = vmatpush.bf16.msrb.mxu2 %v3890_v5  ;;  %2258 = vmatpush.bf16.msrb.mxu3 %v4050_v32  ;;  %v4135_v5 = vld [vmem:[#allocation4 + $0x24c] sm:$0xf0]  ;;  %v4666_v32 = vld [vmem:[#allocation4 + $0x68] sm:$0xf0]  ;;  %v4098_v44 = vor.u32 %v4714_v39, %v4095_v43 }
 0x161   : > { %2269 = vmatpush.bf16.msra.mxu0 %v3934_v46  ;;  %v4138_v6 = vor.u32 %v4724_v2, %v4135_v5  ;;  %v4664_v2 = vld [vmem:[#allocation4 + $0x5c] sm:$0xf] }
 0x162   : > { %2234 = vmatpush.bf16.msrb.mxu1 %v4006_v55  ;;  %v4155_v55 = vld [vmem:[#allocation4 + $0x274] sm:$0xf0] }
 0x163   : > { %v4158_v58 = vor.u32 %v4729_v50, %v4155_v55  ;;  %v4656_v50 = vld [vmem:[#allocation4 + $0x18] sm:$0xf0]  ;;  %v4669_v55 = vld [vmem:[#allocation4 + $0x84] sm:$0xf] }
 0x164   : > { %2246 = vmatpush.bf16.msrb.mxu2 %v3870_v18  ;;  %2259 = vmatpush.bf16.msrb.mxu3 %v4030_v24  ;;  %v4054_v18 = vor.u32 %v4706_v15, %v4053_v8 }
 0x165   : > { %2270 = vmatpush.bf16.msra.mxu0 %v3914_v59  ;;  %v4709_v59 = vld [vmem:[#allocation4 + $0x1c4] sm:$0xf] }
 0x166   : > { %2279 = vmatpush.bf16.msra.mxu1 %v4154_v1  ;;  %v3975_v1 = vld [vmem:[#allocation4 + $0x10c] sm:$0xf0] }
 0x167   : > { %v3978_v4 = vor.u32 %v4684_v62, %v3975_v1  ;;  %v4078_v1 = vor.u32 %v4709_v59, %v4075_v60  ;;  %v3961_v59 = vld [vmem:[#allocation4 + $0xd8] sm:$0xf]  ;;  %v4682_v60 = vld [vmem:[#allocation4 + $0xe8] sm:$0xf0] }
 0x168   : > { %2247 = vmatpush.bf16.msrb.mxu2 %v3850_v37  ;;  %2260 = vmatpush.bf16.msrb.mxu3 %v4010_v42  ;;  %v4034_v37 = vor.u32 %v4701_v33, %v4033_v31 }
 0x16a   : > { %2280 = vmatpush.bf16.msra.mxu1 %v4134_v12  ;;  %v3894_v12 = vor.u32 %v4666_v32, %v3893_v7  ;;  %v4055_v7 = vld [vmem:[#allocation4 + $0x1ac] sm:$0xf0] }
 0x16c   : > { %2292 = vmatpush.bf16.msra.mxu2 %v3998_v27  ;;  %2305 = vmatpush.bf16.msra.mxu3 %v4158_v58  ;;  %v4696_v27 = vld [vmem:[#allocation4 + $0x158] sm:$0xf0]  ;;  %v3915_v58 = vld [vmem:[#allocation4 + $0x94] sm:$0xf0] }
 0x16d   : > { %2271 = vmatpush.bf16.msra.mxu0 %v3894_v12  ;;  %v4699_v12 = vld [vmem:[#allocation4 + $0x174] sm:$0xf] }
 0x16e   : > { %2281 = vmatpush.bf16.msra.mxu1 %v4114_v29  ;;  %v4038_v17 = vor.u32 %v4699_v12, %v4035_v16  ;;  %v3901_v12 = vld [vmem:[#allocation4 + $0x60] sm:$0xf] }
 0x16f   : > { %v4061_v16 = vld [vmem:[#allocation4 + $0x1a0] sm:$0xf] }
 0x170   : > { %2293 = vmatpush.bf16.msra.mxu2 %v3978_v4  ;;  %2306 = vmatpush.bf16.msra.mxu3 %v4138_v6  ;;  %v4704_v6 = vld [vmem:[#allocation4 + $0x19c] sm:$0xf] }
 0x171   : > { %2272 = vmatpush.bf16.msra.mxu0 %v3874_v30  ;;  %v4058_v32 = vor.u32 %v4704_v6, %v4055_v7  ;;  %v3921_v7 = vld [vmem:[#allocation4 + $0x88] sm:$0xf] }
 0x172   : > { %2282 = vmatpush.bf16.msra.mxu1 %v4094_v48 }
 0x174   : > { %2294 = vmatpush.bf16.msra.mxu2 %v3958_v19  ;;  %v4654_v19 = vld [vmem:[#allocation4 + $0xc] sm:$0xf] }
 0x176   : > { %2283 = vmatpush.bf16.msra.mxu1 %v4074_v0  ;;  %v3918_v0 = vor.u32 %v4669_v55, %v3915_v58  ;;  %v4687_v55 = vld [vmem:[#allocation4 + $0x110] sm:$0xf0] }
 0x17a   : > { %2284 = vmatpush.bf16.msra.mxu1 %v4054_v18 }
 0x17e   : > { %2285 = vmatpush.bf16.msra.mxu1 %v4034_v37 }
 0x1a8   : > { %v5362_v13 = vpop.f32.mrf.mxu0  ;;  %v5364_v14 = vpop.f32.mrf.mxu1 }
 0x1a9   : > { %v1561_v34 = vadd.f32 %v5362_v13, %v1093_v35  ;;  %v4674_v35 = vld [vmem:[#allocation4 + $0xac] sm:$0xf] }
 0x1aa   : > { %v3938_v42 = vor.u32 %v4674_v35, %v3935_v38 }
 0x1ab   : > { %v1574_v13 = vadd.f32 %v5364_v14, %v1561_v34 }
 0x1ac   : > { %2295 = vmatpush.bf16.msra.mxu2 %v3938_v42 }
 0x1ad   : > { %v1534_v36 = vpop.f32.mrf.mxu2  ;;  %v1547_v22 = vpop.f32.mrf.mxu3  ;;  %v1660_v14 = vmul.f32 0.5, %v1574_v13 }
 0x1ae   : > { %v1535_v40 = vadd.f32 %v1534_v36, %v1092_v23  ;;  %v4118_v23 = vor.u32 %v4719_v20, %v4115_v21  ;;  %v3855_v20 = vld [vmem:[#allocation4 + $0x1c] sm:$0xf0]  ;;  %v4694_v21 = vld [vmem:[#allocation4 + $0x14c] sm:$0xf] }
 0x1b0   : > { %v1548_v51 = vadd.f32 %v1547_v22, %v1535_v40  ;;  %v1562_v53 = vpop.f32.mrf.mxu0  ;;  %v1575_v54 = vpop.f32.mrf.mxu1  ;;  %v1094_v22 = vperm.slane %v5360_v10, 2  ;;  %2307 = vmatpush.bf16.msra.mxu3 %v4118_v23  ;;  %2296 = vmatpush.bf16.msra.mxu2 %v3918_v0 }
 0x1b1   : > { %v3854_v53 = vor.u32 %v4656_v50, %v3853_v49  ;;  %v4013_v54 = vld [vmem:[#allocation4 + $0x148] sm:$0xf] }
 0x1b2   : > { %v1656_v63 = vmul.f32 0.5, %v1548_v51  ;;  %v4014_v57 = vor.u32 %v4696_v27, %v4013_v54  ;;  %v3981_v27 = vld [vmem:[#allocation4 + $0x100] sm:$0xf] }
 0x1b3   : > { %2273 = vmatpush.bf16.msra.mxu0 %v3854_v53 }
 0x1b4   : > { %4923 = vtanh.f32 %v1656_v63  ;;  %2308 = vmatpush.bf16.msra.mxu3 %v4098_v44  ;;  %2286 = vmatpush.bf16.msra.mxu1 %v4014_v57  ;;  %v3982_v57 = vor.u32 %v4687_v55, %v3981_v27  ;;  %v4407_v27 = vld [vmem:[#allocation4 + $0x1e0] sm:$0xf] }
 0x1b5   : > { %v1536_v9 = vpop.f32.mrf.mxu2  ;;  %v1549_v11 = vpop.f32.mrf.mxu3  ;;  %4925 = vtanh.f32 %v1660_v14  ;;  %v4001_v14 = vld [vmem:[#allocation4 + $0x128] sm:$0xf] }
 0x1b6   : > { %v4659_v9 = vld [vmem:[#allocation4 + $0x34] sm:$0xf]  ;;  %v3875_v11 = vld [vmem:[#allocation4 + $0x44] sm:$0xf0] }
 0x1b7   : > { %v3878_v15 = vor.u32 %v4659_v9, %v3875_v11 }
 0x1b8   : > { %v1612_v24 = vpop.f32.mrf.mxu0  ;;  %v1625_v25 = vpop.f32.mrf.mxu1  ;;  %2309 = vmatpush.bf16.msra.mxu3 %v4078_v1  ;;  %v3941_v1 = vld [vmem:[#allocation4 + $0xb0] sm:$0xf] }
 0x1b9   : > { %v1613_v29 = vadd.f32 %v1612_v24, %v1095_v3  ;;  %v3895_v3 = vld [vmem:[#allocation4 + $0x6c] sm:$0xf0]  ;;  %v3858_v24 = vor.u32 %v4654_v19, %v3855_v20  ;;  %v3881_v20 = vld [vmem:[#allocation4 + $0x38] sm:$0xf] }
 0x1ba   : > { %v4924_v36 = vpop.eup %4923  ;;  %v3898_v5 = vor.u32 %v4664_v2, %v3895_v3  ;;  %v4677_v2 = vld [vmem:[#allocation4 + $0xc0] sm:$0xf0]  ;;  %v4101_v3 = vld [vmem:[#allocation4 + $0x1f0] sm:$0xf] }
 0x1bb   : > { %v1658_v40 = vadd.f32 1.0, %v4924_v36  ;;  %v1626_v46 = vadd.f32 %v1625_v25, %v1613_v29  ;;  %v4926_v18 = vpop.eup %4925  ;;  %v4015_v25 = vld [vmem:[#allocation4 + $0x15c] sm:$0xf0] }
 0x1bc   : > { %2297 = vmatpush.bf16.msra.mxu2 %v3898_v5  ;;  %2310 = vmatpush.bf16.msra.mxu3 %v4058_v32  ;;  %v1662_v26 = vadd.f32 1.0, %v4926_v18  ;;  %v4018_v13 = vor.u32 %v4694_v21, %v4015_v25  ;;  %v3942_v5 = vor.u32 %v4677_v2, %v3941_v1  ;;  %v4672_v32 = vld [vmem:[#allocation4 + $0x98] sm:$0xf0]  ;;  %v4662_v21 = vld [vmem:[#allocation4 + $0x48] sm:$0xf0] }
 0x1bd   : > { %v1659_v45 = vmul.f32 0.5, %v1658_v40  ;;  %v1586_v48 = vpop.f32.mrf.mxu2  ;;  %v1599_v47 = vpop.f32.mrf.mxu3  ;;  %v3842_v40 = vld [vmem:[%s5293_s14 + $0x10] sm:$0xff]  ;;  %v3922_v9 = vor.u32 %v4672_v32, %v3921_v7  ;;  %v3882_v25 = vor.u32 %v4662_v21, %v3881_v20  ;;  %v4387_v1 = vld [vmem:[#allocation4 + $0x1b8] sm:$0xf]  ;;  %v4798_v20 = vld [vmem:[#allocation4 + $0x20c] sm:$0xf] }
 0x1be   : > { %v1587_v51 = vadd.f32 %v1586_v48, %v1094_v22  ;;  %v1663_v33 = vmul.f32 0.5, %v1662_v26  ;;  %v4732_v48 = vld [vmem:[#allocation4 + $0x278] sm:$0xf0]  ;;  %v4803_v32 = vld [vmem:[#allocation4 + $0x234] sm:$0xf] }
 0x1bf   : > { %v1664_v56 = vmul.f32 %v1659_v45, %v1626_v46  ;;  %v4692_v45 = vld [vmem:[#allocation4 + $0x138] sm:$0xf0]  ;;  %v4161_v46 = vld [vmem:[#allocation4 + $0x268] sm:$0xf]  ;;  %v4429_v21 = vld [vmem:[#allocation4 + $0x21c] sm:$0xf0] }
 0x1c0   : > { %v1600_v61 = vadd.f32 %v1599_v47, %v1587_v51  ;;  %v1614_v62 = vpop.f32.mrf.mxu0  ;;  %v1627_v63 = vpop.f32.mrf.mxu1  ;;  %2298 = vmatpush.bf16.msra.mxu2 %v3878_v15  ;;  %2311 = vmatpush.bf16.msra.mxu3 %v4038_v17  ;;  %v1667_v37 = vsub.f32 1.0, %v1663_v33  ;;  %v4002_v53 = vor.u32 %v4692_v45, %v4001_v14  ;;  %v4162_v54 = vor.u32 %v4732_v48, %v4161_v46  ;;  %v4667_v15 = vld [vmem:[#allocation4 + $0x70] sm:$0xf0]  ;;  %v4805_v14 = vld [vmem:[#allocation4 + $0x240] sm:$0xf0] }
 0x1c1   : > { %v4722_v62 = vld [vmem:[#allocation4 + $0x228] sm:$0xf0]  ;;  %v3962_v63 = vor.u32 %v4682_v60, %v3961_v59  ;;  %v4707_v17 = vld [vmem:[#allocation4 + $0x1b0] sm:$0xf0]  ;;  %v3902_v18 = vor.u32 %v4667_v15, %v3901_v12  ;;  %v4267_v46 = vld [vmem:[#allocation4 + $0xc8] sm:$0xf] }
 0x1c2   : > { %v1665_v4 = vadd.f32 %v1664_v56, %v1600_v61  ;;  %v4727_v56 = vld [vmem:[#allocation4 + $0x250] sm:$0xf0]  ;;  %v4121_v61 = vld [vmem:[#allocation4 + $0x218] sm:$0xf]  ;;  %v4062_v19 = vor.u32 %v4707_v17, %v4061_v16  ;;  %v4760_v48 = vld [vmem:[#allocation4 + $0xd8] sm:$0xf0] }
 0x1c3   : > { %v4122_v0 = vor.u32 %v4722_v62, %v4121_v61  ;;  %v4808_v60 = vld [vmem:[#allocation4 + $0x25c] sm:$0xf]  ;;  %v4469_v61 = vld [vmem:[#allocation4 + $0x26c] sm:$0xf0]  ;;  %v4785_v16 = vld [vmem:[#allocation4 + $0x1a0] sm:$0xf0] }
 0x1c4   : > { %4927 = vtanh.f32 %v1665_v4  ;;  %2299 = vmatpush.bf16.msra.mxu2 %v3858_v24  ;;  %2312 = vmatpush.bf16.msra.mxu3 %v4018_v13  ;;  %v4717_v4 = vld [vmem:[#allocation4 + $0x200] sm:$0xf0]  ;;  %v4702_v24 = vld [vmem:[#allocation4 + $0x188] sm:$0xf0]  ;;  %v4472_v62 = vor.u32 %v4808_v60, %v4469_v61  ;;  %v4367_v12 = vld [vmem:[#allocation4 + $0x190] sm:$0xf] }
 0x1c5   : > { %v1588_v8 = vpop.f32.mrf.mxu2  ;;  %v1601_v34 = vpop.f32.mrf.mxu3  ;;  %v4102_v6 = vor.u32 %v4717_v4, %v4101_v3  ;;  %v4657_v13 = vld [vmem:[#allocation4 + $0x20] sm:$0xf0]  ;;  %v4790_v3 = vld [vmem:[#allocation4 + $0x1c8] sm:$0xf0]  ;;  %v4763_v4 = vld [vmem:[#allocation4 + $0xf4] sm:$0xf] }
 0x1c6   : > { %v4081_v8 = vld [vmem:[#allocation4 + $0x1c8] sm:$0xf]  ;;  %v4712_v34 = vld [vmem:[#allocation4 + $0x1d8] sm:$0xf0]  ;;  %v4758_v17 = vld [vmem:[#allocation4 + $0xcc] sm:$0xf] }
 0x1c7   : > { %v4082_v11 = vor.u32 %v4712_v34, %v4081_v8  ;;  %v4449_v8 = vld [vmem:[#allocation4 + $0x244] sm:$0xf0] }
 0x1c8   : > { %v4452_v34 = vor.u32 %v4803_v32, %v4449_v8  ;;  %v4369_v61 = vld [vmem:[#allocation4 + $0x1a4] sm:$0xf0]  ;;  %v4189_v32 = vld [vmem:[#allocation4 + $0x3c] sm:$0xf0] }
 0x1ca   : > { %v4928_v23 = vpop.eup %4927 }
 0x1cb   : > { %v1668_v29 = vsub.f32 %v4928_v23, %v5341_v52  ;;  %v4041_v23 = vld [vmem:[#allocation4 + $0x178] sm:$0xf] }
 0x1cc   : > { %v4042_v26 = vor.u32 %v4702_v24, %v4041_v23  ;;  %v4432_v24 = vor.u32 %v4798_v20, %v4429_v21 }
 0x1cd   : > { %v1669_v22 = vmul.f32 %v1668_v29, %v5337_v41  ;;  %v4021_v29 = vld [vmem:[#allocation4 + $0x150] sm:$0xf] }
 0x1ce   : > { %v1638_v30 = vpop.f32.mrf.mxu2  ;;  %v1651_v31 = vpop.f32.mrf.mxu3 }
 0x1cf   : > { %v1639_v35 = vadd.f32 %v1638_v30, %v1096_v28  ;;  %v3861_v28 = vld [vmem:[#allocation4 + $0x10] sm:$0xf]  ;;  %v4697_v30 = vld [vmem:[#allocation4 + $0x160] sm:$0xf0] }
 0x1d0   : > { %v4022_v33 = vor.u32 %v4697_v30, %v4021_v29  ;;  %v4780_v29 = vld [vmem:[#allocation4 + $0x178] sm:$0xf0]  ;;  %v4753_v30 = vld [vmem:[#allocation4 + $0xa4] sm:$0xf] }
 0x1d1   : > { %v1652_v36 = vadd.f32 %v1651_v31, %v1639_v35  ;;  %v3862_v31 = vor.u32 %v4657_v13, %v3861_v28  ;;  %v4307_v35 = vld [vmem:[#allocation4 + $0x118] sm:$0xf]  ;;  %v4347_v28 = vld [vmem:[#allocation4 + $0x168] sm:$0xf] }
 0x1d3   : > { %v1670_v38 = vadd.f32 %v1669_v22, %v1652_v36  ;;  %v4770_v36 = vld [vmem:[#allocation4 + $0x128] sm:$0xf0]  ;;  %v4467_v22 = vld [vmem:[#allocation4 + $0x258] sm:$0xf] }
 0x1d5   : > { %v1671_v39 = vmul.f32 %v1670_v38, %v1667_v37  ;;  %v4308_v37 = vor.u32 %v4770_v36, %v4307_v35  ;;  %v4810_v38 = vld [vmem:[#allocation4 + $0x268] sm:$0xf0]  ;;  %v4793_v36 = vld [vmem:[#allocation4 + $0x1e4] sm:$0xf] }
 0x1d6   : > { %v1640_v42 = vpop.f32.mrf.mxu2  ;;  %v1653_v10 = vpop.f32.mrf.mxu3 }
 0x1d7   : > { %v5377_v43 = vadd.f32 %v1671_v39, %v5341_v52  ;;  %v4141_v52 = vld [vmem:[#allocation4 + $0x240] sm:$0xf]  ;;  %v4468_v39 = vor.u32 %v4810_v38, %v4467_v22  ;;  %v4765_v42 = vld [vmem:[#allocation4 + $0x100] sm:$0xf0]  ;;  %v4447_v10 = vld [vmem:[#allocation4 + $0x230] sm:$0xf] }
 0x1d8   : > { %v4142_v58 = vor.u32 %v4727_v56, %v4141_v52  ;;  %v4448_v45 = vor.u32 %v4805_v14, %v4447_v10  ;;  %v4795_v52 = vld [vmem:[#allocation4 + $0x1f0] sm:$0xf0]  ;;  %v4768_v56 = vld [vmem:[#allocation4 + $0x11c] sm:$0xf]  ;;  %v4409_v22 = vld [vmem:[#allocation4 + $0x1f4] sm:$0xf0] }
 0x1d9   : > { %3841 = vst [vmem:[%s5303_s1 + $0x8] sm:$0xff] %v5377_v43  ;;  %v4822_v44 = vpack.c.bf16 %v3842_v40, %v5377_v43  ;;  %v4287_v40 = vld [vmem:[#allocation4 + $0xf0] sm:$0xf]  ;;  %v4412_v38 = vor.u32 %v4793_v36, %v4409_v22  ;;  %v4748_v14 = vld [vmem:[#allocation4 + $0x7c] sm:$0xf] }
 0x1da   : > { %v4796_v36 = vld [vmem:[#allocation4 + $0x1f8] sm:$0xf0] }
 0x1db   : > { %v1792_v47 = vunpack.c.l.b16 %v4822_v44  ;;  %v1793_v49 = vunpack.c.h.b16 %v4822_v44  ;;  %v4288_v44 = vor.u32 %v4765_v42, %v4287_v40  ;;  %v4735_v40 = vld [vmem:[#allocation4 + $0x10] sm:$0xf0]  ;;  %v4327_v42 = vld [vmem:[#allocation4 + $0x140] sm:$0xf] }
 0x1dd   : > { %v5382_v50 = vpack.c.b16 %v1792_v47, %v1792_v47  ;;  %v5384_v51 = vpack.c.b16 %v1793_v49, %v1793_v49  ;;  %v4427_v47 = vld [vmem:[#allocation4 + $0x208] sm:$0xf]  ;;  %v4268_v49 = vor.u32 %v4760_v48, %v4267_v46 }
 0x1df   : > { %2222 = vmatmul.bf16.vlgmr.msrb.gmra.mxu0 %v5382_v50  ;;  %2235 = vmatmul.bf16.vlgmr.msrb.gmra.mxu1 %v5384_v51 }
 0x1e0   : > { %2248 = vmatmul.bf16.vlgmr.msrb.gmra.mxu2 %v5382_v50  ;;  %2261 = vmatmul.bf16.vlgmr.msrb.gmra.mxu3 %v5384_v51 }
 0x1e1   : > { %2318 = vmatpush.bf16.msrb.mxu0 %v4002_v53  ;;  %2331 = vmatpush.bf16.msrb.mxu1 %v4162_v54  ;;  %v4247_v53 = vld [vmem:[#allocation4 + $0xa0] sm:$0xf]  ;;  %v4755_v54 = vld [vmem:[#allocation4 + $0xb0] sm:$0xf0] }
 0x1e2   : > { %2903 = vmatpush.bf16.msrb.mxu2 %v4308_v37  ;;  %2916 = vmatpush.bf16.msrb.mxu3 %v4468_v39  ;;  %v4248_v55 = vor.u32 %v4755_v54, %v4247_v53  ;;  %v5396_v37 = vld [vmem:[#allocation12] sm:$0x1f]  ;;  %v4167_v39 = vld [vmem:[#allocation4] sm:$0xf]  ;;  %v4771_v53 = vld [vmem:[#allocation4 + $0x130] sm:$0xf0] }
 0x1e3   : > { %v4168_v10 = vor.u32 %v4735_v40, %v4167_v39  ;;  %v4475_v54 = vld [vmem:[#allocation4 + $0x260] sm:$0xf] }
 0x1e5   : > { %2319 = vmatpush.bf16.msrb.mxu0 %v3982_v57  ;;  %2332 = vmatpush.bf16.msrb.mxu1 %v4142_v58  ;;  %v4309_v57 = vld [vmem:[#allocation4 + $0x12c] sm:$0xf0]  ;;  %v4408_v58 = vor.u32 %v4795_v52, %v4407_v27  ;;  %v4811_v27 = vld [vmem:[#allocation4 + $0x270] sm:$0xf0] }
 0x1e6   : > { %2904 = vmatpush.bf16.msrb.mxu2 %v4288_v44  ;;  %2917 = vmatpush.bf16.msrb.mxu3 %v4448_v45  ;;  %v4312_v59 = vor.u32 %v4768_v56, %v4309_v57  ;;  %v4775_v44 = vld [vmem:[#allocation4 + $0x150] sm:$0xf0]  ;;  %v4229_v45 = vld [vmem:[#allocation4 + $0x8c] sm:$0xf0]  ;;  %v4476_v56 = vor.u32 %v4811_v27, %v4475_v54  ;;  %v4764_v27 = vld [vmem:[#allocation4 + $0xfc] sm:$0xf] }
 0x1e7   : > { %v4328_v46 = vor.u32 %v4775_v44, %v4327_v42  ;;  %v4232_v48 = vor.u32 %v4748_v14, %v4229_v45  ;;  %v4743_v57 = vld [vmem:[#allocation4 + $0x54] sm:$0xf]  ;;  %v4769_v42 = vld [vmem:[#allocation4 + $0x124] sm:$0xf] }
 0x1e8   : > { %v4809_v44 = vld [vmem:[#allocation4 + $0x264] sm:$0xf]  ;;  %v4791_v54 = vld [vmem:[#allocation4 + $0x1d0] sm:$0xf0] }
 0x1e9   : > { %2320 = vmatpush.bf16.msrb.mxu0 %v3962_v63  ;;  %2333 = vmatpush.bf16.msrb.mxu1 %v4122_v0  ;;  %v4227_v63 = vld [vmem:[#allocation4 + $0x78] sm:$0xf]  ;;  %v4750_v0 = vld [vmem:[#allocation4 + $0x88] sm:$0xf0] }
 0x1ea   : > { %2905 = vmatpush.bf16.msrb.mxu2 %v4268_v49  ;;  %v4228_v2 = vor.u32 %v4750_v0, %v4227_v63  ;;  %v4389_v49 = vld [vmem:[#allocation4 + $0x1cc] sm:$0xf0]  ;;  %v4766_v63 = vld [vmem:[#allocation4 + $0x108] sm:$0xf0] }
 0x1ed   : > { %2321 = vmatpush.bf16.msrb.mxu0 %v3942_v5  ;;  %2334 = vmatpush.bf16.msrb.mxu1 %v4102_v6  ;;  %v4289_v5 = vld [vmem:[#allocation4 + $0x104] sm:$0xf0]  ;;  %v4388_v6 = vor.u32 %v4790_v3, %v4387_v1  ;;  %v4806_v3 = vld [vmem:[#allocation4 + $0x248] sm:$0xf0] }
 0x1ee   : > { %2906 = vmatpush.bf16.msrb.mxu2 %v4248_v55  ;;  %v4292_v7 = vor.u32 %v4763_v4, %v4289_v5  ;;  %v1781_v55 = vperm.slane %v5396_v37, 0 }
 0x1ef   : > { %2274 = vmatmul.bf16.vlgmr.msra.gmra.mxu0 %v5382_v50  ;;  %2287 = vmatmul.bf16.vlgmr.msra.gmra.mxu1 %v5384_v51 }
 0x1f0   : > { %2300 = vmatmul.bf16.vlgmr.msra.gmra.mxu2 %v5382_v50  ;;  %2313 = vmatmul.bf16.vlgmr.msra.gmra.mxu3 %v5384_v51 }
 0x1f1   : > { %2322 = vmatpush.bf16.msrb.mxu0 %v3922_v9  ;;  %2335 = vmatpush.bf16.msrb.mxu1 %v4082_v11  ;;  %v4207_v9 = vld [vmem:[#allocation4 + $0x50] sm:$0xf]  ;;  %v4745_v11 = vld [vmem:[#allocation4 + $0x60] sm:$0xf0] }
 0x1f2   : > { %2907 = vmatpush.bf16.msrb.mxu2 %v4228_v2  ;;  %v4208_v15 = vor.u32 %v4745_v11, %v4207_v9  ;;  %v4455_v2 = vld [vmem:[#allocation4 + $0x238] sm:$0xf]  ;;  %v4778_v9 = vld [vmem:[#allocation4 + $0x16c] sm:$0xf]  ;;  %v4349_v11 = vld [vmem:[#allocation4 + $0x17c] sm:$0xf0] }
 0x1f3   : > { %v4456_v4 = vor.u32 %v4806_v3, %v4455_v2  ;;  %v4759_v2 = vld [vmem:[#allocation4 + $0xd4] sm:$0xf] }
 0x1f5   : > { %2323 = vmatpush.bf16.msrb.mxu0 %v3902_v18  ;;  %2336 = vmatpush.bf16.msrb.mxu1 %v4062_v19  ;;  %v4368_v18 = vor.u32 %v4785_v16, %v4367_v12  ;;  %v4269_v19 = vld [vmem:[#allocation4 + $0xdc] sm:$0xf0]  ;;  %v4275_v12 = vld [vmem:[#allocation4 + $0xd0] sm:$0xf]  ;;  %v4761_v16 = vld [vmem:[#allocation4 + $0xe0] sm:$0xf0] }
 0x1f6   : > { %2908 = vmatpush.bf16.msrb.mxu2 %v4208_v15  ;;  %v4272_v23 = vor.u32 %v4758_v17, %v4269_v19  ;;  %v4352_v15 = vor.u32 %v4778_v9, %v4349_v11  ;;  %v4435_v17 = vld [vmem:[#allocation4 + $0x210] sm:$0xf]  ;;  %v4276_v20 = vor.u32 %v4761_v16, %v4275_v12 }
 0x1f7   : > { %v4195_v12 = vld [vmem:[#allocation4 + $0x30] sm:$0xf] }
 0x1f9   : > { %2324 = vmatpush.bf16.msrb.mxu0 %v3882_v25  ;;  %2337 = vmatpush.bf16.msrb.mxu1 %v4042_v26  ;;  %v4187_v25 = vld [vmem:[#allocation4 + $0x28] sm:$0xf]  ;;  %v4740_v26 = vld [vmem:[#allocation4 + $0x38] sm:$0xf0] }
 0x1fa   : > { %v4188_v13 = vor.u32 %v4740_v26, %v4187_v25  ;;  %v4773_v25 = vld [vmem:[#allocation4 + $0x144] sm:$0xf] }
 0x1fc   : > { %2909 = vmatpush.bf16.msrb.mxu2 %v4188_v13 }
 0x1fd   : > { %2325 = vmatpush.bf16.msrb.mxu0 %v3862_v31  ;;  %2338 = vmatpush.bf16.msrb.mxu1 %v4022_v33  ;;  %v4249_v31 = vld [vmem:[#allocation4 + $0xb4] sm:$0xf0]  ;;  %v4348_v33 = vor.u32 %v4780_v29, %v4347_v28  ;;  %v1782_v28 = vperm.slane %v5396_v37, 1 }
 0x1fe   : > { %v4252_v35 = vor.u32 %v4753_v30, %v4249_v31  ;;  %v4329_v29 = vld [vmem:[#allocation4 + $0x154] sm:$0xf0]  ;;  %v4255_v30 = vld [vmem:[#allocation4 + $0xa8] sm:$0xf] }
 0x1ff   : > { %v4332_v31 = vor.u32 %v4773_v25, %v4329_v29  ;;  %v4794_v25 = vld [vmem:[#allocation4 + $0x1ec] sm:$0xf]  ;;  %v1783_v29 = vperm.slane %v5396_v37, 2 }
 0x200   : > { %2326 = vmatmul.bf16.vlgmr.msrb.gmra.mxu0 %v5382_v50  ;;  %2339 = vmatmul.bf16.vlgmr.msrb.gmra.mxu1 %v5384_v51  ;;  %v4800_v50 = vld [vmem:[#allocation4 + $0x218] sm:$0xf0] }
 0x201   : > { %v4428_v51 = vor.u32 %v4800_v50, %v4427_v47  ;;  %2929 = vmatpush.bf16.msra.mxu0 %v4312_v59  ;;  %2942 = vmatpush.bf16.msra.mxu1 %v4472_v62  ;;  %v4788_v47 = vld [vmem:[#allocation4 + $0x1bc] sm:$0xf]  ;;  %v4315_v50 = vld [vmem:[#allocation4 + $0x120] sm:$0xf]  ;;  %v4783_v59 = vld [vmem:[#allocation4 + $0x194] sm:$0xf] }
 0x202   : > { %2910 = vmatpush.bf16.msrb.mxu2 %v4168_v10  ;;  %v4316_v52 = vor.u32 %v4771_v53, %v4315_v50  ;;  %v4295_v62 = vld [vmem:[#allocation4 + $0xf8] sm:$0xf]  ;;  %v4372_v0 = vor.u32 %v4783_v59, %v4369_v61  ;;  %v4395_v53 = vld [vmem:[#allocation4 + $0x1c0] sm:$0xf]  ;;  %v4746_v61 = vld [vmem:[#allocation4 + $0x68] sm:$0xf0] }
 0x203   : > { %2918 = vmatpush.bf16.msrb.mxu3 %v4428_v51  ;;  %v4392_v51 = vor.u32 %v4788_v47, %v4389_v49  ;;  %v4296_v1 = vor.u32 %v4766_v63, %v4295_v62  ;;  %v4317_v10 = vld [vmem:[#allocation4 + $0x134] sm:$0xf0]  ;;  %v4235_v47 = vld [vmem:[#allocation4 + $0x80] sm:$0xf]  ;;  %v4751_v49 = vld [vmem:[#allocation4 + $0x90] sm:$0xf0] }
 0x205   : > { %2930 = vmatpush.bf16.msra.mxu0 %v4292_v7  ;;  %2943 = vmatpush.bf16.msra.mxu1 %v4452_v34  ;;  %v4738_v7 = vld [vmem:[#allocation4 + $0x2c] sm:$0xf] }
 0x206   : > { %2955 = vmatpush.bf16.msra.mxu2 %v4316_v52  ;;  %v4192_v34 = vor.u32 %v4738_v7, %v4189_v32  ;;  %v4297_v52 = vld [vmem:[#allocation4 + $0x10c] sm:$0xf0] }
 0x207   : > { %2919 = vmatpush.bf16.msrb.mxu3 %v4408_v58  ;;  %v4209_v58 = vld [vmem:[#allocation4 + $0x64] sm:$0xf0] }
 0x208   : > { %v4212_v60 = vor.u32 %v4743_v57, %v4209_v58  ;;  %v4457_v57 = vld [vmem:[#allocation4 + $0x24c] sm:$0xf0]  ;;  %v4300_v58 = vor.u32 %v4764_v27, %v4297_v52 }
 0x209   : > { %2931 = vmatpush.bf16.msra.mxu0 %v4272_v23  ;;  %2944 = vmatpush.bf16.msra.mxu1 %v4432_v24  ;;  %v4733_v23 = vld [vmem:[#allocation4 + $0x4] sm:$0xf]  ;;  %v4169_v24 = vld [vmem:[#allocation4 + $0x14] sm:$0xf0]  ;;  %v4217_v52 = vld [vmem:[#allocation4 + $0x6c] sm:$0xf0] }
 0x20a   : > { %2956 = vmatpush.bf16.msra.mxu2 %v4296_v1  ;;  %v4172_v13 = vor.u32 %v4733_v23, %v4169_v24  ;;  %v4786_v1 = vld [vmem:[#allocation4 + $0x1a8] sm:$0xf0]  ;;  %v4257_v24 = vld [vmem:[#allocation4 + $0xbc] sm:$0xf0] }
 0x20b   : > { %2920 = vmatpush.bf16.msrb.mxu3 %v4388_v6 }
 0x20d   : > { %2932 = vmatpush.bf16.msra.mxu0 %v4252_v35  ;;  %2945 = vmatpush.bf16.msra.mxu1 %v4412_v38  ;;  %v4415_v35 = vld [vmem:[#allocation4 + $0x1e8] sm:$0xf] }
 0x20e   : > { %2957 = vmatpush.bf16.msra.mxu2 %v4276_v20  ;;  %v4416_v40 = vor.u32 %v4796_v36, %v4415_v35  ;;  %v4754_v20 = vld [vmem:[#allocation4 + $0xac] sm:$0xf]  ;;  %v4175_v35 = vld [vmem:[#allocation4 + $0x8] sm:$0xf]  ;;  %v4736_v36 = vld [vmem:[#allocation4 + $0x18] sm:$0xf0] }
 0x20f   : > { %2921 = vmatpush.bf16.msrb.mxu3 %v4368_v18  ;;  %v4801_v18 = vld [vmem:[#allocation4 + $0x220] sm:$0xf0] }
 0x210   : > { %v4436_v21 = vor.u32 %v4801_v18, %v4435_v17  ;;  %v4355_v18 = vld [vmem:[#allocation4 + $0x170] sm:$0xf] }
 0x211   : > { %2933 = vmatpush.bf16.msra.mxu0 %v4232_v48  ;;  %2946 = vmatpush.bf16.msra.mxu1 %v4392_v51  ;;  %v4477_v48 = vld [vmem:[#allocation4 + $0x274] sm:$0xf0]  ;;  %v4236_v51 = vor.u32 %v4751_v49, %v4235_v47 }
 0x212   : > { %v4480_v50 = vor.u32 %v4809_v44, %v4477_v48 }
 0x213   : > { %2922 = vmatpush.bf16.msrb.mxu3 %v4348_v33  ;;  %v4756_v33 = vld [vmem:[#allocation4 + $0xb8] sm:$0xf0] }
 0x214   : > { %v4256_v39 = vor.u32 %v4756_v33, %v4255_v30  ;;  %v1784_v30 = vperm.slane %v5396_v37, 3 }
 0x215   : > { %2934 = vmatpush.bf16.msra.mxu0 %v4212_v60  ;;  %2947 = vmatpush.bf16.msra.mxu1 %v4372_v0  ;;  %v4215_v60 = vld [vmem:[#allocation4 + $0x58] sm:$0xf] }
 0x216   : > { %2958 = vmatpush.bf16.msra.mxu2 %v4256_v39  ;;  %v4216_v63 = vor.u32 %v4746_v61, %v4215_v60  ;;  %v4375_v0 = vld [vmem:[#allocation4 + $0x198] sm:$0xf]  ;;  %v4776_v39 = vld [vmem:[#allocation4 + $0x158] sm:$0xf0] }
 0x217   : > { %2923 = vmatpush.bf16.msrb.mxu3 %v4328_v46  ;;  %v4320_v46 = vor.u32 %v4769_v42, %v4317_v10  ;;  %v4376_v3 = vor.u32 %v4786_v1, %v4375_v0  ;;  %v4779_v0 = vld [vmem:[#allocation4 + $0x174] sm:$0xf] }
 0x219   : > { %2935 = vmatpush.bf16.msra.mxu0 %v4192_v34  ;;  %2948 = vmatpush.bf16.msra.mxu1 %v4352_v15  ;;  %v4741_v15 = vld [vmem:[#allocation4 + $0x40] sm:$0xf0] }
 0x21a   : > { %2959 = vmatpush.bf16.msra.mxu2 %v4236_v51  ;;  %v4196_v17 = vor.u32 %v4741_v15, %v4195_v12  ;;  %v4397_v51 = vld [vmem:[#allocation4 + $0x1d4] sm:$0xf0]  ;;  %v4774_v12 = vld [vmem:[#allocation4 + $0x14c] sm:$0xf] }
 0x21b   : > { %2968 = vmatpush.bf16.msra.mxu3 %v4476_v56  ;;  %v4804_v56 = vld [vmem:[#allocation4 + $0x23c] sm:$0xf] }
 0x21c   : > { %v4460_v59 = vor.u32 %v4804_v56, %v4457_v57  ;;  %v4784_v56 = vld [vmem:[#allocation4 + $0x19c] sm:$0xf] }
 0x21d   : > { %2936 = vmatpush.bf16.msra.mxu0 %v4172_v13  ;;  %2949 = vmatpush.bf16.msra.mxu1 %v4332_v31 }
 0x21e   : > { %2960 = vmatpush.bf16.msra.mxu2 %v4216_v63  ;;  %v4197_v63 = vld [vmem:[#allocation4 + $0x44] sm:$0xf0] }
 0x21f   : > { %2969 = vmatpush.bf16.msra.mxu3 %v4456_v4  ;;  %v4277_v4 = vld [vmem:[#allocation4 + $0xe4] sm:$0xf0] }
 0x220   : > { %v4280_v32 = vor.u32 %v4759_v2, %v4277_v4 }
 0x221   : > { %2981 = vmatpush.bf16.msrb.mxu0 %v4320_v46  ;;  %2994 = vmatpush.bf16.msrb.mxu1 %v4480_v50 }
 0x222   : > { %2961 = vmatpush.bf16.msra.mxu2 %v4196_v17 }
 0x223   : > { %2970 = vmatpush.bf16.msra.mxu3 %v4436_v21 }
 0x225   : > { %2982 = vmatpush.bf16.msrb.mxu0 %v4300_v58  ;;  %2995 = vmatpush.bf16.msrb.mxu1 %v4460_v59  ;;  %v4377_v58 = vld [vmem:[#allocation4 + $0x1ac] sm:$0xf0] }
 0x226   : > { %v4380_v61 = vor.u32 %v4784_v56, %v4377_v58  ;;  %v4757_v56 = vld [vmem:[#allocation4 + $0xc0] sm:$0xf0] }
 0x227   : > { %2971 = vmatpush.bf16.msra.mxu3 %v4416_v40  ;;  %v4749_v40 = vld [vmem:[#allocation4 + $0x84] sm:$0xf] }
 0x228   : > { %v4797_v58 = vld [vmem:[#allocation4 + $0x200] sm:$0xf0] }
 0x229   : > { %2983 = vmatpush.bf16.msrb.mxu0 %v4280_v32  ;;  %v1785_v32 = vperm.slane %v5396_v37, 4 }
 0x25c   : > { %v2223_v5 = vpop.f32.mrf.mxu0  ;;  %v2236_v6 = vpop.f32.mrf.mxu1 }
 0x25d   : > { %v2224_v8 = vadd.f32 %v2223_v5, %v1781_v55  ;;  %v4396_v55 = vor.u32 %v4791_v54, %v4395_v53  ;;  %v4799_v5 = vld [vmem:[#allocation4 + $0x214] sm:$0xf] }
 0x25f   : > { %v2237_v19 = vadd.f32 %v2236_v6, %v2224_v8  ;;  %2972 = vmatpush.bf16.msra.mxu3 %v4396_v55  ;;  %v4437_v8 = vld [vmem:[#allocation4 + $0x224] sm:$0xf0]  ;;  %v4744_v55 = vld [vmem:[#allocation4 + $0x5c] sm:$0xf] }
 0x260   : > { %v4440_v11 = vor.u32 %v4799_v5, %v4437_v8  ;;  %v4220_v57 = vor.u32 %v4744_v55, %v4217_v52  ;;  %v4263_v52 = vld [vmem:[#allocation4 + $0xb0] sm:$0xf] }
 0x261   : > { %v2345_v26 = vmul.f32 0.5, %v2237_v19  ;;  %v4781_v19 = vld [vmem:[#allocation4 + $0x180] sm:$0xf0] }
 0x262   : > { %v4356_v23 = vor.u32 %v4781_v19, %v4355_v18  ;;  %2996 = vmatpush.bf16.msrb.mxu1 %v4440_v11  ;;  %v4177_v11 = vld [vmem:[#allocation4 + $0x1c] sm:$0xf0] }
 0x263   : > { %v2249_v22 = vpop.f32.mrf.mxu2  ;;  %v2262_v38 = vpop.f32.mrf.mxu3  ;;  %4929 = vtanh.f32 %v2345_v26  ;;  %2973 = vmatpush.bf16.msra.mxu3 %v4376_v3  ;;  %v4417_v26 = vld [vmem:[#allocation4 + $0x1fc] sm:$0xf0]  ;;  %v4357_v3 = vld [vmem:[#allocation4 + $0x184] sm:$0xf0] }
 0x264   : > { %v2225_v14 = vpop.f32.mrf.mxu0  ;;  %v2238_v45 = vpop.f32.mrf.mxu1  ;;  %v2250_v62 = vadd.f32 %v2249_v22, %v1782_v28  ;;  %v4260_v28 = vor.u32 %v4754_v20, %v4257_v24  ;;  %v4420_v13 = vor.u32 %v4794_v25, %v4417_v26  ;;  %v4176_v22 = vor.u32 %v4736_v36, %v4175_v35  ;;  %v4323_v35 = vld [vmem:[#allocation4 + $0x128] sm:$0xf]  ;;  %v4772_v36 = vld [vmem:[#allocation4 + $0x138] sm:$0xf0] }
 0x265   : > { %v4237_v14 = vld [vmem:[#allocation4 + $0x94] sm:$0xf0]  ;;  %v4789_v45 = vld [vmem:[#allocation4 + $0x1c4] sm:$0xf] }
 0x266   : > { %v2263_v16 = vadd.f32 %v2262_v38, %v2250_v62  ;;  %2984 = vmatpush.bf16.msrb.mxu0 %v4260_v28  ;;  %v4335_v38 = vld [vmem:[#allocation4 + $0x148] sm:$0xf]  ;;  %2997 = vmatpush.bf16.msrb.mxu1 %v4420_v13  ;;  %v4240_v50 = vor.u32 %v4749_v40, %v4237_v14  ;;  %v4400_v54 = vor.u32 %v4789_v45, %v4397_v51  ;;  %v4739_v62 = vld [vmem:[#allocation4 + $0x34] sm:$0xf]  ;;  %v4303_v45 = vld [vmem:[#allocation4 + $0x100] sm:$0xf] }
 0x267   : > { %2974 = vmatpush.bf16.msra.mxu3 %v4356_v23  ;;  %v4336_v44 = vor.u32 %v4776_v39, %v4335_v38  ;;  %2962 = vmatpush.bf16.msra.mxu2 %v4176_v22  ;;  %v4200_v2 = vor.u32 %v4739_v62, %v4197_v63  ;;  %v4483_v22 = vld [vmem:[#allocation4 + $0x268] sm:$0xf]  ;;  %v4812_v38 = vld [vmem:[#allocation4 + $0x278] sm:$0xf0]  ;;  %v4762_v51 = vld [vmem:[#allocation4 + $0xe8] sm:$0xf0] }
 0x268   : > { %v2349_v33 = vmul.f32 0.5, %v2263_v16  ;;  %v4337_v16 = vld [vmem:[#allocation4 + $0x15c] sm:$0xf0]  ;;  %v4484_v14 = vor.u32 %v4812_v38, %v4483_v22  ;;  %v4752_v62 = vld [vmem:[#allocation4 + $0x98] sm:$0xf0] }
 0x269   : > { %v4930_v21 = vpop.eup %4929  ;;  %v4340_v18 = vor.u32 %v4774_v12, %v4337_v16  ;;  %v4403_v63 = vld [vmem:[#allocation4 + $0x1c8] sm:$0xf]  ;;  %v4183_v16 = vld [vmem:[#allocation4 + $0x10] sm:$0xf] }
 0x26a   : > { %v2347_v31 = vadd.f32 1.0, %v4930_v21  ;;  %4931 = vtanh.f32 %v2349_v33  ;;  %2985 = vmatpush.bf16.msrb.mxu0 %v4240_v50  ;;  %2998 = vmatpush.bf16.msrb.mxu1 %v4400_v54  ;;  %v4283_v50 = vld [vmem:[#allocation4 + $0xd8] sm:$0xf]  ;;  %v4802_v54 = vld [vmem:[#allocation4 + $0x228] sm:$0xf0] }
 0x26b   : > { %v2251_v6 = vpop.f32.mrf.mxu2  ;;  %v2264_v7 = vpop.f32.mrf.mxu3  ;;  %2975 = vmatpush.bf16.msra.mxu3 %v4336_v44  ;;  %v4324_v44 = vor.u32 %v4772_v36, %v4323_v35 }
 0x26c   : > { %v2275_v34 = vpop.f32.mrf.mxu0  ;;  %v2288_v9 = vpop.f32.mrf.mxu1  ;;  %v2348_v53 = vmul.f32 0.5, %v2347_v31  ;;  %v4360_v6 = vor.u32 %v4779_v0, %v4357_v3  ;;  %v4792_v0 = vld [vmem:[#allocation4 + $0x1d8] sm:$0xf0]  ;;  %v4223_v3 = vld [vmem:[#allocation4 + $0x60] sm:$0xf] }
 0x26d   : > { %v2276_v46 = vadd.f32 %v2275_v34, %v1783_v29 }
 0x26e   : > { %2986 = vmatpush.bf16.msrb.mxu0 %v4220_v57  ;;  %2999 = vmatpush.bf16.msrb.mxu1 %v4380_v61  ;;  %v4423_v57 = vld [vmem:[#allocation4 + $0x1f0] sm:$0xf]  ;;  %v4243_v61 = vld [vmem:[#allocation4 + $0x88] sm:$0xf] }
 0x26f   : > { %v2289_v59 = vadd.f32 %v2288_v9, %v2276_v46  ;;  %v4734_v9 = vld [vmem:[#allocation4 + $0xc] sm:$0xf]  ;;  %v4463_v46 = vld [vmem:[#allocation4 + $0x240] sm:$0xf] }
 0x270   : > { %v4932_v7 = vpop.eup %4931  ;;  %v4180_v15 = vor.u32 %v4734_v9, %v4177_v11  ;;  %v4363_v9 = vld [vmem:[#allocation4 + $0x178] sm:$0xf]  ;;  %v4782_v11 = vld [vmem:[#allocation4 + $0x188] sm:$0xf0] }
 0x271   : > { %v2351_v17 = vadd.f32 1.0, %v4932_v7 }
 0x272   : > { %2987 = vmatpush.bf16.msrb.mxu0 %v4200_v2  ;;  %3000 = vmatpush.bf16.msrb.mxu1 %v4360_v6  ;;  %v4404_v2 = vor.u32 %v4792_v0, %v4403_v63  ;;  %v4787_v6 = vld [vmem:[#allocation4 + $0x1b0] sm:$0xf0] }
 0x273   : > { %v2301_v42 = vpop.f32.mrf.mxu2  ;;  %v2314_v10 = vpop.f32.mrf.mxu3  ;;  %v2352_v21 = vmul.f32 0.5, %v2351_v17  ;;  %v4737_v17 = vld [vmem:[#allocation4 + $0x20] sm:$0xf0] }
 0x274   : > { %v2302_v48 = vadd.f32 %v2301_v42, %v1784_v30  ;;  %v2277_v47 = vpop.f32.mrf.mxu0  ;;  %v2290_v49 = vpop.f32.mrf.mxu1  ;;  %v4164_v30 = vld [vmem:[%s5293_s14 + $0x18] sm:$0xff] }
 0x275   : > { %v2356_v28 = vsub.f32 1.0, %v2352_v21 }
 0x276   : > { %v2315_v27 = vadd.f32 %v2314_v10, %v2302_v48  ;;  %2988 = vmatpush.bf16.msrb.mxu0 %v4180_v15  ;;  %3001 = vmatpush.bf16.msrb.mxu1 %v4340_v18  ;;  %v4807_v48 = vld [vmem:[#allocation4 + $0x250] sm:$0xf0]  ;;  %v4364_v15 = vor.u32 %v4782_v11, %v4363_v9  ;;  %v4343_v18 = vld [vmem:[#allocation4 + $0x150] sm:$0xf] }
 0x277   : > { %v4464_v49 = vor.u32 %v4807_v48, %v4463_v46 }
 0x278   : > { %v2353_v60 = vmul.f32 %v2348_v53, %v2315_v27  ;;  %v4443_v53 = vld [vmem:[#allocation4 + $0x218] sm:$0xf]  ;;  %v4284_v27 = vor.u32 %v4762_v51, %v4283_v50 }
 0x279   : > { %v4444_v55 = vor.u32 %v4802_v54, %v4443_v53 }
 0x27a   : > { %v2354_v1 = vadd.f32 %v2353_v60, %v2289_v59  ;;  %v4264_v59 = vor.u32 %v4757_v56, %v4263_v52  ;;  %v4424_v60 = vor.u32 %v4797_v58, %v4423_v57 }
 0x27b   : > { %v2303_v4 = vpop.f32.mrf.mxu2  ;;  %v2316_v5 = vpop.f32.mrf.mxu3 }
 0x27c   : > { %4933 = vtanh.f32 %v2354_v1  ;;  %v4244_v1 = vor.u32 %v4752_v62, %v4243_v61  ;;  %v4747_v4 = vld [vmem:[#allocation4 + $0x70] sm:$0xf0]  ;;  %v4383_v5 = vld [vmem:[#allocation4 + $0x1a0] sm:$0xf] }
 0x27d   : > { %v2327_v8 = vpop.f32.mrf.mxu0  ;;  %v2340_v34 = vpop.f32.mrf.mxu1  ;;  %v4224_v7 = vor.u32 %v4747_v4, %v4223_v3 }
 0x27e   : > { %v2328_v19 = vadd.f32 %v2327_v8, %v1785_v32  ;;  %v4384_v32 = vor.u32 %v4787_v6, %v4383_v5  ;;  %v4203_v8 = vld [vmem:[#allocation4 + $0x38] sm:$0xf] }
 0x280   : > { %v2341_v37 = vadd.f32 %v2340_v34, %v2328_v19  ;;  %v4742_v34 = vld [vmem:[#allocation4 + $0x48] sm:$0xf0]  ;;  %v4777_v19 = vld [vmem:[#allocation4 + $0x160] sm:$0xf0] }
 0x281   : > { %v4204_v12 = vor.u32 %v4742_v34, %v4203_v8  ;;  %v4344_v21 = vor.u32 %v4777_v19, %v4343_v18 }
 0x282   : > { %v4934_v20 = vpop.eup %4933 }
 0x283   : > { %v2357_v23 = vsub.f32 %v4934_v20, %v5377_v43  ;;  %v4184_v20 = vor.u32 %v4737_v17, %v4183_v16 }
 0x285   : > { %v2358_v24 = vmul.f32 %v2357_v23, %v5337_v41  ;;  %v2329_v25 = vpop.f32.mrf.mxu0  ;;  %v2342_v26 = vpop.f32.mrf.mxu1 }
 0x287   : > { %v2359_v13 = vadd.f32 %v2358_v24, %v2341_v37  ;;  %v2468_v24 = vld [vmem:[#allocation12] sm:$0x1f] }
 0x288   : > { %v2470_v25 = vperm.slane %v2468_v24, 0  ;;  %v2471_v35 = vperm.slane %v2468_v24, 1  ;;  %v2474_v62 = vperm.slane %v2468_v24, 4 }
 0x289   : > { %v2360_v29 = vmul.f32 %v2359_v13, %v2356_v28 }
 0x28b   : > { %v5407_v31 = vadd.f32 %v2360_v29, %v5377_v43  ;;  %v4767_v43 = vld [vmem:[#allocation4 + $0x110] sm:$0xf0] }
 0x28c   : > { %v4304_v47 = vor.u32 %v4767_v43, %v4303_v45  ;;  %v2472_v43 = vperm.slane %v2468_v24, 2 }
 0x28d   : > { %4163 = vst [vmem:[%s5303_s1 + $0x10] sm:$0xff] %v5407_v31  ;;  %v4827_v33 = vpack.c.bf16 %v4164_v30, %v5407_v31 }
 0x28f   : > { %4828 = vst [vmem:[#allocation2] sm:$0xff] %v4827_v33   ;;  %v2481_v39 = vunpack.c.l.b16 %v4827_v33  ;;  %v2482_v40 = vunpack.c.h.b16 %v4827_v33 }
 0x291   : > { %v5412_v42 = vpack.c.b16 %v2481_v39, %v2481_v39  ;;  %v5414_v10 = vpack.c.b16 %v2482_v40, %v2482_v40  ;;  %v2473_v39 = vperm.slane %v2468_v24, 3 }
 0x293   : > { %2911 = vmatmul.bf16.vlgmr.msrb.gmra.mxu2 %v5412_v42  ;;  %2924 = vmatmul.bf16.vlgmr.msrb.gmra.mxu3 %v5414_v10 }
 0x294   : > { %2937 = vmatmul.bf16.vlgmr.msra.gmra.mxu0 %v5412_v42  ;;  %2950 = vmatmul.bf16.vlgmr.msra.gmra.mxu1 %v5414_v10 }
 0x295   : > { %3007 = vmatpush.bf16.msrb.mxu2 %v4324_v44  ;;  %3020 = vmatpush.bf16.msrb.mxu3 %v4484_v14 }
 0x299   : > { %3008 = vmatpush.bf16.msrb.mxu2 %v4304_v47  ;;  %3021 = vmatpush.bf16.msrb.mxu3 %v4464_v49 }
 0x29d   : > { %3009 = vmatpush.bf16.msrb.mxu2 %v4284_v27  ;;  %3022 = vmatpush.bf16.msrb.mxu3 %v4444_v55 }
 0x2a1   : > { %3010 = vmatpush.bf16.msrb.mxu2 %v4264_v59  ;;  %3023 = vmatpush.bf16.msrb.mxu3 %v4424_v60 }
 0x2a3   : > { %2963 = vmatmul.bf16.vlgmr.msra.gmra.mxu2 %v5412_v42  ;;  %2976 = vmatmul.bf16.vlgmr.msra.gmra.mxu3 %v5414_v10 }
 0x2a4   : > { %2989 = vmatmul.bf16.vlgmr.msrb.gmra.mxu0 %v5412_v42  ;;  %3002 = vmatmul.bf16.vlgmr.msrb.gmra.mxu1 %v5414_v10 }
 0x2a5   : > { %3011 = vmatpush.bf16.msrb.mxu2 %v4244_v1  ;;  %3024 = vmatpush.bf16.msrb.mxu3 %v4404_v2 }
 0x2a9   : > { %3012 = vmatpush.bf16.msrb.mxu2 %v4224_v7  ;;  %3025 = vmatpush.bf16.msrb.mxu3 %v4384_v32 }
 0x2ad   : > { %3013 = vmatpush.bf16.msrb.mxu2 %v4204_v12  ;;  %3026 = vmatpush.bf16.msrb.mxu3 %v4364_v15 }
 0x2b1   : > { %3014 = vmatpush.bf16.msrb.mxu2 %v4184_v20  ;;  %3027 = vmatpush.bf16.msrb.mxu3 %v4344_v21 }
 0x2b4   : > { %3015 = vmatmul.bf16.vlgmr.msrb.gmra.mxu2 %v5412_v42  ;;  %3028 = vmatmul.bf16.vlgmr.msrb.gmra.mxu3 %v5414_v10 }
 0x311   : > { %v2938_v23 = vpop.f32.mrf.mxu0  ;;  %v2951_v37 = vpop.f32.mrf.mxu1 }
 0x312   : > { %v2939_v40 = vadd.f32 %v2938_v23, %v2471_v35 }
 0x314   : > { %v2952_v45 = vadd.f32 %v2951_v37, %v2939_v40 }
 0x316   : > { %v2912_v26 = vpop.f32.mrf.mxu2  ;;  %v2925_v28 = vpop.f32.mrf.mxu3  ;;  %v3038_v51 = vmul.f32 0.5, %v2952_v45 }
 0x317   : > { %v2913_v13 = vadd.f32 %v2912_v26, %v2470_v25 }
 0x319   : > { %v2926_v29 = vadd.f32 %v2925_v28, %v2913_v13  ;;  %v2940_v30 = vpop.f32.mrf.mxu0  ;;  %v2953_v33 = vpop.f32.mrf.mxu1 }
 0x31b   : > { %v3034_v36 = vmul.f32 0.5, %v2926_v29 }
 0x31d   : > { %4935 = vtanh.f32 %v3034_v36 }
 0x31e   : > { %v2914_v22 = vpop.f32.mrf.mxu2  ;;  %v2927_v38 = vpop.f32.mrf.mxu3  ;;  %4937 = vtanh.f32 %v3038_v51 }
 0x321   : > { %v2990_v42 = vpop.f32.mrf.mxu0  ;;  %v3003_v44 = vpop.f32.mrf.mxu1 }
 0x322   : > { %v2991_v10 = vadd.f32 %v2990_v42, %v2473_v39 }
 0x323   : > { %v4936_v14 = vpop.eup %4935 }
 0x324   : > { %v3036_v46 = vadd.f32 1.0, %v4936_v14  ;;  %v3004_v47 = vadd.f32 %v3003_v44, %v2991_v10  ;;  %v4938_v59 = vpop.eup %4937 }
 0x325   : > { %v3040_v61 = vadd.f32 1.0, %v4938_v59 }
 0x326   : > { %v3037_v48 = vmul.f32 0.5, %v3036_v46  ;;  %v2964_v49 = vpop.f32.mrf.mxu2  ;;  %v2977_v50 = vpop.f32.mrf.mxu3 }
 0x327   : > { %v2965_v53 = vadd.f32 %v2964_v49, %v2472_v43  ;;  %v3041_v2 = vmul.f32 0.5, %v3040_v61 }
 0x328   : > { %v3042_v54 = vmul.f32 %v3037_v48, %v3004_v47 }
 0x329   : > { %v2978_v27 = vadd.f32 %v2977_v50, %v2965_v53  ;;  %v2992_v55 = vpop.f32.mrf.mxu0  ;;  %v3005_v52 = vpop.f32.mrf.mxu1  ;;  %v3045_v6 = vsub.f32 1.0, %v3041_v2 }
 0x32b   : > { %v3043_v56 = vadd.f32 %v3042_v54, %v2978_v27 }
 0x32d   : > { %4939 = vtanh.f32 %v3043_v56 }
 0x32e   : > { %v2966_v57 = vpop.f32.mrf.mxu2  ;;  %v2979_v58 = vpop.f32.mrf.mxu3 }
 0x333   : > { %v4940_v60 = vpop.eup %4939 }
 0x334   : > { %v3046_v63 = vsub.f32 %v4940_v60, %v5407_v31 }
 0x336   : > { %v3047_v5 = vmul.f32 %v3046_v63, %v5337_v41 }
 0x337   : > { %v3016_v0 = vpop.f32.mrf.mxu2  ;;  %v3029_v1 = vpop.f32.mrf.mxu3 }
 0x338   : > { %v3017_v3 = vadd.f32 %v3016_v0, %v2474_v62 }
 0x33a   : > { %v3030_v4 = vadd.f32 %v3029_v1, %v3017_v3 }
 0x33c   : > { %v3048_v7 = vadd.f32 %v3047_v5, %v3030_v4 }
 0x33e   : > { %v3049_v32 = vmul.f32 %v3048_v7, %v3045_v6 }
 0x33f   : > { %v3018_v8 = vpop.f32.mrf.mxu2  ;;  %v3031_v34 = vpop.f32.mrf.mxu3 }
 0x340   : > { %v3050_v9 = vadd.f32 %v3049_v32, %v5407_v31 }
 0x342   : > { %3051 = vst [vmem:[#allocation3] sm:$0xff] %v3050_v9  ;;  %v3052_v11 = vpack.c.bf16 %v3050_v9, %v3050_v9 }
 0x343   : > { %4485 = vst [vmem:[%s5303_s1 + $0x18] sm:$0xff] %v3050_v9 }
 0x344   : > { %3053 = vst [vmem:[#allocation2] sm:$0xf] %v3052_v11 }
 0x345   : > { %5082 = shalt.err (!%p5079_p2)
}
 0x346   : > { %s5150_s8 = smov 128   ;;  %s5151_s1 = smov 8  }
 0x347   : > { %4839 = dma.vmem_to_hbm [thread:$0]  (%p5237_p8), %s3071_s10, 512, %s3073_s13, %s3057_s23, %s5150_s8, %s5150_s8, %s5151_s1  }
 0x348 PF: > { %s3087_s17 = sand.u32 1, %s5123_s20   ;;  %p4853_p4 = pnand %p3190_p13, %p5241_p9 }
 0x349   : > { %s3088_s30 = scalar_lea.sflag [#allocation9], %s3087_s17 }
 0x34a   : > { %p4854_p6 = pneg %p4853_p4 }
 0x34c   : > { %5118 = dma.done.wait (%p4854_p6), %s3088_s30, 512  }
 0x34d   : > { %5120 = vsyncadd (%p4854_p6), %s3088_s30, 4294966784  ;;  %s23_s25 = sadd.s32 1, %s5143_s25   ;;  %s5486_s20 = smov %s5127_s21 }
 0x34e   : > { %p20_p5 = scmp.ge.s32.totalorder %s23_s25, 4   ;;  %s5487_s21 = smov %s5131_s22 }
 0x34f   : > { %s5488_s22 = smov %s5282_s16  ;;  %s5489_s23 = smov %s5139_s24 }
 0x350   : > { %s5490_s24 = smov %s5492_s26  ;;  %22 = sbr.rel (!%p20_p5) target bundleno = 11 (0xb), region = 104 }
 0x355   :  { %3094 = vsyncpa [#allocation8], 1 }
 0x356   :  { %3096 = vsyncpa [#allocation8 + $0x1], 1 }
 0x357   :  { %3097 = vsyncpa [#allocation11], 1 }
 0x358   :  { %3098 = vsyncpa [#allocation9], 1 }
 0x359   :  { %3100 = vsyncpa [#allocation9 + $0x1], 1 }
 0x35a   :  { %3101 = vsyncmov [#allocation5] }
 0x35d   :  { %s3102_s6 = vpop.sfrf %3101 }
 0x35e   :  { %p4491_p8 = scmp.ne.s32.totalorder %s3102_s6, 0 }
 0x360   :  { %3106 = shalt.err (%p4491_p8)  }

</bundles_post_ra>
